<compile_context>
chip_gen: v7x
topology: tpu7x:2x2x1
jax: 0.10.0
libtpu: 0.0.40
codegen_flags: <defaults>
</compile_context>

<pallas_src>
import functools

import numpy as np
import jax
import jax.numpy as jnp
from jax import lax
from jax.experimental import pallas as pl
from jax.experimental.pallas import tpu as pltpu


def _greedy_ctc_kernel(em_ref, out_ref, carry_ref, *, blank):
    # Reset the cross-tile carry at the start of every sequence (T-tile 0).
    # -1 never equals a valid class index, so position 0 always starts a run.
    @pl.when(pl.program_id(1) == 0)
    def _():
        carry_ref[...] = jnp.full(carry_ref.shape, -1, jnp.int32)

    em = em_ref[...]                        # (TILE_B, TILE_T, C), native dtype
    tile_b, tile_t, num_classes = em.shape

    # First-occurrence argmax over the class (lane) axis -- matches torch.argmax.
    cls = lax.broadcasted_iota(jnp.int32, em.shape, 2)
    maxv = jnp.max(em, axis=2, keepdims=True)                     # (TILE_B, TILE_T, 1)
    cand = jnp.where(em == maxv, cls, jnp.int32(num_classes))
    idx = jnp.min(cand, axis=2)                                   # (TILE_B, TILE_T) int32

    # All-NaN class columns leave idx == num_classes (nothing compares equal to
    # the NaN max); map them to blank so they get dropped instead of producing
    # an out-of-range label gather on host.
    # TODO(synk): torch.argmax on an all-NaN column returns the NaN position; we
    # drop such positions instead (there is no sensible character for them).
    idx = jnp.where(idx == jnp.int32(num_classes), jnp.int32(blank), idx)

    # Previous timestep's argmax: a lane roll of idx (XLU, nearly free) instead
    # of a second reduction. Lane 0 takes the carried last index of the previous
    # T tile (or -1 at the start of the sequence).
    lane = lax.broadcasted_iota(jnp.int32, idx.shape, 1)
    prev = pltpu.roll(idx, shift=1, axis=1)
    prev = jnp.where(lane == 0, carry_ref[...], prev)

    # unique_consecutive (keep run starts) + blank filtering, packed into one
    # lane-dense int32 store: kept class index, or -1 for dropped positions.
    keep = jnp.logical_and(idx != prev, idx != jnp.int32(blank))
    out_ref[...] = jnp.where(keep, idx, jnp.int32(-1))

    # Carry this tile's last timestep into the next T tile. For the (possibly
    # ragged) final T tile the carry is never consumed, so any garbage lanes
    # past the true sequence length are harmless.
    carry_ref[...] = idx[:, tile_t - 1:]


def _round_up(x, m):
    return -(-x // m) * m


@functools.partial(jax.jit, static_argnames=("blank", "tile_t", "tile_b"))
def _greedy_ctc_indices(emissions_btc, blank=0, tile_t=4096, tile_b=8):
    """emissions_btc: [B, T, C] -> [B, T] int32 (kept class index, or -1)."""
    B, T, C = emissions_btc.shape

    # Clamp tiles to the problem (all static -> resolved at trace time). No HBM
    # transpose or pad pass: the natural [B, T, C] layout is consumed directly,
    # and ragged B / T tails are handled as Pallas partial blocks.
    tile_t = max(128, min(_round_up(T, 128), tile_t))
    tile_b = min(tile_b, B)
    grid = (pl.cdiv(B, tile_b), pl.cdiv(T, tile_t))

    # VMEM footprint (double-buffered input): 2 * tile_b * tile_t * C * itemsize.
    # At the defaults (8, 4096, 32, f32) that is 8 MiB -- well under the scoped
    # VMEM default on v5e/v6e/v7x, so no vmem_limit_bytes override is needed.
    # TODO(synk): output could be int8 (values in [-1, 31]) to shrink D2H; kept
    # int32 to keep the (8, 128) store tiling simple -- output is 1/C of traffic.
    return pl.pallas_call(
        functools.partial(_greedy_ctc_kernel, blank=blank),
        out_shape=jax.ShapeDtypeStruct((B, T), jnp.int32),
        grid_spec=pltpu.PrefetchScalarGridSpec(
            num_scalar_prefetch=0,
            grid=grid,
            in_specs=[pl.BlockSpec((tile_b, tile_t, C), lambda b, t: (b, t, 0))],
            out_specs=pl.BlockSpec((tile_b, tile_t), lambda b, t: (b, t)),
            scratch_shapes=[pltpu.VMEM((tile_b, 1), jnp.int32)],
        ),
        compiler_params=pltpu.CompilerParams(
            # Batch blocks split across TensorCores; T carries state -> arbitrary.
            # TODO(synk): for B == 1 on v7x both halves of T could be decoded on
            # the two TensorCores with a seam fix-up; not worth the complexity here.
            dimension_semantics=("parallel", "arbitrary")),
    )(emissions_btc)


def greedy_ctc_decode_batch(emissions, labels, blank=0, tile_t=4096, tile_b=8):
    """emissions: [B, T, C] (f32 or bf16) -> list of decoded strings."""
    # TODO(synk): for streams of variable-length utterances, bucket T to a few
    # canonical lengths before this call so each bucket compiles exactly once.
    emissions = jnp.asarray(emissions)
    idx = _greedy_ctc_indices(emissions, blank=blank, tile_t=tile_t, tile_b=tile_b)
    idx = jax.block_until_ready(idx)
    idx_h = np.asarray(idx)

    # TODO(synk): variable-length compaction + label join have no Pallas
    # equivalent (string output); done on host with a vectorized numpy gather.
    label_arr = np.asarray(list(labels))
    decoded = []
    for row in idx_h:
        kept = row[row >= 0]
        decoded.append("".join(label_arr[kept].tolist()))
    return decoded


def greedy_ctc_decode(emission, labels, blank=0, tile_t=4096, tile_b=8):
    """Matches GreedyCTCDecoder.forward: [T, C] emission -> decoded string."""
    return greedy_ctc_decode_batch(jnp.asarray(emission)[None], labels,
                                   blank=blank, tile_t=tile_t, tile_b=tile_b)[0]


def _reference_decode(emission, labels, blank=0):
    em = np.asarray(emission)
    indices = em.argmax(axis=-1)
    out = []
    prev = None
    for i in indices:
        if prev is None or i != prev:
            if i != blank:
                out.append(labels[int(i)])
        prev = i
    return "".join(out)


if __name__ == "__main__":
    # 32 labels; index 0 is the CTC blank ("-").
    labels = "-" + "abcdefghijklmnopqrstuvwxyz" + "01234"
    assert len(labels) == 32

    key = jax.random.PRNGKey(0)
    k1, k2 = jax.random.split(key)

    # Case 1: small batch of short utterances (matches the original demo shape).
    B, T, C = 4, 8, 32
    logits = jax.random.normal(k1, (B, T, C), dtype=jnp.float32)
    emissions = jax.nn.log_softmax(logits, axis=-1)          # typical CTC emission
    decoded = greedy_ctc_decode_batch(emissions, labels, blank=0)
    refs = [_reference_decode(np.asarray(emissions[b]), labels, blank=0)
            for b in range(B)]
    assert decoded == refs, f"mismatch: kernel={decoded!r} ref={refs!r}"

    # Single-emission path matches the PyTorch module signature exactly.
    single = greedy_ctc_decode(emissions[0], labels, blank=0)
    assert single == refs[0], f"mismatch: kernel={single!r} ref={refs[0]!r}"

    # Case 2: bf16 emissions, multiple T tiles and a ragged tail (300 = 2*128+44)
    # exercising the cross-tile carry and the no-pad partial-block path.
    B2, T2 = 2, 300
    logits2 = jax.random.normal(k2, (B2, T2, C), dtype=jnp.float32)
    emissions2 = jax.nn.log_softmax(logits2, axis=-1).astype(jnp.bfloat16)
    decoded2 = greedy_ctc_decode_batch(emissions2, labels, blank=0, tile_t=128)
    refs2 = [_reference_decode(np.asarray(emissions2[b].astype(jnp.float32)),
                               labels, blank=0)
             for b in range(B2)]
    assert decoded2 == refs2, f"mismatch: kernel={decoded2!r} ref={refs2!r}"

    print("KERNEL_OK")
</pallas_src>

<mosaic_0001>
module attributes {stable_mosaic.version = 11 : i64} {
  func.func @_greedy_ctc_kernel(%arg0: i32, %arg1: i32, %arg2: memref<4x128x32xf32, #tpu.memory_space<vmem>>, %arg3: memref<4x128xi32, #tpu.memory_space<vmem>>, %arg4: memref<4x1xi32, #tpu.memory_space<vmem>>) attributes {dimension_semantics = [#tpu.dimension_semantics<parallel>, #tpu.dimension_semantics<arbitrary>], iteration_bounds = array<i64: 1, 1>, scalar_prefetch = 0 : i64, scratch_operands = 1 : i64, tpu.core_type = #tpu.core_type<tc>, window_params = [{transform_indices = @transform_0, window_bounds = array<i64: 4, 128, 32>}, {transform_indices = @transform_1, window_bounds = array<i64: 4, 128>}]} {
    %c0_i32 = arith.constant 0 : i32
    %0 = arith.cmpi eq, %arg1, %c0_i32 : i32
    %1 = arith.extui %0 : i1 to i32
    %c0_i32_0 = arith.constant 0 : i32
    %2 = arith.cmpi ne, %1, %c0_i32_0 : i32
    scf.if %2 {
      %c-1_i32_14 = arith.constant -1 : i32
      %33 = vector.broadcast %c-1_i32_14 : i32 to vector<4x1xi32>
      %c0_15 = arith.constant 0 : index
      %c0_16 = arith.constant 0 : index
      %34 = vector.load %arg4[%c0_15, %c0_16] : memref<4x1xi32, #tpu.memory_space<vmem>>, vector<4x1xi32>
      tpu.vector_store %arg4[%c0_15, %c0_16], %33 {strides = array<i32>} : memref<4x1xi32, #tpu.memory_space<vmem>>, vector<4x1xi32>,
    } else {
    }
    %c0 = arith.constant 0 : index
    %c0_1 = arith.constant 0 : index
    %c0_2 = arith.constant 0 : index
    %3 = vector.load %arg2[%c0, %c0_1, %c0_2] : memref<4x128x32xf32, #tpu.memory_space<vmem>>, vector<4x128x32xf32>
    %4 = tpu.iota {dimensions = array<i32: 2>} : vector<4x128x32xi32>
    %cst = arith.constant dense<0xFF800000> : vector<4x128xf32>
    %5 = vector.multi_reduction <maximumf>, %3, %cst [2] : vector<4x128x32xf32> to vector<4x128xf32>
    %6 = vector.shape_cast %5 : vector<4x128xf32> to vector<4x128x1xf32>
    %7 = vector.broadcast %6 : vector<4x128x1xf32> to vector<4x128x32xf32>
    %8 = arith.cmpf oeq, %3, %7 : vector<4x128x32xf32>
    %c32_i32 = arith.constant 32 : i32
    %9 = vector.broadcast %c32_i32 : i32 to vector<4x128x32xi32>
    %10 = arith.select %8, %4, %9 : vector<4x128x32xi1>, vector<4x128x32xi32>
    %cst_3 = arith.constant dense<2147483647> : vector<4x128xi32>
    %11 = vector.multi_reduction <minsi>, %10, %cst_3 [2] : vector<4x128x32xi32> to vector<4x128xi32>
    %c32_i32_4 = arith.constant 32 : i32
    %12 = vector.broadcast %c32_i32_4 : i32 to vector<4x128xi32>
    %13 = arith.cmpi eq, %11, %12 : vector<4x128xi32>
    %c0_i32_5 = arith.constant 0 : i32
    %14 = vector.broadcast %c0_i32_5 : i32 to vector<4x128xi32>
    %15 = arith.select %13, %14, %11 : vector<4x128xi1>, vector<4x128xi32>
    %16 = tpu.iota {dimensions = array<i32: 1>} : vector<4x128xi32>
    %c1_i32 = arith.constant 1 : i32
    %17 = tpu.dynamic_rotate %15 by %c1_i32 dim 1 : vector<4x128xi32>, i32 -> vector<4x128xi32>
    %c0_i32_6 = arith.constant 0 : i32
    %18 = vector.broadcast %c0_i32_6 : i32 to vector<4x128xi32>
    %19 = arith.cmpi eq, %16, %18 : vector<4x128xi32>
    %c0_7 = arith.constant 0 : index
    %c0_8 = arith.constant 0 : index
    %20 = vector.load %arg4[%c0_7, %c0_8] : memref<4x1xi32, #tpu.memory_space<vmem>>, vector<4x1xi32>
    %21 = vector.shape_cast %20 : vector<4x1xi32> to vector<4x1xi32>
    %22 = vector.broadcast %21 : vector<4x1xi32> to vector<4x128xi32>
    %23 = arith.select %19, %22, %17 : vector<4x128xi1>, vector<4x128xi32>
    %24 = arith.cmpi ne, %15, %23 : vector<4x128xi32>
    %c0_i32_9 = arith.constant 0 : i32
    %25 = vector.broadcast %c0_i32_9 : i32 to vector<4x128xi32>
    %26 = arith.cmpi ne, %15, %25 : vector<4x128xi32>
    %27 = arith.andi %24, %26 : vector<4x128xi1>
    %c-1_i32 = arith.constant -1 : i32
    %28 = vector.broadcast %c-1_i32 : i32 to vector<4x128xi32>
    %29 = arith.select %27, %15, %28 : vector<4x128xi1>, vector<4x128xi32>
    %c0_10 = arith.constant 0 : index
    %c0_11 = arith.constant 0 : index
    %30 = vector.load %arg3[%c0_10, %c0_11] : memref<4x128xi32, #tpu.memory_space<vmem>>, vector<4x128xi32>
    tpu.vector_store %arg3[%c0_10, %c0_11], %29 {strides = array<i32>} : memref<4x128xi32, #tpu.memory_space<vmem>>, vector<4x128xi32>,
    %31 = vector.extract_strided_slice %15 {offsets = [0, 127], sizes = [4, 1], strides = [1, 1]} : vector<4x128xi32> to vector<4x1xi32>
    %c0_12 = arith.constant 0 : index
    %c0_13 = arith.constant 0 : index
    %32 = vector.load %arg4[%c0_12, %c0_13] : memref<4x1xi32, #tpu.memory_space<vmem>>, vector<4x1xi32>
    tpu.vector_store %arg4[%c0_12, %c0_13], %31 {strides = array<i32>} : memref<4x1xi32, #tpu.memory_space<vmem>>, vector<4x1xi32>,
    return
  }
  func.func @transform_0(%arg0: i32, %arg1: i32) -> (i32, i32, i32) {
    %c0_i32 = arith.constant 0 : i32
    %c0_i32_0 = arith.constant 0 : i32
    return %arg0, %arg1, %c0_i32 : i32, i32, i32
  }
  func.func @transform_1(%arg0: i32, %arg1: i32) -> (i32, i32) {
    %c0_i32 = arith.constant 0 : i32
    return %arg0, %arg1 : i32, i32
  }
}

</mosaic_0001>

<bundles_post_ra>
// kernel: _greedy_ctc_indices.1
= control target key start
LH: loop header
LB: loop body
LE: loop exit
PB: predicated region body
PF: predicated region fallthrough
CT: control target
= control target key end

     0   :  { %6 = vsyncpa [#allocation4], 0  ;;  %s5381_s0 = inlined_call_operand.hbm [shape: f32[4,8,32], index: 0, kind: input, shape index: {}]   ;;  %s5382_s1 = inlined_call_operand.hbm [shape: s32[4,8], index: 1, kind: output, shape index: {}]  }
   0x1   :  { %7 = vsyncpa [#allocation5], 0 }
   0x2   :  { %12 = vsyncadd [#allocation4], 7680  ;;  %s17_s6 = sld [smem:[#allocation0]]   ;;  %s2998_s7 = smov [#allocation3]  }
   0x3   :  { %s25_s8 = sshll.u32 %s2998_s7, 4  ;;  %s2999_s9 = smov 128   ;;  %s26_s8 = int_to_ptr.vmem [resolvable:$true] %s25_s8 }
   0x4   :  { %32 = sst [smem:[#allocation8]] %s2999_s9  ;;  %s3000_s10 = smov 2048  }
   0x5   :  { %34 = sst [smem:[#allocation8 + $0x1]] %s3000_s10  ;;  %s3001_s11 = smov 1  }
   0x6   :  { %36 = sst [smem:[#allocation8 + $0x2]] %s3001_s11  ;;  %s3002_s14 = smov 8  }
   0x7   :  { %38 = sst [smem:[#allocation8 + $0x3]] %s2999_s9  ;;  %s3003_s15 = smov [#allocation4]  }
   0x8   :  { %s2949_s12 = sshll.u32 %s17_s6, 26  ;;  %40 = sst [smem:[#allocation8 + $0x4]] %s2999_s9 }
   0x9   :  { %s2950_s13 = sadd.s32 134217728, %s2949_s12  ;;  %42 = sst [smem:[#allocation8 + $0x5]] %s3002_s14 }
   0xa   :  { %s3004_s16 = smov [#allocation7]  }
   0xb   :  { %44 = dma.general %s5381_s0, 512, %s26_s8, %s3003_s15, %s3004_s16, [#allocation8], %s2950_s13, 0  }
   0xc   :  { %2994 = dma.done.wait [#allocation4], 8192  }
   0xd   :  { %2995 = vsyncadd [#allocation4], 4294959104  ;;  %vm120_vm0 = vcmask 261120   ;;  %v3022_v0 = vld [vmem:[#allocation3] sm:$0xff]  ;;  %v3024_v1 = vld [vmem:[#allocation3 + $0x8] sm:$0xff]  ;;  %s3007_s0 = smov 1  }
   0xe   :  { %v3026_v2 = vld [vmem:[#allocation3 + $0x10] sm:$0xff]  ;;  %v121_v3 = vsel %vm120_vm0, %v3022_v0, -inf  ;;  %v3032_v5 = vld [vmem:[#allocation3 + $0x18] sm:$0xff]  ;;  %v124_v6 = vsel %vm120_vm0, %v3024_v1, -inf  ;;  %v3038_v8 = vld [vmem:[#allocation3 + $0x20] sm:$0xff]  ;;  %s3008_s19 = smov [#allocation6]  }
   0xf   :  { %v127_v4 = vsel %vm120_vm0, %v3026_v2, -inf  ;;  %122 = vmax.xlane.f32.xlu0 %v121_v3  ;;  %v130_v7 = vsel %vm120_vm0, %v3032_v5, -inf  ;;  %v3040_v9 = vld [vmem:[#allocation3 + $0x28] sm:$0xff]  ;;  %v133_v10 = vsel %vm120_vm0, %v3038_v8, -inf  ;;  %v3046_v12 = vld [vmem:[#allocation3 + $0x30] sm:$0xff]  ;;  %v3048_v13 = vld [vmem:[#allocation3 + $0x38] sm:$0xff] }
  0x10   :  { %128 = vmax.xlane.f32.xlu1 %v127_v4  ;;  %v136_v11 = vsel %vm120_vm0, %v3040_v9, -inf  ;;  %v139_v14 = vsel %vm120_vm0, %v3046_v12, -inf  ;;  %v142_v15 = vsel %vm120_vm0, %v3048_v13, -inf  ;;  %v3054_v16 = vld [vmem:[#allocation3 + $0x40] sm:$0xff]  ;;  %v3056_v17 = vld [vmem:[#allocation3 + $0x48] sm:$0xff]  ;;  %v3062_v20 = vld [vmem:[#allocation3 + $0x50] sm:$0xff] }
  0x11   :  { %v145_v18 = vsel %vm120_vm0, %v3054_v16, -inf  ;;  %v148_v19 = vsel %vm120_vm0, %v3056_v17, -inf  ;;  %v3064_v21 = vld [vmem:[#allocation3 + $0x58] sm:$0xff]  ;;  %v151_v22 = vsel %vm120_vm0, %v3062_v20, -inf  ;;  %v3070_v24 = vld [vmem:[#allocation3 + $0x60] sm:$0xff]  ;;  %v3072_v25 = vld [vmem:[#allocation3 + $0x68] sm:$0xff] }
  0x12   :  { %v154_v23 = vsel %vm120_vm0, %v3064_v21, -inf  ;;  %v157_v26 = vsel %vm120_vm0, %v3070_v24, -inf  ;;  %v160_v27 = vsel %vm120_vm0, %v3072_v25, -inf  ;;  %v3078_v28 = vld [vmem:[#allocation3 + $0x70] sm:$0xff]  ;;  %v3080_v29 = vld [vmem:[#allocation3 + $0x78] sm:$0xff]  ;;  %v3086_v32 = vld [vmem:[#allocation3 + $0x80] sm:$0xff] }
  0x13   :  { %125 = vmax.xlane.f32.xlu0 %v124_v6  ;;  %v163_v30 = vsel %vm120_vm0, %v3078_v28, -inf  ;;  %v166_v31 = vsel %vm120_vm0, %v3080_v29, -inf  ;;  %v3088_v33 = vld [vmem:[#allocation3 + $0x88] sm:$0xff]  ;;  %v169_v34 = vsel %vm120_vm0, %v3086_v32, -inf  ;;  %v3094_v36 = vld [vmem:[#allocation3 + $0x90] sm:$0xff]  ;;  %v3096_v37 = vld [vmem:[#allocation3 + $0x98] sm:$0xff] }
  0x14   :  { %131 = vmax.xlane.f32.xlu1 %v130_v7  ;;  %v172_v35 = vsel %vm120_vm0, %v3088_v33, -inf  ;;  %v175_v38 = vsel %vm120_vm0, %v3094_v36, -inf  ;;  %v178_v39 = vsel %vm120_vm0, %v3096_v37, -inf  ;;  %v3102_v40 = vld [vmem:[#allocation3 + $0xa0] sm:$0xff]  ;;  %v3104_v41 = vld [vmem:[#allocation3 + $0xa8] sm:$0xff]  ;;  %v3110_v44 = vld [vmem:[#allocation3 + $0xb0] sm:$0xff] }
  0x15   :  { %v181_v42 = vsel %vm120_vm0, %v3102_v40, -inf  ;;  %v184_v43 = vsel %vm120_vm0, %v3104_v41, -inf  ;;  %v3112_v45 = vld [vmem:[#allocation3 + $0xb8] sm:$0xff]  ;;  %v187_v46 = vsel %vm120_vm0, %v3110_v44, -inf  ;;  %v3118_v48 = vld [vmem:[#allocation3 + $0xc0] sm:$0xff]  ;;  %v3120_v49 = vld [vmem:[#allocation3 + $0xc8] sm:$0xff] }
  0x16   :  { %v190_v47 = vsel %vm120_vm0, %v3112_v45, -inf  ;;  %v193_v50 = vsel %vm120_vm0, %v3118_v48, -inf  ;;  %v196_v51 = vsel %vm120_vm0, %v3120_v49, -inf  ;;  %v3126_v52 = vld [vmem:[#allocation3 + $0xd0] sm:$0xff]  ;;  %v3128_v53 = vld [vmem:[#allocation3 + $0xd8] sm:$0xff]  ;;  %v3134_v56 = vld [vmem:[#allocation3 + $0xe0] sm:$0xff] }
  0x17   :  { %134 = vmax.xlane.f32.xlu0 %v133_v10  ;;  %v199_v54 = vsel %vm120_vm0, %v3126_v52, -inf  ;;  %v202_v55 = vsel %vm120_vm0, %v3128_v53, -inf  ;;  %v3136_v57 = vld [vmem:[#allocation3 + $0xe8] sm:$0xff]  ;;  %v205_v58 = vsel %vm120_vm0, %v3134_v56, -inf  ;;  %v3142_v60 = vld [vmem:[#allocation3 + $0xf0] sm:$0xff]  ;;  %v3144_v61 = vld [vmem:[#allocation3 + $0xf8] sm:$0xff] }
  0x18   :  { %137 = vmax.xlane.f32.xlu1 %v136_v11  ;;  %v208_v59 = vsel %vm120_vm0, %v3136_v57, -inf  ;;  %v211_v62 = vsel %vm120_vm0, %v3142_v60, -inf  ;;  %v214_v63 = vsel %vm120_vm0, %v3144_v61, -inf  ;;  %v3150_v3 = vld [vmem:[#allocation3 + $0x100] sm:$0xff]  ;;  %v3152_v4 = vld [vmem:[#allocation3 + $0x108] sm:$0xff]  ;;  %v3158_v10 = vld [vmem:[#allocation3 + $0x110] sm:$0xff] }
  0x19   :  { %v217_v6 = vsel %vm120_vm0, %v3150_v3, -inf  ;;  %v220_v7 = vsel %vm120_vm0, %v3152_v4, -inf  ;;  %v3160_v11 = vld [vmem:[#allocation3 + $0x118] sm:$0xff]  ;;  %s2940_s20 = sshll.u32 %s3008_s19, 4  ;;  %s2941_s20 = int_to_ptr.vmem [resolvable:$true] %s2940_s20 }
  0x1a   :  { %s2972_s21 = scalar_lea.vmem %s2941_s20, 64  ;;  %p2977_p1 = scmp.lt.s32.totalorder %s2941_s20, %s2941_s20 }
  0x1b   :  { %140 = vmax.xlane.f32.xlu0 %v139_v14  ;;  %v223_v14 = vsel %vm120_vm0, %v3158_v10, -inf  ;;  %p2973_p0 = scmp.ne.s32.totalorder %s2941_s20, %s2972_s21  ;;  %p2978_p2 = scmp.lt.s32.totalorder %s2972_s21, %s2972_s21 }
  0x1c   :  { %143 = vmax.xlane.f32.xlu1 %v142_v15  ;;  %v226_v15 = vsel %vm120_vm0, %v3160_v11, -inf }
  0x1d   :  { %p2979_p3 = por %p2978_p2, %p2977_p1 }
  0x1f   :  { %146 = vmax.xlane.f32.xlu0 %v145_v18  ;;  %v3166_v18 = vld [vmem:[#allocation3 + $0x120] sm:$0xff]  ;;  %p2980_p4 = pnand %p2979_p3, %p2973_p0 }
  0x20   :  { %149 = vmax.xlane.f32.xlu1 %v148_v19  ;;  %v3168_v19 = vld [vmem:[#allocation3 + $0x128] sm:$0xff] }
  0x23   :  { %152 = vmax.xlane.f32.xlu0 %v151_v22  ;;  %v229_v22 = vsel %vm120_vm0, %v3166_v18, -inf }
  0x24   :  { %155 = vmax.xlane.f32.xlu1 %v154_v23  ;;  %v232_v23 = vsel %vm120_vm0, %v3168_v19, -inf }
  0x27   :  { %158 = vmax.xlane.f32.xlu0 %v157_v26  ;;  %v3174_v26 = vld [vmem:[#allocation3 + $0x130] sm:$0xff] }
  0x28   :  { %161 = vmax.xlane.f32.xlu1 %v160_v27  ;;  %v3176_v27 = vld [vmem:[#allocation3 + $0x138] sm:$0xff] }
  0x2b   :  { %164 = vmax.xlane.f32.xlu0 %v163_v30  ;;  %v235_v30 = vsel %vm120_vm0, %v3174_v26, -inf }
  0x2c   :  { %167 = vmax.xlane.f32.xlu1 %v166_v31  ;;  %v238_v31 = vsel %vm120_vm0, %v3176_v27, -inf }
  0x2f   :  { %170 = vmax.xlane.f32.xlu0 %v169_v34  ;;  %v3182_v34 = vld [vmem:[#allocation3 + $0x140] sm:$0xff] }
  0x30   :  { %173 = vmax.xlane.f32.xlu1 %v172_v35  ;;  %v3184_v35 = vld [vmem:[#allocation3 + $0x148] sm:$0xff] }
  0x33   :  { %176 = vmax.xlane.f32.xlu0 %v175_v38  ;;  %v241_v38 = vsel %vm120_vm0, %v3182_v34, -inf }
  0x34   :  { %179 = vmax.xlane.f32.xlu1 %v178_v39  ;;  %v244_v39 = vsel %vm120_vm0, %v3184_v35, -inf }
  0x37   :  { %182 = vmax.xlane.f32.xlu0 %v181_v42  ;;  %v3190_v42 = vld [vmem:[#allocation3 + $0x150] sm:$0xff] }
  0x38   :  { %185 = vmax.xlane.f32.xlu1 %v184_v43  ;;  %v3192_v43 = vld [vmem:[#allocation3 + $0x158] sm:$0xff] }
  0x3b   :  { %188 = vmax.xlane.f32.xlu0 %v187_v46  ;;  %v247_v46 = vsel %vm120_vm0, %v3190_v42, -inf }
  0x3c   :  { %191 = vmax.xlane.f32.xlu1 %v190_v47  ;;  %v250_v47 = vsel %vm120_vm0, %v3192_v43, -inf }
  0x3f   :  { %194 = vmax.xlane.f32.xlu0 %v193_v50  ;;  %v3198_v50 = vld [vmem:[#allocation3 + $0x160] sm:$0xff] }
  0x40   :  { %197 = vmax.xlane.f32.xlu1 %v196_v51  ;;  %v3200_v51 = vld [vmem:[#allocation3 + $0x168] sm:$0xff] }
  0x41   :  { %5591 = vst [vmem:[#allocation11_spill] sm:$0xff] %v3200_v51 }
  0x43   :  { %200 = vmax.xlane.f32.xlu0 %v199_v54  ;;  %v253_v54 = vsel %vm120_vm0, %v3198_v50, -inf }
  0x44   :  { %203 = vmax.xlane.f32.xlu1 %v202_v55  ;;  %v256_v55 = vsel %vm120_vm0, %v3200_v51, -inf }
  0x47   :  { %206 = vmax.xlane.f32.xlu0 %v205_v58  ;;  %v3206_v58 = vld [vmem:[#allocation3 + $0x170] sm:$0xff] }
  0x48   :  { %209 = vmax.xlane.f32.xlu1 %v208_v59  ;;  %5592 = vst [vmem:[#allocation12_spill] sm:$0xff] %v3206_v58  ;;  %v3208_v59 = vld [vmem:[#allocation3 + $0x178] sm:$0xff] }
  0x49   :  { %5593 = vst [vmem:[#allocation13_spill] sm:$0xff] %v3208_v59 }
  0x4b   :  { %212 = vmax.xlane.f32.xlu0 %v211_v62  ;;  %v259_v62 = vsel %vm120_vm0, %v3206_v58, -inf }
  0x4c   :  { %215 = vmax.xlane.f32.xlu1 %v214_v63  ;;  %v262_v63 = vsel %vm120_vm0, %v3208_v59, -inf }
  0x4f   :  { %218 = vmax.xlane.f32.xlu0 %v217_v6  ;;  %v3214_v6 = vld [vmem:[#allocation3 + $0x180] sm:$0xff] }
  0x50   :  { %221 = vmax.xlane.f32.xlu1 %v220_v7  ;;  %5594 = vst [vmem:[#allocation14_spill] sm:$0xff] %v3214_v6  ;;  %v3216_v7 = vld [vmem:[#allocation3 + $0x188] sm:$0xff] }
  0x51   :  { %5595 = vst [vmem:[#allocation15_spill] sm:$0xff] %v3216_v7 }
  0x53   :  { %224 = vmax.xlane.f32.xlu0 %v223_v14  ;;  %v265_v14 = vsel %vm120_vm0, %v3214_v6, -inf }
  0x54   :  { %227 = vmax.xlane.f32.xlu1 %v226_v15  ;;  %v268_v15 = vsel %vm120_vm0, %v3216_v7, -inf }
  0x57   :  { %230 = vmax.xlane.f32.xlu0 %v229_v22  ;;  %v3222_v22 = vld [vmem:[#allocation3 + $0x190] sm:$0xff] }
  0x58   :  { %233 = vmax.xlane.f32.xlu1 %v232_v23  ;;  %5596 = vst [vmem:[#allocation16_spill] sm:$0xff] %v3222_v22  ;;  %v3224_v23 = vld [vmem:[#allocation3 + $0x198] sm:$0xff] }
  0x59   :  { %5597 = vst [vmem:[#allocation17_spill] sm:$0xff] %v3224_v23 }
  0x5b   :  { %236 = vmax.xlane.f32.xlu0 %v235_v30  ;;  %v271_v30 = vsel %vm120_vm0, %v3222_v22, -inf }
  0x5c   :  { %239 = vmax.xlane.f32.xlu1 %v238_v31  ;;  %v274_v31 = vsel %vm120_vm0, %v3224_v23, -inf  ;;  %v115_v23 = vld [vmem:[#allocation3 + $0x1e8] sm:$0xff] }
  0x5f   :  { %242 = vmax.xlane.f32.xlu0 %v241_v38  ;;  %v3230_v38 = vld [vmem:[#allocation3 + $0x1a0] sm:$0xff] }
  0x60   :  { %245 = vmax.xlane.f32.xlu1 %v244_v39  ;;  %5598 = vst [vmem:[#allocation18_spill] sm:$0xff] %v3230_v38  ;;  %v3232_v39 = vld [vmem:[#allocation3 + $0x1a8] sm:$0xff] }
  0x61   :  { %5599 = vst [vmem:[#allocation19_spill] sm:$0xff] %v3232_v39 }
  0x63   :  { %248 = vmax.xlane.f32.xlu0 %v247_v46  ;;  %v277_v46 = vsel %vm120_vm0, %v3230_v38, -inf  ;;  %v113_v38 = vld [vmem:[#allocation3 + $0x1d8] sm:$0xff] }
  0x64   :  { %251 = vmax.xlane.f32.xlu1 %v250_v47  ;;  %v280_v47 = vsel %vm120_vm0, %v3232_v39, -inf  ;;  %v112_v39 = vld [vmem:[#allocation3 + $0x1d0] sm:$0xff] }
  0x67   :  { %254 = vmax.xlane.f32.xlu0 %v253_v54  ;;  %v3238_v54 = vld [vmem:[#allocation3 + $0x1b0] sm:$0xff] }
  0x68   :  { %257 = vmax.xlane.f32.xlu1 %v256_v55  ;;  %5600 = vst [vmem:[#allocation20_spill] sm:$0xff] %v3238_v54  ;;  %v3240_v55 = vld [vmem:[#allocation3 + $0x1b8] sm:$0xff] }
  0x69   :  { %5601 = vst [vmem:[#allocation21_spill] sm:$0xff] %v3240_v55 }
  0x6b   :  { %260 = vmax.xlane.f32.xlu0 %v259_v62  ;;  %v283_v62 = vsel %vm120_vm0, %v3238_v54, -inf  ;;  %v114_v54 = vld [vmem:[#allocation3 + $0x1e0] sm:$0xff] }
  0x6c   :  { %263 = vmax.xlane.f32.xlu1 %v262_v63  ;;  %v286_v63 = vsel %vm120_vm0, %v3240_v55, -inf  ;;  %v301_v55 = vsel %vm120_vm0, %v114_v54, -inf }
  0x6f   :  { %266 = vmax.xlane.f32.xlu0 %v265_v14  ;;  %v110_v14 = vld [vmem:[#allocation3 + $0x1c0] sm:$0xff] }
  0x70   :  { %269 = vmax.xlane.f32.xlu1 %v268_v15  ;;  %v111_v15 = vld [vmem:[#allocation3 + $0x1c8] sm:$0xff] }
  0x73   :  { %272 = vmax.xlane.f32.xlu0 %v271_v30  ;;  %v289_v30 = vsel %vm120_vm0, %v110_v14, -inf }
  0x74   :  { %275 = vmax.xlane.f32.xlu1 %v274_v31  ;;  %v292_v31 = vsel %vm120_vm0, %v111_v15, -inf  ;;  %v117_v15 = vld [vmem:[#allocation3 + $0x1f8] sm:$0xff] }
  0x77   :  { %278 = vmax.xlane.f32.xlu0 %v277_v46  ;;  %v295_v46 = vsel %vm120_vm0, %v112_v39, -inf  ;;  %v5388_v39 = vlaneseq }
  0x78   :  { %281 = vmax.xlane.f32.xlu1 %v280_v47  ;;  %v298_v47 = vsel %vm120_vm0, %v113_v38, -inf }
  0x79   :  { %v3255_v38 = vand.u32 127, %v5388_v39 }
  0x7b   :  { %284 = vmax.xlane.f32.xlu0 %v283_v62  ;;  %v304_v62 = vsel %vm120_vm0, %v115_v23, -inf  ;;  %5602 = vst [vmem:[#allocation22_spill] sm:$0xff] %v3255_v38 }
  0x7c   :  { %287 = vmax.xlane.f32.xlu1 %v286_v63  ;;  %v116_v63 = vld [vmem:[#allocation3 + $0x1f0] sm:$0xff] }
  0x7d   :  { %v307_v14 = vsel %vm120_vm0, %v116_v63, -inf }
  0x7f   :  { %290 = vmax.xlane.f32.xlu0 %v289_v30  ;;  %v310_v30 = vsel %vm120_vm0, %v117_v15, -inf }
  0x80   :  { %293 = vmax.xlane.f32.xlu1 %v292_v31 }
  0x83   :  { %296 = vmax.xlane.f32.xlu0 %v295_v46 }
  0x84   :  { %299 = vmax.xlane.f32.xlu1 %v298_v47 }
  0x87   :  { %302 = vmax.xlane.f32.xlu0 %v301_v55 }
  0x88   :  { %305 = vmax.xlane.f32.xlu1 %v304_v62 }
  0x8b   :  { %308 = vmax.xlane.f32.xlu0 %v307_v14 }
  0x8c   :  { %311 = vmax.xlane.f32.xlu1 %v310_v30 }
  0x9c   :  { %v123_v31 = vpop.xlane.xlu0 %122 }
  0x9d   :  { %v129_v46 = vpop.xlane.xlu1 %128  ;;  %vm313_vm1 = vcmp.eq.f32.partialorder %v3022_v0, %v123_v31 }
  0x9e   :  { %vm315_vm2 = vcmp.eq.f32.partialorder %v3026_v2, %v129_v46  ;;  %v377_v23 = vsel %vm313_vm1, %v3255_v38, 32 }
  0x9f   :  { %v379_v54 = vsel %vm315_vm2, %v3255_v38, 32  ;;  %v3262_v55 = vsel %vm120_vm0, %v377_v23, 2147483647 }
  0xa0   :  { %v126_v47 = vpop.xlane.xlu0 %125  ;;  %v443_v62 = vshra.s32 %v3262_v55, 16  ;;  %v3268_v14 = vsel %vm120_vm0, %v379_v54, 2147483647 }
  0xa1   :  { %v132_v63 = vpop.xlane.xlu1 %131  ;;  %vm314_vm3 = vcmp.eq.f32.partialorder %v3024_v1, %v126_v47  ;;  %v473_v1 = vshra.s32 %v3268_v14, 16 }
  0xa2   :  { %vm316_vm4 = vcmp.eq.f32.partialorder %v3032_v5, %v132_v63  ;;  %v378_v0 = vsel %vm314_vm3, %v3255_v38, 32  ;;  %v3271_v2 = vcvt.s32.f32 %v443_v62 }
  0xa3   :  { %v380_v15 = vsel %vm316_vm4, %v3255_v38, 32  ;;  %v3275_v30 = vsel %vm120_vm0, %v378_v0, 2147483647  ;;  %v3289_v62 = vcvt.s32.f32 %v473_v1 }
  0xa4   :  { %446 = vmin.xlane.f32.xlu0 %v3271_v2  ;;  %v458_v31 = vshra.s32 %v3275_v30, 16  ;;  %v135_v46 = vpop.xlane.xlu0 %134  ;;  %v3282_v23 = vsel %vm120_vm0, %v380_v15, 2147483647 }
  0xa5   :  { %v138_v5 = vpop.xlane.xlu1 %137  ;;  %vm317_vm5 = vcmp.eq.f32.partialorder %v3038_v8, %v135_v46  ;;  %v488_v63 = vshra.s32 %v3282_v23, 16 }
  0xa6   :  { %v3284_v54 = vcvt.s32.f32 %v458_v31  ;;  %v381_v47 = vsel %vm317_vm5, %v3255_v38, 32  ;;  %vm318_vm6 = vcmp.eq.f32.partialorder %v3040_v9, %v138_v5 }
  0xa7   :  { %v3293_v39 = vsel %vm120_vm0, %v381_v47, 2147483647  ;;  %v382_v8 = vsel %vm318_vm6, %v3255_v38, 32  ;;  %v3298_v15 = vcvt.s32.f32 %v488_v63 }
  0xa8   :  { %461 = vmin.xlane.f32.xlu0 %v3284_v54  ;;  %v141_v0 = vpop.xlane.xlu0 %140  ;;  %v503_v9 = vshra.s32 %v3293_v39, 16  ;;  %v3302_v1 = vsel %vm120_vm0, %v382_v8, 2147483647 }
  0xa9   :  { %vm319_vm7 = vcmp.eq.f32.partialorder %v3046_v12, %v141_v0  ;;  %v144_v31 = vpop.xlane.xlu1 %143  ;;  %v518_v12 = vshra.s32 %v3302_v1, 16 }
  0xaa   :  { %v383_v5 = vsel %vm319_vm7, %v3255_v38, 32  ;;  %vm320_vm8 = vcmp.eq.f32.partialorder %v3048_v13, %v144_v31  ;;  %v3307_v47 = vcvt.s32.f32 %v503_v9 }
  0xab   :  { %v3311_v63 = vsel %vm120_vm0, %v383_v5, 2147483647  ;;  %v384_v22 = vsel %vm320_vm8, %v3255_v38, 32  ;;  %v3316_v8 = vcvt.s32.f32 %v518_v12 }
  0xac   :  { %476 = vmin.xlane.f32.xlu0 %v3289_v62  ;;  %v147_v46 = vpop.xlane.xlu0 %146  ;;  %v533_v13 = vshra.s32 %v3311_v63, 16  ;;  %v3320_v9 = vsel %vm120_vm0, %v384_v22, 2147483647 }
  0xad   :  { %vm321_vm9 = vcmp.eq.f32.partialorder %v3054_v16, %v147_v46  ;;  %v150_v31 = vpop.xlane.xlu1 %149  ;;  %5603 = vst [vmem:[#allocation23_spill] sm:$0xff] %v3320_v9  ;;  %v548_v16 = vshra.s32 %v3320_v9, 16 }
  0xae   :  { %v385_v6 = vsel %vm321_vm9, %v3255_v38, 32  ;;  %vm322_vm10 = vcmp.eq.f32.partialorder %v3056_v17, %v150_v31  ;;  %v3325_v5 = vcvt.s32.f32 %v533_v13 }
  0xaf   :  { %v3329_v12 = vsel %vm120_vm0, %v385_v6, 2147483647  ;;  %v386_v59 = vsel %vm322_vm10, %v3255_v38, 32  ;;  %v3334_v22 = vcvt.s32.f32 %v548_v16 }
  0xb0   :  { %491 = vmin.xlane.f32.xlu0 %v3298_v15  ;;  %v153_v0 = vpop.xlane.xlu0 %152  ;;  %5604 = vst [vmem:[#allocation24_spill] sm:$0xff] %v3325_v5  ;;  %5605 = vst [vmem:[#allocation25_spill] sm:$0xff] %v3329_v12  ;;  %v563_v17 = vshra.s32 %v3329_v12, 16  ;;  %v3338_v13 = vsel %vm120_vm0, %v386_v59, 2147483647 }
  0xb1   :  { %vm323_vm11 = vcmp.eq.f32.partialorder %v3062_v20, %v153_v0  ;;  %v156_v31 = vpop.xlane.xlu1 %155  ;;  %5606 = vst [vmem:[#allocation26_spill] sm:$0xff] %v3338_v13  ;;  %v578_v20 = vshra.s32 %v3338_v13, 16 }
  0xb2   :  { %v387_v9 = vsel %vm323_vm11, %v3255_v38, 32  ;;  %vm324_vm12 = vcmp.eq.f32.partialorder %v3064_v21, %v156_v31  ;;  %v3343_v6 = vcvt.s32.f32 %v563_v17 }
  0xb3   :  { %v3347_v16 = vsel %vm120_vm0, %v387_v9, 2147483647  ;;  %v388_v12 = vsel %vm324_vm12, %v3255_v38, 32  ;;  %v3351_v59 = vcvt.s32.f32 %v578_v20 }
  0xb4   :  { %506 = vmin.xlane.f32.xlu0 %v3307_v47  ;;  %v159_v7 = vpop.xlane.xlu0 %158  ;;  %5607 = vst [vmem:[#allocation27_spill] sm:$0xff] %v3343_v6  ;;  %5608 = vst [vmem:[#allocation28_spill] sm:$0xff] %v3347_v16  ;;  %v3358_v17 = vsel %vm120_vm0, %v388_v12, 2147483647 }
  0xb5   :  { %v162_v51 = vpop.xlane.xlu1 %161  ;;  %vm325_vm13 = vcmp.eq.f32.partialorder %v3070_v24, %v159_v7  ;;  %5609 = vst [vmem:[#allocation29_spill] sm:$0xff] %v3358_v17  ;;  %v608_v20 = vshra.s32 %v3358_v17, 16 }
  0xb6   :  { %vm326_vm14 = vcmp.eq.f32.partialorder %v3072_v25, %v162_v51  ;;  %v389_v9 = vsel %vm325_vm13, %v3255_v38, 32 }
  0xb7   :  { %v3370_v13 = vsel %vm120_vm0, %v389_v9, 2147483647  ;;  %v3373_v24 = vcvt.s32.f32 %v608_v20 }
  0xb8   :  { %521 = vmin.xlane.f32.xlu0 %v3316_v8  ;;  %v165_v46 = vpop.xlane.xlu0 %164 }
  0xb9   :  { %5611 = vst [vmem:[#allocation31_spill] sm:$0xff] %v3373_v24  ;;  %v168_v25 = vpop.xlane.xlu1 %167  ;;  %vm327_vm15 = vcmp.eq.f32.partialorder %v3078_v28, %v165_v46 }
  0xba   :  { %vm328_vm1 = vcmp.eq.f32.partialorder %v3080_v29, %v168_v25  ;;  %v391_v12 = vsel %vm327_vm15, %v3255_v38, 32 }
  0xbb   :  { %v392_v17 = vsel %vm328_vm1, %v3255_v38, 32  ;;  %v3392_v28 = vsel %vm120_vm0, %v391_v12, 2147483647 }
  0xbc   :  { %536 = vmin.xlane.f32.xlu0 %v3325_v5  ;;  %v171_v58 = vpop.xlane.xlu0 %170  ;;  %v593_v5 = vshra.s32 %v3347_v16, 16  ;;  %v390_v16 = vsel %vm326_vm14, %v3255_v38, 32  ;;  %v3401_v25 = vsel %vm120_vm0, %v392_v17, 2147483647 }
  0xbd   :  { %v3379_v7 = vsel %vm120_vm0, %v390_v16, 2147483647  ;;  %v174_v29 = vpop.xlane.xlu1 %173  ;;  %vm329_vm2 = vcmp.eq.f32.partialorder %v3086_v32, %v171_v58  ;;  %5615 = vst [vmem:[#allocation35_spill] sm:$0xff] %v3401_v25  ;;  %v668_v12 = vshra.s32 %v3401_v25, 16 }
  0xbe   :  { %v3363_v31 = vcvt.s32.f32 %v593_v5  ;;  %5612 = vst [vmem:[#allocation32_spill] sm:$0xff] %v3379_v7  ;;  %v623_v5 = vshra.s32 %v3370_v13, 16  ;;  %v638_v9 = vshra.s32 %v3379_v7, 16  ;;  %vm330_vm3 = vcmp.eq.f32.partialorder %v3088_v33, %v174_v29 }
  0xbf   :  { %v393_v7 = vsel %vm329_vm2, %v3255_v38, 32  ;;  %v3417_v58 = vcvt.s32.f32 %v668_v12 }
  0xc0   :  { %551 = vmin.xlane.f32.xlu0 %v3334_v22  ;;  %v177_v0 = vpop.xlane.xlu0 %176  ;;  %5610 = vst [vmem:[#allocation30_spill] sm:$0xff] %v3363_v31  ;;  %v3395_v46 = vcvt.s32.f32 %v638_v9  ;;  %v3414_v32 = vsel %vm120_vm0, %v393_v7, 2147483647 }
  0xc1   :  { %5617 = vst [vmem:[#allocation37_spill] sm:$0xff] %v3417_v58  ;;  %v180_v33 = vpop.xlane.xlu1 %179  ;;  %vm331_vm4 = vcmp.eq.f32.partialorder %v3094_v36, %v177_v0 }
  0xc2   :  { %5614 = vst [vmem:[#allocation34_spill] sm:$0xff] %v3395_v46  ;;  %vm332_vm5 = vcmp.eq.f32.partialorder %v3096_v37, %v180_v33  ;;  %v395_v25 = vsel %vm331_vm4, %v3255_v38, 32 }
  0xc3   :  { %v3436_v36 = vsel %vm120_vm0, %v395_v25, 2147483647 }
  0xc4   :  { %566 = vmin.xlane.f32.xlu0 %v3343_v6  ;;  %v3354_v21 = vpop.xlane.xlu0 %182 }
  0xc5   :  { %v186_v37 = vpop.xlane.xlu1 %185  ;;  %vm333_vm6 = vcmp.eq.f32.partialorder %v3102_v40, %v3354_v21 }
  0xc6   :  { %vm334_vm7 = vcmp.eq.f32.partialorder %v3104_v41, %v186_v37  ;;  %v397_v25 = vsel %vm333_vm6, %v3255_v38, 32 }
  0xc7   :  { %v3459_v40 = vsel %vm120_vm0, %v397_v25, 2147483647 }
  0xc8   :  { %581 = vmin.xlane.f32.xlu0 %v3351_v59  ;;  %v3366_v6 = vpop.xlane.xlu0 %188 }
  0xc9   :  { %v192_v41 = vpop.xlane.xlu1 %191  ;;  %vm335_vm8 = vcmp.eq.f32.partialorder %v3110_v44, %v3366_v6 }
  0xca   :  { %vm336_vm9 = vcmp.eq.f32.partialorder %v3112_v45, %v192_v41  ;;  %v399_v25 = vsel %vm335_vm8, %v3255_v38, 32 }
  0xcb   :  { %v3482_v44 = vsel %vm120_vm0, %v399_v25, 2147483647 }
  0xcc   :  { %596 = vmin.xlane.f32.xlu0 %v3363_v31  ;;  %v3375_v51 = vpop.xlane.xlu0 %194  ;;  %v3388_v31 = vcvt.s32.f32 %v623_v5  ;;  %v653_v5 = vshra.s32 %v3392_v28, 16 }
  0xcd   :  { %v198_v45 = vpop.xlane.xlu1 %197  ;;  %vm337_vm10 = vcmp.eq.f32.partialorder %v3118_v48, %v3375_v51 }
  0xce   :  { %5613 = vst [vmem:[#allocation33_spill] sm:$0xff] %v3388_v31  ;;  %vm338_vm11 = vcmp.eq.f32.partialorder %v3120_v49, %v198_v45  ;;  %v401_v25 = vsel %vm337_vm10, %v3255_v38, 32 }
  0xcf   :  { %v3503_v48 = vsel %vm120_vm0, %v401_v25, 2147483647 }
  0xd0   :  { %611 = vmin.xlane.f32.xlu0 %v3373_v24  ;;  %v3386_v20 = vpop.xlane.xlu0 %200  ;;  %v394_v24 = vsel %vm330_vm3, %v3255_v38, 32 }
  0xd1   :  { %v3423_v29 = vsel %vm120_vm0, %v394_v24, 2147483647  ;;  %v204_v49 = vpop.xlane.xlu1 %203  ;;  %vm339_vm12 = vcmp.eq.f32.partialorder %v3126_v52, %v3386_v20 }
  0xd2   :  { %5618 = vst [vmem:[#allocation38_spill] sm:$0xff] %v3423_v29  ;;  %v698_v7 = vshra.s32 %v3423_v29, 16  ;;  %vm340_vm13 = vcmp.eq.f32.partialorder %v3128_v53, %v204_v49  ;;  %v403_v25 = vsel %vm339_vm12, %v3255_v38, 32 }
  0xd3   :  { %v3526_v52 = vsel %vm120_vm0, %v403_v25, 2147483647 }
  0xd4   :  { %626 = vmin.xlane.f32.xlu0 %v3388_v31  ;;  %v3397_v16 = vpop.xlane.xlu0 %206  ;;  %v3410_v31 = vcvt.s32.f32 %v653_v5  ;;  %v683_v5 = vshra.s32 %v3414_v32, 16  ;;  %v3439_v0 = vcvt.s32.f32 %v698_v7  ;;  %v833_v49 = vshra.s32 %v3526_v52, 16 }
  0xd5   :  { %v210_v53 = vpop.xlane.xlu1 %209  ;;  %vm341_vm14 = vcmp.eq.f32.partialorder %v3134_v56, %v3397_v16 }
  0xd6   :  { %5616 = vst [vmem:[#allocation36_spill] sm:$0xff] %v3410_v31  ;;  %5620 = vst [vmem:[#allocation40_spill] sm:$0xff] %v3439_v0  ;;  %vm342_vm15 = vcmp.eq.f32.partialorder %v3136_v57, %v210_v53  ;;  %v405_v25 = vsel %vm341_vm14, %v3255_v38, 32 }
  0xd7   :  { %v3547_v56 = vsel %vm120_vm0, %v405_v25, 2147483647 }
  0xd8   :  { %641 = vmin.xlane.f32.xlu0 %v3395_v46  ;;  %v3408_v9 = vpop.xlane.xlu0 %212  ;;  %v396_v46 = vsel %vm332_vm5, %v3255_v38, 32 }
  0xd9   :  { %v3446_v33 = vsel %vm120_vm0, %v396_v46, 2147483647  ;;  %v216_v57 = vpop.xlane.xlu1 %215  ;;  %vm343_vm1 = vcmp.eq.f32.partialorder %v3142_v60, %v3408_v9 }
  0xda   :  { %5621 = vst [vmem:[#allocation41_spill] sm:$0xff] %v3446_v33  ;;  %v728_v7 = vshra.s32 %v3446_v33, 16  ;;  %vm344_vm2 = vcmp.eq.f32.partialorder %v3144_v61, %v216_v57  ;;  %v407_v25 = vsel %vm343_vm1, %v3255_v38, 32 }
  0xdb   :  { %v3568_v60 = vsel %vm120_vm0, %v407_v25, 2147483647 }
  0xdc   :  { %656 = vmin.xlane.f32.xlu0 %v3410_v31  ;;  %v3419_v17 = vpop.xlane.xlu0 %218  ;;  %v3432_v31 = vcvt.s32.f32 %v683_v5  ;;  %v713_v5 = vshra.s32 %v3436_v36, 16  ;;  %v3462_v21 = vcvt.s32.f32 %v728_v7 }
  0xdd   :  { %v222_v61 = vpop.xlane.xlu1 %221  ;;  %vm345_vm3 = vcmp.eq.f32.partialorder %v3150_v3, %v3419_v17 }
  0xde   :  { %5619 = vst [vmem:[#allocation39_spill] sm:$0xff] %v3432_v31  ;;  %v3455_v29 = vcvt.s32.f32 %v713_v5  ;;  %v743_v5 = vshra.s32 %v3459_v40, 16  ;;  %vm346_vm4 = vcmp.eq.f32.partialorder %v3152_v4, %v222_v61  ;;  %v409_v25 = vsel %vm345_vm3, %v3255_v38, 32 }
  0xdf   :  { %v3591_v3 = vsel %vm120_vm0, %v409_v25, 2147483647 }
  0xe0   :  { %671 = vmin.xlane.f32.xlu0 %v3417_v58  ;;  %v3430_v12 = vpop.xlane.xlu0 %224  ;;  %5622 = vst [vmem:[#allocation42_spill] sm:$0xff] %v3455_v29  ;;  %v398_v58 = vsel %vm334_vm7, %v3255_v38, 32  ;;  %v3478_v33 = vcvt.s32.f32 %v743_v5  ;;  %v773_v5 = vshra.s32 %v3482_v44, 16  ;;  %v923_v61 = vshra.s32 %v3591_v3, 16 }
  0xe1   :  { %v3469_v37 = vsel %vm120_vm0, %v398_v58, 2147483647  ;;  %v228_v4 = vpop.xlane.xlu1 %227  ;;  %vm347_vm5 = vcmp.eq.f32.partialorder %v3158_v10, %v3430_v12 }
  0xe2   :  { %5623 = vst [vmem:[#allocation43_spill] sm:$0xff] %v3469_v37  ;;  %v758_v7 = vshra.s32 %v3469_v37, 16  ;;  %5624 = vst [vmem:[#allocation44_spill] sm:$0xff] %v3478_v33  ;;  %v402_v37 = vsel %vm338_vm11, %v3255_v38, 32  ;;  %vm348_vm6 = vcmp.eq.f32.partialorder %v3160_v11, %v228_v4  ;;  %v411_v25 = vsel %vm347_vm5, %v3255_v38, 32 }
  0xe3   :  { %v3513_v45 = vsel %vm120_vm0, %v402_v37, 2147483647  ;;  %v3612_v10 = vsel %vm120_vm0, %v411_v25, 2147483647 }
  0xe4   :  { %686 = vmin.xlane.f32.xlu0 %v3432_v31  ;;  %v3441_v24 = vpop.xlane.xlu0 %230  ;;  %v3485_v6 = vcvt.s32.f32 %v758_v7  ;;  %5628 = vst [vmem:[#allocation48_spill] sm:$0xff] %v3513_v45 }
  0xe5   :  { %vm349_vm7 = vcmp.eq.f32.partialorder %v3166_v18, %v3441_v24 }
  0xe6   :  { %5625 = vst [vmem:[#allocation45_spill] sm:$0xff] %v3485_v6  ;;  %v413_v25 = vsel %vm349_vm7, %v3255_v38, 32 }
  0xe7   :  { %v3633_v18 = vsel %vm120_vm0, %v413_v25, 2147483647 }
  0xe8   :  { %701 = vmin.xlane.f32.xlu0 %v3439_v0  ;;  %v3453_v31 = vpop.xlane.xlu0 %236  ;;  %v400_v0 = vsel %vm336_vm9, %v3255_v38, 32 }
  0xe9   :  { %v3490_v58 = vsel %vm120_vm0, %v400_v0, 2147483647  ;;  %vm351_vm9 = vcmp.eq.f32.partialorder %v3174_v26, %v3453_v31  ;;  %v457_v26 = vand.u32 65535, %v3275_v30 }
  0xea   :  { %5626 = vst [vmem:[#allocation46_spill] sm:$0xff] %v3490_v58  ;;  %v788_v7 = vshra.s32 %v3490_v58, 16  ;;  %v818_v58 = vshra.s32 %v3513_v45, 16  ;;  %v406_v45 = vsel %vm342_vm15, %v3255_v38, 32  ;;  %v415_v25 = vsel %vm351_vm9, %v3255_v38, 32 }
  0xec   :  { %716 = vmin.xlane.f32.xlu0 %v3455_v29  ;;  %v3464_v46 = vpop.xlane.xlu0 %242  ;;  %v3508_v0 = vcvt.s32.f32 %v788_v7  ;;  %v3529_v20 = vcvt.s32.f32 %v818_v58 }
  0xed   :  { %vm353_vm12 = vcmp.eq.f32.partialorder %v3182_v34, %v3464_v46 }
  0xf0   :  { %731 = vmin.xlane.f32.xlu0 %v3462_v21  ;;  %v3476_v29 = vpop.xlane.xlu0 %248 }
  0xf1   :  { %vm355_vm1 = vcmp.eq.f32.partialorder %v3190_v42, %v3476_v29 }
  0xf4   :  { %746 = vmin.xlane.f32.xlu0 %v3478_v33  ;;  %v3492_v41 = vpop.xlane.xlu0 %254  ;;  %v3499_v33 = vcvt.s32.f32 %v773_v5  ;;  %v803_v5 = vshra.s32 %v3503_v48, 16 }
  0xf5   :  { %vm357_vm5 = vcmp.eq.f32.partialorder %v3198_v50, %v3492_v41 }
  0xf6   :  { %5627 = vst [vmem:[#allocation47_spill] sm:$0xff] %v3499_v33  ;;  %v3522_v7 = vcvt.s32.f32 %v803_v5 }
  0xf8   :  { %761 = vmin.xlane.f32.xlu0 %v3485_v6  ;;  %v3505_v51 = vpop.xlane.xlu0 %260  ;;  %5629 = vst [vmem:[#allocation49_spill] sm:$0xff] %v3522_v7  ;;  %v404_v6 = vsel %vm340_vm13, %v3255_v38, 32 }
  0xf9   :  { %v3534_v37 = vsel %vm120_vm0, %v404_v6, 2147483647  ;;  %v3555_v6 = vsel %vm120_vm0, %v406_v45, 2147483647 }
  0xfa   :  { %5630 = vst [vmem:[#allocation50_spill] sm:$0xff] %v3534_v37  ;;  %v848_v58 = vshra.s32 %v3534_v37, 16  ;;  %5633 = vst [vmem:[#allocation53_spill] sm:$0xff] %v3555_v6  ;;  %v408_v37 = vsel %vm344_vm2, %v3255_v38, 32 }
  0xfb   :  { %v3578_v57 = vsel %vm120_vm0, %v408_v37, 2147483647 }
  0xfc   :  { %776 = vmin.xlane.f32.xlu0 %v3499_v33  ;;  %v3520_v33 = vpop.xlane.xlu0 %266  ;;  %v3550_v16 = vcvt.s32.f32 %v848_v58  ;;  %v878_v58 = vshra.s32 %v3555_v6, 16  ;;  %5635 = vst [vmem:[#allocation55_spill] sm:$0xff] %v3578_v57  ;;  %v908_v6 = vshra.s32 %v3578_v57, 16  ;;  %v412_v57 = vsel %vm348_vm6, %v3255_v38, 32 }
  0xfd   :  { %v3620_v11 = vsel %vm120_vm0, %v412_v57, 2147483647 }
  0xfe   :  { %5632 = vst [vmem:[#allocation52_spill] sm:$0xff] %v3550_v16  ;;  %v3573_v45 = vcvt.s32.f32 %v878_v58  ;;  %v3594_v17 = vcvt.s32.f32 %v908_v6  ;;  %5640 = vst [vmem:[#allocation60_spill] sm:$0xff] %v3620_v11 }
 0x100   :  { %791 = vmin.xlane.f32.xlu0 %v3508_v0  ;;  %v3538_v5 = vpop.xlane.xlu0 %272 }
 0x104   :  { %806 = vmin.xlane.f32.xlu0 %v3522_v7  ;;  %v3543_v7 = vcvt.s32.f32 %v833_v49  ;;  %v3557_v53 = vpop.xlane.xlu0 %278  ;;  %v863_v49 = vshra.s32 %v3547_v56, 16 }
 0x106   :  { %5631 = vst [vmem:[#allocation51_spill] sm:$0xff] %v3543_v7 }
 0x108   :  { %821 = vmin.xlane.f32.xlu0 %v3529_v20  ;;  %v3570_v9 = vpop.xlane.xlu0 %284 }
 0x10c   :  { %836 = vmin.xlane.f32.xlu0 %v3543_v7  ;;  %v3564_v7 = vcvt.s32.f32 %v863_v49  ;;  %v893_v49 = vshra.s32 %v3568_v60, 16 }
 0x10e   :  { %5634 = vst [vmem:[#allocation54_spill] sm:$0xff] %v3564_v7  ;;  %v3587_v58 = vcvt.s32.f32 %v893_v49 }
 0x110   :  { %851 = vmin.xlane.f32.xlu0 %v3550_v16  ;;  %5636 = vst [vmem:[#allocation56_spill] sm:$0xff] %v3587_v58  ;;  %v410_v16 = vsel %vm346_vm4, %v3255_v38, 32 }
 0x111   :  { %v3599_v37 = vsel %vm120_vm0, %v410_v16, 2147483647  ;;  %v234_v16 = vpop.xlane.xlu1 %233 }
 0x112   :  { %5637 = vst [vmem:[#allocation57_spill] sm:$0xff] %v3599_v37  ;;  %v938_v6 = vshra.s32 %v3599_v37, 16  ;;  %vm350_vm8 = vcmp.eq.f32.partialorder %v3168_v19, %v234_v16 }
 0x113   :  { %v414_v37 = vsel %vm350_vm8, %v3255_v38, 32 }
 0x114   :  { %866 = vmin.xlane.f32.xlu0 %v3564_v7  ;;  %v3585_v7 = vpop.xlane.xlu0 %290  ;;  %v3615_v12 = vcvt.s32.f32 %v938_v6  ;;  %v968_v6 = vshra.s32 %v3620_v11, 16  ;;  %v3643_v16 = vsel %vm120_vm0, %v414_v37, 2147483647  ;;  %v983_v11 = vshra.s32 %v3633_v18, 16 }
 0x115   :  { %v240_v19 = vpop.xlane.xlu1 %239  ;;  %5642 = vst [vmem:[#allocation62_spill] sm:$0xff] %v3643_v16 }
 0x116   :  { %5639 = vst [vmem:[#allocation59_spill] sm:$0xff] %v3615_v12  ;;  %v3638_v57 = vcvt.s32.f32 %v968_v6  ;;  %vm352_vm10 = vcmp.eq.f32.partialorder %v3176_v27, %v240_v19  ;;  %v998_v6 = vshra.s32 %v3643_v16, 16  ;;  %v3654_v31 = vcvt.s32.f32 %v983_v11 }
 0x117   :  { %v3660_v27 = vsel %vm120_vm0, %v415_v25, 2147483647 }
 0x118   :  { %881 = vmin.xlane.f32.xlu0 %v3573_v45  ;;  %v3602_v49 = vpop.xlane.xlu0 %296  ;;  %v3663_v19 = vcvt.s32.f32 %v998_v6  ;;  %v417_v6 = vsel %vm353_vm12, %v3255_v38, 32 }
 0x119   :  { %v246_v16 = vpop.xlane.xlu1 %245 }
 0x11a   :  { %vm354_vm14 = vcmp.eq.f32.partialorder %v3184_v35, %v246_v16  ;;  %v3689_v35 = vsel %vm120_vm0, %v417_v6, 2147483647 }
 0x11c   :  { %896 = vmin.xlane.f32.xlu0 %v3587_v58  ;;  %v3608_v58 = vcvt.s32.f32 %v923_v61  ;;  %v3622_v4 = vpop.xlane.xlu0 %302  ;;  %v953_v61 = vshra.s32 %v3612_v10, 16 }
 0x11e   :  { %5638 = vst [vmem:[#allocation58_spill] sm:$0xff] %v3608_v58 }
 0x120   :  { %911 = vmin.xlane.f32.xlu0 %v3594_v17  ;;  %v3635_v24 = vpop.xlane.xlu0 %308 }
 0x124   :  { %926 = vmin.xlane.f32.xlu0 %v3608_v58  ;;  %v3629_v58 = vcvt.s32.f32 %v953_v61  ;;  %v442_v61 = vand.u32 65535, %v3262_v55  ;;  %v416_v55 = vsel %vm352_vm10, %v3255_v38, 32 }
 0x125   :  { %v3670_v11 = vsel %vm120_vm0, %v416_v55, 2147483647 }
 0x126   :  { %5641 = vst [vmem:[#allocation61_spill] sm:$0xff] %v3629_v58  ;;  %v1028_v34 = vshra.s32 %v3670_v11, 16 }
 0x128   :  { %941 = vmin.xlane.f32.xlu0 %v3615_v12  ;;  %v444_v12 = vcvt.s32.f32 %v442_v61  ;;  %v472_v61 = vand.u32 65535, %v3268_v14  ;;  %v487_v14 = vand.u32 65535, %v3282_v23 }
 0x12c   :  { %956 = vmin.xlane.f32.xlu0 %v3629_v58 }
 0x130   :  { %971 = vmin.xlane.f32.xlu0 %v3638_v57 }
 0x131   :  { %v3651_v58 = vpop.xlane.xlu0 %446 }
 0x132   :  { %vm448_vm11 = vcmp.eq.f32.partialorder %v3271_v2, %v3651_v58  ;;  %v459_v2 = vcvt.s32.f32 %v457_v26  ;;  %v474_v26 = vcvt.s32.f32 %v472_v61 }
 0x133   :  { %v449_v37 = vsel %vm448_vm11, %v444_v12, inf  ;;  %v1013_v12 = vshra.s32 %v3660_v27, 16 }
 0x134   :  { %986 = vmin.xlane.f32.xlu0 %v3654_v31  ;;  %450 = vmin.xlane.f32.xlu1 %v449_v37  ;;  %v3692_v37 = vcvt.s32.f32 %v1028_v34  ;;  %v419_v34 = vsel %vm355_vm1, %v3255_v38, 32 }
 0x135   :  { %v3667_v30 = vpop.xlane.xlu0 %461  ;;  %v3683_v55 = vcvt.s32.f32 %v1013_v12  ;;  %v502_v12 = vand.u32 65535, %v3293_v39  ;;  %v517_v39 = vand.u32 65535, %v3302_v1 }
 0x136   :  { %vm463_vm13 = vcmp.eq.f32.partialorder %v3284_v54, %v3667_v30  ;;  %v418_v54 = vsel %vm354_vm14, %v3255_v38, 32 }
 0x137   :  { %v464_v25 = vsel %vm463_vm13, %v459_v2, inf  ;;  %v252_v2 = vpop.xlane.xlu1 %251  ;;  %v3699_v61 = vsel %vm120_vm0, %v418_v54, 2147483647 }
 0x138   :  { %1001 = vmin.xlane.f32.xlu0 %v3663_v19  ;;  %465 = vmin.xlane.f32.xlu1 %v464_v25  ;;  %v1043_v25 = vshra.s32 %v3689_v35, 16  ;;  %vm356_vm3 = vcmp.eq.f32.partialorder %v3192_v43, %v252_v2  ;;  %v1058_v42 = vshra.s32 %v3699_v61, 16  ;;  %v3718_v43 = vsel %vm120_vm0, %v419_v34, 2147483647  ;;  %v5645_v34 = vld [vmem:[#allocation11_spill] sm:$0xff] }
 0x139   :  { %v3680_v46 = vpop.xlane.xlu0 %476 }
 0x13a   :  { %vm478_vm15 = vcmp.eq.f32.partialorder %v3289_v62, %v3680_v46  ;;  %v489_v62 = vcvt.s32.f32 %v487_v14  ;;  %v3712_v14 = vcvt.s32.f32 %v1043_v25  ;;  %v1073_v25 = vshra.s32 %v3718_v43, 16 }
 0x13b   :  { %v479_v16 = vsel %vm478_vm15, %v474_v26, inf  ;;  %v504_v26 = vcvt.s32.f32 %v502_v12  ;;  %v258_v2 = vpop.xlane.xlu1 %257  ;;  %v532_v12 = vand.u32 65535, %v3311_v63 }
 0x13c   :  { %1016 = vmin.xlane.f32.xlu0 %v3683_v55  ;;  %480 = vmin.xlane.f32.xlu1 %v479_v16  ;;  %v3721_v16 = vcvt.s32.f32 %v1058_v42  ;;  %vm358_vm7 = vcmp.eq.f32.partialorder %v5645_v34, %v258_v2  ;;  %v421_v42 = vsel %vm357_vm5, %v3255_v38, 32 }
 0x13d   :  { %v3696_v23 = vpop.xlane.xlu0 %491  ;;  %v3747_v2 = vsel %vm120_vm0, %v421_v42, 2147483647 }
 0x13e   :  { %vm493_vm2 = vcmp.eq.f32.partialorder %v3298_v15, %v3696_v23  ;;  %v420_v15 = vsel %vm356_vm3, %v3255_v38, 32  ;;  %5643 = vst [vmem:[#allocation63_spill] sm:$0xff] %v3721_v16  ;;  %v1103_v42 = vshra.s32 %v3747_v2, 16 }
 0x13f   :  { %v494_v6 = vsel %vm493_vm2, %v489_v62, inf  ;;  %v3728_v62 = vsel %vm120_vm0, %v420_v15, 2147483647  ;;  %v3741_v15 = vcvt.s32.f32 %v1073_v25  ;;  %v264_v34 = vpop.xlane.xlu1 %263 }
 0x140   :  { %1031 = vmin.xlane.f32.xlu0 %v3692_v37  ;;  %495 = vmin.xlane.f32.xlu1 %v494_v6  ;;  %5644 = vst [vmem:[#allocation64_spill] sm:$0xff] %v3728_v62  ;;  %v1088_v50 = vshra.s32 %v3728_v62, 16  ;;  %v5653_v62 = vld [vmem:[#allocation25_spill] sm:$0xff] }
 0x141   :  { %v3709_v29 = vpop.xlane.xlu0 %506  ;;  %5647 = vst [vmem:[#allocation11_spill] sm:$0xff] %v3741_v15 }
 0x142   :  { %vm508_vm4 = vcmp.eq.f32.partialorder %v3307_v47, %v3709_v29  ;;  %v519_v47 = vcvt.s32.f32 %v517_v39  ;;  %v5646_v39 = vld [vmem:[#allocation23_spill] sm:$0xff] }
 0x143   :  { %v509_v54 = vsel %vm508_vm4, %v504_v26, inf  ;;  %v534_v26 = vcvt.s32.f32 %v532_v12  ;;  %v547_v63 = vand.u32 65535, %v5646_v39  ;;  %5649 = vst [vmem:[#allocation23_spill] sm:$0xff] %v3747_v2  ;;  %v5651_v12 = vld [vmem:[#allocation12_spill] sm:$0xff] }
 0x144   :  { %1046 = vmin.xlane.f32.xlu0 %v3712_v14  ;;  %510 = vmin.xlane.f32.xlu1 %v509_v54  ;;  %v422_v54 = vsel %vm358_vm7, %v3255_v38, 32  ;;  %vm359_vm9 = vcmp.eq.f32.partialorder %v5651_v12, %v3505_v51  ;;  %v5655_v12 = vld [vmem:[#allocation26_spill] sm:$0xff] }
 0x145   :  { %v3725_v1 = vpop.xlane.xlu0 %521  ;;  %v3757_v39 = vsel %vm120_vm0, %v422_v54, 2147483647 }
 0x146   :  { %vm523_vm6 = vcmp.eq.f32.partialorder %v3316_v8, %v3725_v1  ;;  %v5648_v8 = vld [vmem:[#allocation24_spill] sm:$0xff]  ;;  %5652 = vst [vmem:[#allocation12_spill] sm:$0xff] %v3757_v39  ;;  %v1118_v51 = vshra.s32 %v3757_v39, 16  ;;  %v270_v39 = vpop.xlane.xlu1 %269 }
 0x147   :  { %v524_v6 = vsel %vm523_vm6, %v519_v47, inf }
 0x148   :  { %1061 = vmin.xlane.f32.xlu0 %v3721_v16  ;;  %525 = vmin.xlane.f32.xlu1 %v524_v6  ;;  %v3750_v6 = vcvt.s32.f32 %v1088_v50  ;;  %v562_v16 = vand.u32 65535, %v5653_v62  ;;  %v5654_v50 = vld [vmem:[#allocation13_spill] sm:$0xff]  ;;  %v577_v62 = vand.u32 65535, %v5655_v12 }
 0x149   :  { %v3738_v41 = vpop.xlane.xlu0 %536  ;;  %vm360_vm11 = vcmp.eq.f32.partialorder %v5654_v50, %v264_v34 }
 0x14a   :  { %vm538_vm8 = vcmp.eq.f32.partialorder %v5648_v8, %v3738_v41  ;;  %5650 = vst [vmem:[#allocation24_spill] sm:$0xff] %v3750_v6  ;;  %v549_v8 = vcvt.s32.f32 %v547_v63  ;;  %v564_v63 = vcvt.s32.f32 %v562_v16  ;;  %v5660_v16 = vld [vmem:[#allocation14_spill] sm:$0xff] }
 0x14b   :  { %v539_v47 = vsel %vm538_vm8, %v534_v26, inf  ;;  %vm361_vm13 = vcmp.eq.f32.partialorder %v5660_v16, %v3520_v33  ;;  %v5664_v16 = vld [vmem:[#allocation29_spill] sm:$0xff] }
 0x14c   :  { %1076 = vmin.xlane.f32.xlu0 %v3741_v15  ;;  %540 = vmin.xlane.f32.xlu1 %v539_v47  ;;  %v423_v47 = vsel %vm359_vm9, %v3255_v38, 32  ;;  %v3770_v15 = vcvt.s32.f32 %v1103_v42 }
 0x14d   :  { %v3754_v25 = vpop.xlane.xlu0 %551  ;;  %v3776_v34 = vsel %vm120_vm0, %v423_v47, 2147483647 }
 0x14e   :  { %vm553_vm10 = vcmp.eq.f32.partialorder %v3334_v22, %v3754_v25  ;;  %5656 = vst [vmem:[#allocation25_spill] sm:$0xff] %v3770_v15  ;;  %v5657_v22 = vld [vmem:[#allocation27_spill] sm:$0xff]  ;;  %5658 = vst [vmem:[#allocation13_spill] sm:$0xff] %v3776_v34  ;;  %v1133_v47 = vshra.s32 %v3776_v34, 16 }
 0x14f   :  { %v554_v26 = vsel %vm553_vm10, %v549_v8, inf  ;;  %v424_v8 = vsel %vm360_vm11, %v3255_v38, 32 }
 0x150   :  { %1091 = vmin.xlane.f32.xlu0 %v3750_v6  ;;  %555 = vmin.xlane.f32.xlu1 %v554_v26  ;;  %v3779_v26 = vcvt.s32.f32 %v1118_v51  ;;  %v3786_v12 = vsel %vm120_vm0, %v424_v8, 2147483647  ;;  %v5662_v6 = vld [vmem:[#allocation28_spill] sm:$0xff]  ;;  %v5663_v51 = vld [vmem:[#allocation15_spill] sm:$0xff] }
 0x151   :  { %v3767_v54 = vpop.xlane.xlu0 %566  ;;  %5661 = vst [vmem:[#allocation27_spill] sm:$0xff] %v3786_v12  ;;  %v592_v2 = vand.u32 65535, %v5662_v6  ;;  %vm362_vm15 = vcmp.eq.f32.partialorder %v5663_v51, %v270_v39  ;;  %v1148_v33 = vshra.s32 %v3786_v12, 16  ;;  %v607_v6 = vand.u32 65535, %v5664_v16  ;;  %v276_v12 = vpop.xlane.xlu1 %275 }
 0x152   :  { %vm568_vm12 = vcmp.eq.f32.partialorder %v5657_v22, %v3767_v54  ;;  %5659 = vst [vmem:[#allocation26_spill] sm:$0xff] %v3779_v26  ;;  %v579_v22 = vcvt.s32.f32 %v577_v62 }
 0x153   :  { %v569_v50 = vsel %vm568_vm12, %v564_v63, inf  ;;  %v594_v62 = vcvt.s32.f32 %v592_v2  ;;  %v5669_v2 = vld [vmem:[#allocation16_spill] sm:$0xff] }
 0x154   :  { %1106 = vmin.xlane.f32.xlu0 %v3770_v15  ;;  %570 = vmin.xlane.f32.xlu1 %v569_v50  ;;  %v425_v50 = vsel %vm361_vm13, %v3255_v38, 32  ;;  %v3799_v15 = vcvt.s32.f32 %v1133_v47  ;;  %vm363_vm2 = vcmp.eq.f32.partialorder %v5669_v2, %v3538_v5  ;;  %v5673_v2 = vld [vmem:[#allocation32_spill] sm:$0xff] }
 0x155   :  { %v3783_v42 = vpop.xlane.xlu0 %581  ;;  %v3805_v39 = vsel %vm120_vm0, %v425_v50, 2147483647  ;;  %v5671_v50 = vld [vmem:[#allocation31_spill] sm:$0xff] }
 0x156   :  { %vm583_vm14 = vcmp.eq.f32.partialorder %v3351_v59, %v3783_v42  ;;  %5665 = vst [vmem:[#allocation14_spill] sm:$0xff] %v3799_v15  ;;  %v5666_v59 = vld [vmem:[#allocation30_spill] sm:$0xff]  ;;  %5667 = vst [vmem:[#allocation28_spill] sm:$0xff] %v3805_v39 }
 0x157   :  { %v584_v63 = vsel %vm583_vm14, %v579_v22, inf  ;;  %v426_v22 = vsel %vm362_vm15, %v3255_v38, 32 }
 0x158   :  { %1121 = vmin.xlane.f32.xlu0 %v3779_v26  ;;  %585 = vmin.xlane.f32.xlu1 %v584_v63  ;;  %v3808_v63 = vcvt.s32.f32 %v1148_v33  ;;  %v3815_v16 = vsel %vm120_vm0, %v426_v22, 2147483647  ;;  %v622_v26 = vand.u32 65535, %v3370_v13  ;;  %v5672_v33 = vld [vmem:[#allocation17_spill] sm:$0xff]  ;;  %v637_v13 = vand.u32 65535, %v5673_v2 }
 0x159   :  { %v3796_v8 = vpop.xlane.xlu0 %596  ;;  %5670 = vst [vmem:[#allocation29_spill] sm:$0xff] %v3815_v16  ;;  %vm364_vm4 = vcmp.eq.f32.partialorder %v5672_v33, %v276_v12  ;;  %v1178_v5 = vshra.s32 %v3815_v16, 16  ;;  %v282_v16 = vpop.xlane.xlu1 %281 }
 0x15a   :  { %vm598_vm1 = vcmp.eq.f32.partialorder %v5666_v59, %v3796_v8  ;;  %5668 = vst [vmem:[#allocation15_spill] sm:$0xff] %v3808_v63  ;;  %v609_v59 = vcvt.s32.f32 %v607_v6  ;;  %v624_v6 = vcvt.s32.f32 %v622_v26  ;;  %v5678_v26 = vld [vmem:[#allocation18_spill] sm:$0xff] }
 0x15b   :  { %v599_v51 = vsel %vm598_vm1, %v594_v62, inf  ;;  %v1163_v62 = vshra.s32 %v3805_v39, 16  ;;  %vm365_vm6 = vcmp.eq.f32.partialorder %v5678_v26, %v3557_v53  ;;  %v5682_v26 = vld [vmem:[#allocation35_spill] sm:$0xff] }
 0x15c   :  { %1136 = vmin.xlane.f32.xlu0 %v3799_v15  ;;  %600 = vmin.xlane.f32.xlu1 %v599_v51  ;;  %v427_v15 = vsel %vm363_vm2, %v3255_v38, 32 }
 0x15d   :  { %v3812_v47 = vpop.xlane.xlu0 %611  ;;  %v3828_v34 = vcvt.s32.f32 %v1163_v62  ;;  %v3834_v12 = vsel %vm120_vm0, %v427_v15, 2147483647  ;;  %v5680_v15 = vld [vmem:[#allocation34_spill] sm:$0xff] }
 0x15e   :  { %vm613_vm3 = vcmp.eq.f32.partialorder %v5671_v50, %v3812_v47  ;;  %v5675_v50 = vld [vmem:[#allocation33_spill] sm:$0xff]  ;;  %5676 = vst [vmem:[#allocation16_spill] sm:$0xff] %v3834_v12 }
 0x15f   :  { %v614_v51 = vsel %vm613_vm3, %v609_v59, inf  ;;  %5674 = vst [vmem:[#allocation30_spill] sm:$0xff] %v3828_v34  ;;  %v428_v59 = vsel %vm364_vm4, %v3255_v38, 32  ;;  %vm52_vm3 = vcmask 3072  }
 0x160   :  { %1151 = vmin.xlane.f32.xlu0 %v3808_v63  ;;  %615 = vmin.xlane.f32.xlu1 %v614_v51  ;;  %v3837_v51 = vcvt.s32.f32 %v1178_v5  ;;  %v3844_v2 = vsel %vm120_vm0, %v428_v59, 2147483647  ;;  %v652_v63 = vand.u32 65535, %v3392_v28  ;;  %v5681_v5 = vld [vmem:[#allocation19_spill] sm:$0xff]  ;;  %v667_v28 = vand.u32 65535, %v5682_v26 }
 0x161   :  { %v3825_v22 = vpop.xlane.xlu0 %626  ;;  %5679 = vst [vmem:[#allocation17_spill] sm:$0xff] %v3844_v2  ;;  %vm366_vm8 = vcmp.eq.f32.partialorder %v5681_v5, %v282_v16  ;;  %v1208_v53 = vshra.s32 %v3844_v2, 16  ;;  %v288_v2 = vpop.xlane.xlu1 %287 }
 0x162   :  { %vm628_vm5 = vcmp.eq.f32.partialorder %v5675_v50, %v3825_v22  ;;  %5677 = vst [vmem:[#allocation31_spill] sm:$0xff] %v3837_v51  ;;  %v639_v50 = vcvt.s32.f32 %v637_v13  ;;  %v654_v13 = vcvt.s32.f32 %v652_v63  ;;  %v5686_v63 = vld [vmem:[#allocation20_spill] sm:$0xff] }
 0x163   :  { %v629_v33 = vsel %vm628_vm5, %v624_v6, inf  ;;  %v1193_v6 = vshra.s32 %v3834_v12, 16  ;;  %vm367_vm10 = vcmp.eq.f32.partialorder %v5686_v63, %v3570_v9  ;;  %v5691_v63 = vld [vmem:[#allocation38_spill] sm:$0xff] }
 0x164   :  { %1166 = vmin.xlane.f32.xlu0 %v3828_v34  ;;  %630 = vmin.xlane.f32.xlu1 %v629_v33  ;;  %v429_v34 = vsel %vm365_vm6, %v3255_v38, 32 }
 0x165   :  { %v3841_v62 = vpop.xlane.xlu0 %641  ;;  %v3857_v39 = vcvt.s32.f32 %v1193_v6  ;;  %v3863_v16 = vsel %vm120_vm0, %v429_v34, 2147483647  ;;  %v5688_v34 = vld [vmem:[#allocation37_spill] sm:$0xff] }
 0x166   :  { %vm643_vm7 = vcmp.eq.f32.partialorder %v5680_v15, %v3841_v62  ;;  %v5684_v15 = vld [vmem:[#allocation36_spill] sm:$0xff] }
 0x167   :  { %v644_v33 = vsel %vm643_vm7, %v639_v50, inf  ;;  %5683 = vst [vmem:[#allocation32_spill] sm:$0xff] %v3857_v39  ;;  %v430_v50 = vsel %vm366_vm8, %v3255_v38, 32 }
 0x168   :  { %1181 = vmin.xlane.f32.xlu0 %v3837_v51  ;;  %645 = vmin.xlane.f32.xlu1 %v644_v33  ;;  %v3866_v33 = vcvt.s32.f32 %v1208_v53  ;;  %v3873_v26 = vsel %vm120_vm0, %v430_v50, 2147483647  ;;  %v682_v51 = vand.u32 65535, %v3414_v32  ;;  %v5689_v53 = vld [vmem:[#allocation21_spill] sm:$0xff]  ;;  %v697_v32 = vand.u32 65535, %v5691_v63 }
 0x169   :  { %v3854_v59 = vpop.xlane.xlu0 %656  ;;  %5687 = vst [vmem:[#allocation18_spill] sm:$0xff] %v3873_v26  ;;  %vm368_vm12 = vcmp.eq.f32.partialorder %v5689_v53, %v288_v2  ;;  %v1238_v9 = vshra.s32 %v3873_v26, 16  ;;  %v294_v26 = vpop.xlane.xlu1 %293 }
 0x16a   :  { %vm658_vm9 = vcmp.eq.f32.partialorder %v5684_v15, %v3854_v59  ;;  %5685 = vst [vmem:[#allocation33_spill] sm:$0xff] %v3866_v33  ;;  %v669_v15 = vcvt.s32.f32 %v667_v28  ;;  %v684_v28 = vcvt.s32.f32 %v682_v51  ;;  %v2964_v51 = vld [vmem:[#allocation3 + $0x1c0] sm:$0xff] }
 0x16b   :  { %v659_v5 = vsel %vm658_vm9, %v654_v13, inf  ;;  %v1223_v13 = vshra.s32 %v3863_v16, 16  ;;  %vm369_vm14 = vcmp.eq.f32.partialorder %v2964_v51, %v3585_v7  ;;  %v5698_v51 = vld [vmem:[#allocation41_spill] sm:$0xff] }
 0x16c   :  { %1196 = vmin.xlane.f32.xlu0 %v3857_v39  ;;  %660 = vmin.xlane.f32.xlu1 %v659_v5  ;;  %v431_v39 = vsel %vm367_vm10, %v3255_v38, 32 }
 0x16d   :  { %v3870_v6 = vpop.xlane.xlu0 %671  ;;  %v3886_v12 = vcvt.s32.f32 %v1223_v13  ;;  %v3892_v2 = vsel %vm120_vm0, %v431_v39, 2147483647  ;;  %v5696_v39 = vld [vmem:[#allocation40_spill] sm:$0xff] }
 0x16e   :  { %vm673_vm11 = vcmp.eq.f32.partialorder %v5688_v34, %v3870_v6  ;;  %v5693_v34 = vld [vmem:[#allocation39_spill] sm:$0xff] }
 0x16f   :  { %v674_v5 = vsel %vm673_vm11, %v669_v15, inf  ;;  %5692 = vst [vmem:[#allocation19_spill] sm:$0xff] %v3886_v12  ;;  %v432_v15 = vsel %vm368_vm12, %v3255_v38, 32 }
 0x170   :  { %1211 = vmin.xlane.f32.xlu0 %v3866_v33  ;;  %675 = vmin.xlane.f32.xlu1 %v674_v5  ;;  %v3895_v5 = vcvt.s32.f32 %v1238_v9  ;;  %v3901_v63 = vsel %vm120_vm0, %v432_v15, 2147483647  ;;  %v2965_v9 = vld [vmem:[#allocation3 + $0x1c8] sm:$0xff] }
 0x171   :  { %v3883_v50 = vpop.xlane.xlu0 %686  ;;  %5695 = vst [vmem:[#allocation36_spill] sm:$0xff] %v3901_v63  ;;  %vm370_vm1 = vcmp.eq.f32.partialorder %v2965_v9, %v294_v26  ;;  %v1268_v7 = vshra.s32 %v3901_v63, 16 }
 0x172   :  { %5690 = vst [vmem:[#allocation34_spill] sm:$0xff] %v3883_v50  ;;  %vm688_vm13 = vcmp.eq.f32.partialorder %v5693_v34, %v3883_v50  ;;  %v699_v34 = vcvt.s32.f32 %v697_v32  ;;  %v712_v50 = vand.u32 65535, %v3436_v36  ;;  %v727_v36 = vand.u32 65535, %v5698_v51 }
 0x173   :  { %v689_v53 = vsel %vm688_vm13, %v684_v28, inf  ;;  %v1253_v28 = vshra.s32 %v3892_v2, 16 }
 0x174   :  { %1226 = vmin.xlane.f32.xlu0 %v3886_v12  ;;  %690 = vmin.xlane.f32.xlu1 %v689_v53  ;;  %v433_v12 = vsel %vm369_vm14, %v3255_v38, 32  ;;  %v714_v32 = vcvt.s32.f32 %v712_v50  ;;  %v2966_v50 = vld [vmem:[#allocation3 + $0x1d0] sm:$0xff] }
 0x175   :  { %v3898_v13 = vpop.xlane.xlu0 %701  ;;  %v3913_v33 = vcvt.s32.f32 %v1253_v28  ;;  %v3919_v26 = vsel %vm120_vm0, %v433_v12, 2147483647  ;;  %vm371_vm4 = vcmp.eq.f32.partialorder %v2966_v50, %v3602_v49  ;;  %v742_v12 = vand.u32 65535, %v3459_v40  ;;  %v5703_v50 = vld [vmem:[#allocation43_spill] sm:$0xff] }
 0x176   :  { %5694 = vst [vmem:[#allocation35_spill] sm:$0xff] %v3898_v13  ;;  %vm703_vm15 = vcmp.eq.f32.partialorder %v5696_v39, %v3898_v13  ;;  %v5699_v39 = vld [vmem:[#allocation42_spill] sm:$0xff]  ;;  %v300_v13 = vpop.xlane.xlu1 %299  ;;  %v435_v49 = vsel %vm371_vm4, %v3255_v38, 32 }
 0x177   :  { %v704_v53 = vsel %vm703_vm15, %v699_v34, inf  ;;  %v434_v34 = vsel %vm370_vm1, %v3255_v38, 32  ;;  %v744_v40 = vcvt.s32.f32 %v742_v12  ;;  %v2968_v12 = vld [vmem:[#allocation3 + $0x1e0] sm:$0xff] }
 0x178   :  { %1241 = vmin.xlane.f32.xlu0 %v3895_v5  ;;  %705 = vmin.xlane.f32.xlu1 %v704_v53  ;;  %v3922_v53 = vcvt.s32.f32 %v1268_v7  ;;  %v3928_v51 = vsel %vm120_vm0, %v434_v34, 2147483647  ;;  %v1283_v7 = vshra.s32 %v3919_v26, 16  ;;  %vm373_vm8 = vcmp.eq.f32.partialorder %v2968_v12, %v3622_v4  ;;  %v5709_v12 = vld [vmem:[#allocation46_spill] sm:$0xff] }
 0x179   :  { %v3910_v15 = vpop.xlane.xlu0 %716  ;;  %5701 = vst [vmem:[#allocation21_spill] sm:$0xff] %v3928_v51  ;;  %v1298_v34 = vshra.s32 %v3928_v51, 16 }
 0x17a   :  { %5697 = vst [vmem:[#allocation20_spill] sm:$0xff] %v3910_v15  ;;  %vm718_vm2 = vcmp.eq.f32.partialorder %v5699_v39, %v3910_v15  ;;  %v729_v39 = vcvt.s32.f32 %v727_v36  ;;  %v3005_v15 = vmov 4294967295   ;;  %v3940_v63 = vcvt.s32.f32 %v1283_v7 }
 0x17b   :  { %v719_v9 = vsel %vm718_vm2, %v714_v32, inf  ;;  %53 = vst.msk [vmem:[#allocation2] sm:$0xf] %vm52_vm3, %v3005_v15  ;;  %v757_v15 = vand.u32 65535, %v5703_v50 }
 0x17c   :  { %1256 = vmin.xlane.f32.xlu0 %v3913_v33  ;;  %720 = vmin.xlane.f32.xlu1 %v719_v9  ;;  %v2967_v9 = vld [vmem:[#allocation3 + $0x1d8] sm:$0xff]  ;;  %5704 = vst [vmem:[#allocation39_spill] sm:$0xff] %v3940_v63 }
 0x17d   :  { %v3925_v28 = vpop.xlane.xlu0 %731  ;;  %vm372_vm6 = vcmp.eq.f32.partialorder %v2967_v9, %v300_v13  ;;  %v3946_v13 = vsel %vm120_vm0, %v435_v49, 2147483647  ;;  %v5707_v49 = vld [vmem:[#allocation45_spill] sm:$0xff] }
 0x17e   :  { %5700 = vst [vmem:[#allocation37_spill] sm:$0xff] %v3925_v28  ;;  %vm733_vm5 = vcmp.eq.f32.partialorder %v3462_v21, %v3925_v28  ;;  %v5705_v21 = vld [vmem:[#allocation44_spill] sm:$0xff]  ;;  %v306_v28 = vpop.xlane.xlu1 %305 }
 0x17f   :  { %v734_v32 = vsel %vm733_vm5, %v729_v39, inf  ;;  %v436_v39 = vsel %vm372_vm6, %v3255_v38, 32 }
 0x180   :  { %1271 = vmin.xlane.f32.xlu0 %v3922_v53  ;;  %735 = vmin.xlane.f32.xlu1 %v734_v32  ;;  %v3949_v32 = vcvt.s32.f32 %v1298_v34  ;;  %v3955_v50 = vsel %vm120_vm0, %v436_v39, 2147483647  ;;  %v2969_v34 = vld [vmem:[#allocation3 + $0x1e8] sm:$0xff] }
 0x181   :  { %v3937_v36 = vpop.xlane.xlu0 %746  ;;  %vm374_vm10 = vcmp.eq.f32.partialorder %v2969_v34, %v306_v28  ;;  %v1328_v4 = vshra.s32 %v3955_v50, 16 }
 0x182   :  { %5702 = vst [vmem:[#allocation38_spill] sm:$0xff] %v3937_v36  ;;  %vm748_vm7 = vcmp.eq.f32.partialorder %v5705_v21, %v3937_v36  ;;  %v759_v21 = vcvt.s32.f32 %v757_v15  ;;  %v772_v36 = vand.u32 65535, %v3482_v44  ;;  %v787_v44 = vand.u32 65535, %v5709_v12 }
 0x183   :  { %v749_v9 = vsel %vm748_vm7, %v744_v40, inf  ;;  %v1313_v40 = vshra.s32 %v3946_v13, 16 }
 0x184   :  { %1286 = vmin.xlane.f32.xlu0 %v3940_v63  ;;  %750 = vmin.xlane.f32.xlu1 %v749_v9  ;;  %v437_v63 = vsel %vm373_vm8, %v3255_v38, 32  ;;  %v774_v15 = vcvt.s32.f32 %v772_v36  ;;  %v2970_v36 = vld [vmem:[#allocation3 + $0x1f0] sm:$0xff] }
 0x185   :  { %v3952_v7 = vpop.xlane.xlu0 %761  ;;  %v3967_v51 = vcvt.s32.f32 %v1313_v40  ;;  %v3973_v28 = vsel %vm120_vm0, %v437_v63, 2147483647  ;;  %vm375_vm12 = vcmp.eq.f32.partialorder %v2970_v36, %v3635_v24  ;;  %v5714_v36 = vld [vmem:[#allocation48_spill] sm:$0xff] }
 0x186   :  { %5706 = vst [vmem:[#allocation40_spill] sm:$0xff] %v3952_v7  ;;  %vm763_vm9 = vcmp.eq.f32.partialorder %v5707_v49, %v3952_v7  ;;  %v5711_v49 = vld [vmem:[#allocation47_spill] sm:$0xff]  ;;  %v312_v7 = vpop.xlane.xlu1 %311  ;;  %v1343_v63 = vshra.s32 %v3973_v28, 16 }
 0x187   :  { %v764_v9 = vsel %vm763_vm9, %v759_v21, inf  ;;  %5710 = vst [vmem:[#allocation42_spill] sm:$0xff] %v3967_v51  ;;  %v438_v21 = vsel %vm374_vm10, %v3255_v38, 32 }
 0x188   :  { %1301 = vmin.xlane.f32.xlu0 %v3949_v32  ;;  %765 = vmin.xlane.f32.xlu1 %v764_v9  ;;  %v3976_v9 = vcvt.s32.f32 %v1328_v4  ;;  %v3982_v12 = vsel %vm120_vm0, %v438_v21, 2147483647  ;;  %v2971_v4 = vld [vmem:[#allocation3 + $0x1f8] sm:$0xff] }
 0x189   :  { %v3964_v39 = vpop.xlane.xlu0 %776  ;;  %vm376_vm14 = vcmp.eq.f32.partialorder %v2971_v4, %v312_v7  ;;  %v1358_v24 = vshra.s32 %v3982_v12, 16 }
 0x18a   :  { %5708 = vst [vmem:[#allocation41_spill] sm:$0xff] %v3964_v39  ;;  %vm778_vm11 = vcmp.eq.f32.partialorder %v5711_v49, %v3964_v39  ;;  %v789_v49 = vcvt.s32.f32 %v787_v44  ;;  %v802_v39 = vand.u32 65535, %v3503_v48  ;;  %v817_v48 = vand.u32 65535, %v5714_v36 }
 0x18b   :  { %v779_v34 = vsel %vm778_vm11, %v774_v15, inf  ;;  %v832_v36 = vand.u32 65535, %v3526_v52  ;;  %v5720_v52 = vld [vmem:[#allocation51_spill] sm:$0xff] }
 0x18c   :  { %1316 = vmin.xlane.f32.xlu0 %v3967_v51  ;;  %780 = vmin.xlane.f32.xlu1 %v779_v34  ;;  %v439_v34 = vsel %vm375_vm12, %v3255_v38, 32  ;;  %v804_v44 = vcvt.s32.f32 %v802_v39  ;;  %v3994_v51 = vcvt.s32.f32 %v1343_v63  ;;  %v819_v63 = vcvt.s32.f32 %v817_v48 }
 0x18d   :  { %v3979_v40 = vpop.xlane.xlu0 %791  ;;  %v4000_v7 = vsel %vm120_vm0, %v439_v34, 2147483647 }
 0x18e   :  { %5712 = vst [vmem:[#allocation43_spill] sm:$0xff] %v3979_v40  ;;  %vm793_vm13 = vcmp.eq.f32.partialorder %v3508_v0, %v3979_v40  ;;  %v5715_v0 = vld [vmem:[#allocation49_spill] sm:$0xff]  ;;  %v1373_v34 = vshra.s32 %v4000_v7, 16 }
 0x18f   :  { %v794_v15 = vsel %vm793_vm13, %v789_v49, inf  ;;  %v440_v49 = vsel %vm376_vm14, %v3255_v38, 32 }
 0x190   :  { %1331 = vmin.xlane.f32.xlu0 %v3976_v9  ;;  %795 = vmin.xlane.f32.xlu1 %v794_v15  ;;  %v4003_v15 = vcvt.s32.f32 %v1358_v24  ;;  %v4008_v39 = vsel %vm120_vm0, %v440_v49, 2147483647  ;;  %v4019_v38 = vcvt.s32.f32 %v1373_v34 }
 0x191   :  { %v3991_v21 = vpop.xlane.xlu0 %806  ;;  %v1388_v24 = vshra.s32 %v4008_v39, 16 }
 0x192   :  { %5713 = vst [vmem:[#allocation44_spill] sm:$0xff] %v3991_v21  ;;  %vm808_vm15 = vcmp.eq.f32.partialorder %v5715_v0, %v3991_v21  ;;  %v5718_v21 = vld [vmem:[#allocation50_spill] sm:$0xff]  ;;  %5719 = vst [vmem:[#allocation47_spill] sm:$0xff] %v4019_v38 }
 0x193   :  { %v809_v4 = vsel %vm808_vm15, %v804_v44, inf  ;;  %v847_v49 = vand.u32 65535, %v5718_v21 }
 0x194   :  { %1346 = vmin.xlane.f32.xlu0 %v3994_v51  ;;  %810 = vmin.xlane.f32.xlu1 %v809_v4  ;;  %v834_v4 = vcvt.s32.f32 %v832_v36  ;;  %v5722_v36 = vld [vmem:[#allocation52_spill] sm:$0xff] }
 0x195   :  { %v4005_v40 = vpop.xlane.xlu0 %821 }
 0x196   :  { %5716 = vst [vmem:[#allocation45_spill] sm:$0xff] %v4005_v40  ;;  %vm823_vm1 = vcmp.eq.f32.partialorder %v3529_v20, %v4005_v40  ;;  %v4024_v20 = vcvt.s32.f32 %v1388_v24  ;;  %v862_v40 = vand.u32 65535, %v3547_v56  ;;  %v5724_v24 = vld [vmem:[#allocation54_spill] sm:$0xff] }
 0x197   :  { %v824_v0 = vsel %vm823_vm1, %v819_v63, inf }
 0x198   :  { %1361 = vmin.xlane.f32.xlu0 %v4003_v15  ;;  %825 = vmin.xlane.f32.xlu1 %v824_v0  ;;  %v849_v0 = vcvt.s32.f32 %v847_v49 }
 0x199   :  { %v4016_v44 = vpop.xlane.xlu0 %836 }
 0x19a   :  { %5717 = vst [vmem:[#allocation46_spill] sm:$0xff] %v4016_v44  ;;  %vm838_vm0 = vcmp.eq.f32.partialorder %v5720_v52, %v4016_v44  ;;  %v5723_v52 = vld [vmem:[#allocation53_spill] sm:$0xff] }
 0x19b   :  { %v839_v48 = vsel %vm838_vm0, %v834_v4, inf  ;;  %v864_v4 = vcvt.s32.f32 %v862_v40  ;;  %v877_v44 = vand.u32 65535, %v5723_v52 }
 0x19c   :  { %1376 = vmin.xlane.f32.xlu0 %v4019_v38  ;;  %840 = vmin.xlane.f32.xlu1 %v839_v48  ;;  %v892_v38 = vand.u32 65535, %v3568_v60  ;;  %v922_v60 = vand.u32 65535, %v3591_v3  ;;  %v952_v3 = vand.u32 65535, %v3612_v10  ;;  %v982_v10 = vand.u32 65535, %v3633_v18 }
 0x19d   :  { %v4026_v63 = vpop.xlane.xlu0 %851  ;;  %v879_v56 = vcvt.s32.f32 %v877_v44 }
 0x19e   :  { %5721 = vst [vmem:[#allocation48_spill] sm:$0xff] %v4026_v63  ;;  %vm853_vm2 = vcmp.eq.f32.partialorder %v5722_v36, %v4026_v63  ;;  %v894_v40 = vcvt.s32.f32 %v892_v38  ;;  %v5726_v63 = vld [vmem:[#allocation56_spill] sm:$0xff]  ;;  %v924_v38 = vcvt.s32.f32 %v922_v60  ;;  %v954_v60 = vcvt.s32.f32 %v952_v3 }
 0x19f   :  { %v854_v21 = vsel %vm853_vm2, %v849_v0, inf }
 0x1a0   :  { %1391 = vmin.xlane.f32.xlu0 %v4024_v20  ;;  %855 = vmin.xlane.f32.xlu1 %v854_v21  ;;  %v5725_v21 = vld [vmem:[#allocation55_spill] sm:$0xff] }
 0x1a1   :  { %v4032_v34 = vpop.xlane.xlu0 %866  ;;  %v907_v52 = vand.u32 65535, %v5725_v21  ;;  %v5729_v21 = vld [vmem:[#allocation58_spill] sm:$0xff] }
 0x1a2   :  { %vm868_vm3 = vcmp.eq.f32.partialorder %v5724_v24, %v4032_v34 }
 0x1a3   :  { %v869_v48 = vsel %vm868_vm3, %v864_v4, inf  ;;  %v909_v44 = vcvt.s32.f32 %v907_v52 }
 0x1a4   :  { %870 = vmin.xlane.f32.xlu1 %v869_v48 }
 0x1a5   :  { %v4037_v49 = vpop.xlane.xlu0 %881 }
 0x1a6   :  { %vm883_vm4 = vcmp.eq.f32.partialorder %v3573_v45, %v4037_v49 }
 0x1a7   :  { %v884_v0 = vsel %vm883_vm4, %v879_v56, inf  ;;  %v5728_v56 = vld [vmem:[#allocation57_spill] sm:$0xff] }
 0x1a8   :  { %885 = vmin.xlane.f32.xlu1 %v884_v0  ;;  %v937_v0 = vand.u32 65535, %v5728_v56 }
 0x1a9   :  { %v4042_v36 = vpop.xlane.xlu0 %896 }
 0x1aa   :  { %vm898_vm5 = vcmp.eq.f32.partialorder %v5726_v63, %v4042_v36  ;;  %v939_v52 = vcvt.s32.f32 %v937_v0 }
 0x1ab   :  { %v899_v4 = vsel %vm898_vm5, %v894_v40, inf }
 0x1ac   :  { %900 = vmin.xlane.f32.xlu1 %v899_v4  ;;  %v5730_v4 = vld [vmem:[#allocation59_spill] sm:$0xff] }
 0x1ad   :  { %v4047_v24 = vpop.xlane.xlu0 %911 }
 0x1ae   :  { %5727 = vst [vmem:[#allocation49_spill] sm:$0xff] %v4047_v24  ;;  %vm913_vm6 = vcmp.eq.f32.partialorder %v3594_v17, %v4047_v24  ;;  %v5733_v24 = vld [vmem:[#allocation61_spill] sm:$0xff] }
 0x1af   :  { %v914_v45 = vsel %vm913_vm6, %v909_v44, inf }
 0x1b0   :  { %915 = vmin.xlane.f32.xlu1 %v914_v45  ;;  %v5732_v45 = vld [vmem:[#allocation60_spill] sm:$0xff] }
 0x1b1   :  { %v4052_v48 = vpop.xlane.xlu0 %926  ;;  %v967_v56 = vand.u32 65535, %v5732_v45  ;;  %v5734_v45 = vld [vmem:[#allocation62_spill] sm:$0xff] }
 0x1b2   :  { %vm928_vm7 = vcmp.eq.f32.partialorder %v5729_v21, %v4052_v48 }
 0x1b3   :  { %v929_v63 = vsel %vm928_vm7, %v924_v38, inf  ;;  %v969_v0 = vcvt.s32.f32 %v967_v56 }
 0x1b4   :  { %930 = vmin.xlane.f32.xlu1 %v929_v63  ;;  %v453_v63 = vcvt.f32.s32 %v3651_v58 }
 0x1b5   :  { %v4057_v40 = vpop.xlane.xlu0 %941 }
 0x1b6   :  { %vm943_vm8 = vcmp.eq.f32.partialorder %v5730_v4, %v4057_v40 }
 0x1b7   :  { %v944_v17 = vsel %vm943_vm8, %v939_v52, inf }
 0x1b8   :  { %945 = vmin.xlane.f32.xlu1 %v944_v17  ;;  %v984_v17 = vcvt.s32.f32 %v982_v10 }
 0x1b9   :  { %v4062_v44 = vpop.xlane.xlu0 %956 }
 0x1ba   :  { %5731 = vst [vmem:[#allocation50_spill] sm:$0xff] %v4062_v44  ;;  %vm958_vm9 = vcmp.eq.f32.partialorder %v5733_v24, %v4062_v44  ;;  %v997_v24 = vand.u32 65535, %v5734_v45  ;;  %v483_v45 = vcvt.f32.s32 %v3680_v46 }
 0x1bb   :  { %v959_v38 = vsel %vm958_vm9, %v954_v60, inf  ;;  %v454_v60 = vshll.u32 %v453_v63, 16 }
 0x1bc   :  { %960 = vmin.xlane.f32.xlu1 %v959_v38  ;;  %v468_v38 = vcvt.f32.s32 %v3667_v30 }
 0x1bd   :  { %v4067_v21 = vpop.xlane.xlu0 %971 }
 0x1be   :  { %vm973_vm10 = vcmp.eq.f32.partialorder %v3638_v57, %v4067_v21  ;;  %v469_v10 = vshll.u32 %v468_v38, 16 }
 0x1bf   :  { %v974_v52 = vsel %vm973_vm10, %v969_v0, inf  ;;  %v999_v0 = vcvt.s32.f32 %v997_v24  ;;  %v484_v24 = vshll.u32 %v483_v45, 16 }
 0x1c0   :  { %975 = vmin.xlane.f32.xlu1 %v974_v52  ;;  %v1012_v52 = vand.u32 65535, %v3660_v27  ;;  %v498_v27 = vcvt.f32.s32 %v3696_v23 }
 0x1c1   :  { %v451_v3 = vpop.xlane.xlu1 %450  ;;  %v4073_v4 = vpop.xlane.xlu0 %986 }
 0x1c2   :  { %v452_v44 = vcvt.f32.s32 %v451_v3  ;;  %vm988_vm11 = vcmp.eq.f32.partialorder %v3654_v31, %v4073_v4 }
 0x1c3   :  { %v989_v18 = vsel %vm988_vm11, %v984_v17, inf  ;;  %v1014_v17 = vcvt.s32.f32 %v1012_v52  ;;  %v513_v52 = vcvt.f32.s32 %v3709_v29  ;;  %vm2930_vm11 = vcmask 7175  }
 0x1c4   :  { %v4079_v58 = vadd.s32 %v454_v60, %v452_v44  ;;  %990 = vmin.xlane.f32.xlu1 %v989_v18  ;;  %v1027_v60 = vand.u32 65535, %v3670_v11  ;;  %v1042_v11 = vand.u32 65535, %v3689_v35 }
 0x1c5   :  { %v466_v57 = vpop.xlane.xlu1 %465  ;;  %v4081_v56 = vpop.xlane.xlu0 %1001 }
 0x1c6   :  { %v467_v63 = vcvt.f32.s32 %v466_v57  ;;  %vm1003_vm12 = vcmp.eq.f32.partialorder %v3663_v19, %v4081_v56  ;;  %v1044_v29 = vcvt.s32.f32 %v1042_v11 }
 0x1c7   :  { %v1004_v30 = vsel %vm1003_vm12, %v999_v0, inf  ;;  %v1029_v0 = vcvt.s32.f32 %v1027_v60  ;;  %v528_v60 = vcvt.f32.s32 %v3725_v1  ;;  %v5735_v1 = vld [vmem:[#allocation63_spill] sm:$0xff] }
 0x1c8   :  { %v4087_v3 = vadd.s32 %v469_v10, %v467_v63  ;;  %1005 = vmin.xlane.f32.xlu1 %v1004_v30  ;;  %v499_v10 = vshll.u32 %v498_v27, 16 }
 0x1c9   :  { %v481_v31 = vpop.xlane.xlu1 %480  ;;  %v4089_v44 = vpop.xlane.xlu0 %1016 }
 0x1ca   :  { %v482_v38 = vcvt.f32.s32 %v481_v31  ;;  %vm1018_vm13 = vcmp.eq.f32.partialorder %v3683_v55, %v4089_v44  ;;  %v1057_v31 = vand.u32 65535, %v3699_v61 }
 0x1cb   :  { %v1019_v46 = vsel %vm1018_vm13, %v1014_v17, inf  ;;  %v514_v17 = vshll.u32 %v513_v52, 16 }
 0x1cc   :  { %v4095_v18 = vadd.s32 %v484_v24, %v482_v38  ;;  %1020 = vmin.xlane.f32.xlu1 %v1019_v46  ;;  %v1059_v46 = vcvt.s32.f32 %v1057_v31  ;;  %v558_v31 = vcvt.f32.s32 %v3754_v25  ;;  %v5740_v25 = vld [vmem:[#allocation24_spill] sm:$0xff] }
 0x1cd   :  { %v496_v19 = vpop.xlane.xlu1 %495  ;;  %v4097_v57 = vpop.xlane.xlu0 %1031 }
 0x1ce   :  { %v497_v63 = vcvt.f32.s32 %v496_v19  ;;  %vm1033_vm14 = vcmp.eq.f32.partialorder %v3692_v37, %v4097_v57  ;;  %v529_v19 = vshll.u32 %v528_v60, 16 }
 0x1cf   :  { %v1034_v55 = vsel %vm1033_vm14, %v1029_v0, inf  ;;  %v543_v0 = vcvt.f32.s32 %v3738_v41 }
 0x1d0   :  { %v4103_v23 = vadd.s32 %v499_v10, %v497_v63  ;;  %1035 = vmin.xlane.f32.xlu1 %v1034_v55  ;;  %v1072_v10 = vand.u32 65535, %v3718_v43  ;;  %v5736_v55 = vld [vmem:[#allocation64_spill] sm:$0xff] }
 0x1d1   :  { %v511_v45 = vpop.xlane.xlu1 %510  ;;  %v4105_v30 = vpop.xlane.xlu0 %1046 }
 0x1d2   :  { %v512_v24 = vcvt.f32.s32 %v511_v45  ;;  %vm1048_vm15 = vcmp.eq.f32.partialorder %v3712_v14, %v4105_v30  ;;  %v1087_v45 = vand.u32 65535, %v5736_v55  ;;  %v1074_v41 = vcvt.s32.f32 %v1072_v10 }
 0x1d3   :  { %v1049_v37 = vsel %vm1048_vm15, %v1044_v29, inf }
 0x1d4   :  { %v4111_v35 = vadd.s32 %v514_v17, %v512_v24  ;;  %1050 = vmin.xlane.f32.xlu1 %v1049_v37  ;;  %v544_v17 = vshll.u32 %v543_v0, 16  ;;  %v5737_v24 = vld [vmem:[#allocation11_spill] sm:$0xff] }
 0x1d5   :  { %v526_v27 = vpop.xlane.xlu1 %525  ;;  %v4113_v38 = vpop.xlane.xlu0 %1061  ;;  %v5739_v0 = vld [vmem:[#allocation23_spill] sm:$0xff] }
 0x1d6   :  { %v527_v61 = vcvt.f32.s32 %v526_v27  ;;  %vm1063_vm1 = vcmp.eq.f32.partialorder %v5735_v1, %v4113_v38 }
 0x1d7   :  { %v1064_v14 = vsel %vm1063_vm1, %v1059_v46, inf  ;;  %v1089_v46 = vcvt.s32.f32 %v1087_v45  ;;  %v588_v45 = vcvt.f32.s32 %v3783_v42  ;;  %v5746_v42 = vld [vmem:[#allocation26_spill] sm:$0xff] }
 0x1d8   :  { %v4119_v52 = vadd.s32 %v529_v19, %v527_v61  ;;  %1065 = vmin.xlane.f32.xlu1 %v1064_v14  ;;  %v559_v19 = vshll.u32 %v558_v31, 16  ;;  %v573_v61 = vcvt.f32.s32 %v3767_v54  ;;  %v1102_v14 = vand.u32 65535, %v5739_v0 }
 0x1d9   :  { %v541_v63 = vpop.xlane.xlu1 %540  ;;  %v4121_v11 = vpop.xlane.xlu0 %1076 }
 0x1da   :  { %v542_v60 = vcvt.f32.s32 %v541_v63  ;;  %vm1078_vm0 = vcmp.eq.f32.partialorder %v5737_v24, %v4121_v11  ;;  %v574_v24 = vshll.u32 %v573_v61, 16  ;;  %v1104_v54 = vcvt.s32.f32 %v1102_v14  ;;  %v5745_v61 = vld [vmem:[#allocation13_spill] sm:$0xff] }
 0x1db   :  { %v1079_v29 = vsel %vm1078_vm0, %v1074_v41, inf }
 0x1dc   :  { %v4127_v43 = vadd.s32 %v544_v17, %v542_v60  ;;  %1080 = vmin.xlane.f32.xlu1 %v1079_v29  ;;  %v5742_v60 = vld [vmem:[#allocation12_spill] sm:$0xff]  ;;  %v5743_v29 = vld [vmem:[#allocation25_spill] sm:$0xff] }
 0x1dd   :  { %v556_v37 = vpop.xlane.xlu1 %555  ;;  %v4129_v27 = vpop.xlane.xlu0 %1091  ;;  %v1117_v41 = vand.u32 65535, %v5742_v60 }
 0x1de   :  { %5738 = vst [vmem:[#allocation51_spill] sm:$0xff] %v4129_v27  ;;  %v557_v1 = vcvt.f32.s32 %v556_v37  ;;  %vm1093_vm2 = vcmp.eq.f32.partialorder %v5740_v25, %v4129_v27  ;;  %v589_v25 = vshll.u32 %v588_v45, 16  ;;  %v1132_v27 = vand.u32 65535, %v5745_v61 }
 0x1df   :  { %v1094_v63 = vsel %vm1093_vm2, %v1089_v46, inf }
 0x1e0   :  { %v4135_v10 = vadd.s32 %v559_v19, %v557_v1  ;;  %1095 = vmin.xlane.f32.xlu1 %v1094_v63  ;;  %v1119_v1 = vcvt.s32.f32 %v1117_v41  ;;  %v603_v63 = vcvt.f32.s32 %v3796_v8  ;;  %v618_v41 = vcvt.f32.s32 %v3812_v47  ;;  %v5752_v47 = vld [vmem:[#allocation15_spill] sm:$0xff] }
 0x1e1   :  { %v571_v55 = vpop.xlane.xlu1 %570  ;;  %v4137_v17 = vpop.xlane.xlu0 %1106  ;;  %v1134_v8 = vcvt.s32.f32 %v1132_v27 }
 0x1e2   :  { %5741 = vst [vmem:[#allocation52_spill] sm:$0xff] %v4137_v17  ;;  %v572_v31 = vcvt.f32.s32 %v571_v55  ;;  %vm1108_vm3 = vcmp.eq.f32.partialorder %v5743_v29, %v4137_v17 }
 0x1e3   :  { %v1109_v0 = vsel %vm1108_vm3, %v1104_v54, inf  ;;  %v5748_v54 = vld [vmem:[#allocation27_spill] sm:$0xff] }
 0x1e4   :  { %v4143_v37 = vadd.s32 %v574_v24, %v572_v31  ;;  %1110 = vmin.xlane.f32.xlu1 %v1109_v0  ;;  %v1147_v29 = vand.u32 65535, %v5748_v54  ;;  %v604_v0 = vshll.u32 %v603_v63, 16  ;;  %v5751_v63 = vld [vmem:[#allocation28_spill] sm:$0xff] }
 0x1e5   :  { %v586_v19 = vpop.xlane.xlu1 %585  ;;  %v4145_v46 = vpop.xlane.xlu0 %1121  ;;  %v1162_v17 = vand.u32 65535, %v5751_v63 }
 0x1e6   :  { %5744 = vst [vmem:[#allocation53_spill] sm:$0xff] %v4145_v46  ;;  %v587_v60 = vcvt.f32.s32 %v586_v19  ;;  %vm1123_vm4 = vcmp.eq.f32.partialorder %v5746_v42, %v4145_v46  ;;  %v5749_v19 = vld [vmem:[#allocation14_spill] sm:$0xff]  ;;  %v633_v46 = vcvt.f32.s32 %v3825_v22 }
 0x1e7   :  { %v1124_v55 = vsel %vm1123_vm4, %v1119_v1, inf  ;;  %v1164_v22 = vcvt.s32.f32 %v1162_v17 }
 0x1e8   :  { %v4151_v14 = vadd.s32 %v589_v25, %v587_v60  ;;  %1125 = vmin.xlane.f32.xlu1 %v1124_v55  ;;  %v1149_v60 = vcvt.s32.f32 %v1147_v29  ;;  %v619_v55 = vshll.u32 %v618_v41, 16  ;;  %v648_v29 = vcvt.f32.s32 %v3841_v62  ;;  %v5757_v62 = vld [vmem:[#allocation31_spill] sm:$0xff] }
 0x1e9   :  { %v601_v24 = vpop.xlane.xlu1 %600  ;;  %v4153_v31 = vpop.xlane.xlu0 %1136 }
 0x1ea   :  { %5747 = vst [vmem:[#allocation54_spill] sm:$0xff] %v4153_v31  ;;  %v602_v45 = vcvt.f32.s32 %v601_v24  ;;  %vm1138_vm5 = vcmp.eq.f32.partialorder %v5749_v19, %v4153_v31 }
 0x1eb   :  { %v1139_v42 = vsel %vm1138_vm5, %v1134_v8, inf  ;;  %v5753_v8 = vld [vmem:[#allocation29_spill] sm:$0xff] }
 0x1ec   :  { %v4159_v61 = vadd.s32 %v604_v0, %v602_v45  ;;  %1140 = vmin.xlane.f32.xlu1 %v1139_v42  ;;  %v1177_v19 = vand.u32 65535, %v5753_v8  ;;  %v634_v42 = vshll.u32 %v633_v46, 16  ;;  %v5756_v46 = vld [vmem:[#allocation16_spill] sm:$0xff] }
 0x1ed   :  { %v616_v25 = vpop.xlane.xlu1 %615  ;;  %v4161_v1 = vpop.xlane.xlu0 %1151  ;;  %v1192_v31 = vand.u32 65535, %v5756_v46 }
 0x1ee   :  { %5750 = vst [vmem:[#allocation55_spill] sm:$0xff] %v4161_v1  ;;  %v617_v54 = vcvt.f32.s32 %v616_v25  ;;  %vm1153_vm6 = vcmp.eq.f32.partialorder %v5752_v47, %v4161_v1  ;;  %v5754_v25 = vld [vmem:[#allocation30_spill] sm:$0xff]  ;;  %v663_v1 = vcvt.f32.s32 %v3854_v59 }
 0x1ef   :  { %v1154_v24 = vsel %vm1153_vm6, %v1149_v60, inf  ;;  %v1194_v59 = vcvt.s32.f32 %v1192_v31 }
 0x1f0   :  { %v4167_v27 = vadd.s32 %v619_v55, %v617_v54  ;;  %1155 = vmin.xlane.f32.xlu1 %v1154_v24  ;;  %v1179_v54 = vcvt.s32.f32 %v1177_v19  ;;  %v649_v24 = vshll.u32 %v648_v29, 16  ;;  %v678_v19 = vcvt.f32.s32 %v3870_v6 }
 0x1f1   :  { %v631_v0 = vpop.xlane.xlu1 %630  ;;  %v4169_v45 = vpop.xlane.xlu0 %1166 }
 0x1f2   :  { %v632_v41 = vcvt.f32.s32 %v631_v0  ;;  %vm1168_vm7 = vcmp.eq.f32.partialorder %v5754_v25, %v4169_v45 }
 0x1f3   :  { %v1169_v47 = vsel %vm1168_vm7, %v1164_v22, inf  ;;  %v5759_v22 = vld [vmem:[#allocation17_spill] sm:$0xff] }
 0x1f4   :  { %v4175_v63 = vadd.s32 %v634_v42, %v632_v41  ;;  %1170 = vmin.xlane.f32.xlu1 %v1169_v47  ;;  %v1207_v25 = vand.u32 65535, %v5759_v22  ;;  %v664_v47 = vshll.u32 %v663_v1, 16  ;;  %v5763_v1 = vld [vmem:[#allocation33_spill] sm:$0xff] }
 0x1f5   :  { %v646_v55 = vpop.xlane.xlu1 %645  ;;  %v4177_v60 = vpop.xlane.xlu0 %1181 }
 0x1f6   :  { %5755 = vst [vmem:[#allocation56_spill] sm:$0xff] %v4177_v60  ;;  %v647_v8 = vcvt.f32.s32 %v646_v55  ;;  %vm1183_vm8 = vcmp.eq.f32.partialorder %v5757_v62, %v4177_v60  ;;  %v5760_v55 = vld [vmem:[#allocation32_spill] sm:$0xff]  ;;  %v1209_v22 = vcvt.s32.f32 %v1207_v25 }
 0x1f7   :  { %v1184_v0 = vsel %vm1183_vm8, %v1179_v54, inf }
 0x1f8   :  { %v4183_v17 = vadd.s32 %v649_v24, %v647_v8  ;;  %1185 = vmin.xlane.f32.xlu1 %v1184_v0  ;;  %v1222_v8 = vand.u32 65535, %v3863_v16  ;;  %v679_v0 = vshll.u32 %v678_v19, 16  ;;  %v5767_v16 = vld [vmem:[#allocation19_spill] sm:$0xff] }
 0x1f9   :  { %v661_v42 = vpop.xlane.xlu1 %660  ;;  %v4185_v41 = vpop.xlane.xlu0 %1196 }
 0x1fa   :  { %5758 = vst [vmem:[#allocation57_spill] sm:$0xff] %v4185_v41  ;;  %v662_v29 = vcvt.f32.s32 %v661_v42  ;;  %vm1198_vm9 = vcmp.eq.f32.partialorder %v5760_v55, %v4185_v41 }
 0x1fb   :  { %v1199_v62 = vsel %vm1198_vm9, %v1194_v59, inf  ;;  %v5766_v59 = vld [vmem:[#allocation18_spill] sm:$0xff]  ;;  %vm1538_vm9 = vcmask 130112  }
 0x1fc   :  { %v4191_v46 = vadd.s32 %v664_v47, %v662_v29  ;;  %1200 = vmin.xlane.f32.xlu1 %v1199_v62  ;;  %v1224_v29 = vcvt.s32.f32 %v1222_v8  ;;  %v1237_v55 = vand.u32 65535, %v5766_v59  ;;  %v4203_v62 = vld [vmem:[#allocation2] sm:$0xf] }
 0x1fd   :  { %v676_v24 = vpop.xlane.xlu1 %675  ;;  %v4193_v54 = vpop.xlane.xlu0 %1211 }
 0x1fe   :  { %5761 = vst [vmem:[#allocation58_spill] sm:$0xff] %v4191_v46  ;;  %5762 = vst [vmem:[#allocation59_spill] sm:$0xff] %v4193_v54  ;;  %v677_v60 = vcvt.f32.s32 %v676_v24  ;;  %vm1213_vm10 = vcmp.eq.f32.partialorder %v5763_v1, %v4193_v54  ;;  %v1239_v8 = vcvt.s32.f32 %v1237_v55  ;;  %v5814_v54 = vld [vmem:[#allocation38_spill] sm:$0xff] }
 0x1ff   :  { %v1214_v31 = vsel %vm1213_vm10, %v1209_v22, inf  ;;  %vm1402_vm10 = vcmp.eq.s32.totalorder %v4087_v3, 32 }
 0x200   :  { %v680_v6 = vadd.s32 %v679_v0, %v677_v60  ;;  %1215 = vmin.xlane.f32.xlu1 %v1214_v31  ;;  %v1252_v0 = vand.u32 65535, %v3892_v2 }
 0x201   :  { %v4198_v42 = vpop.xlane.xlu1 %690  ;;  %v4200_v47 = vpop.xlane.xlu0 %1226 }
 0x202   :  { %5764 = vst [vmem:[#allocation60_spill] sm:$0xff] %v4198_v42  ;;  %5765 = vst [vmem:[#allocation61_spill] sm:$0xff] %v4200_v47  ;;  %vm1416_vm12 = vcmp.eq.s32.totalorder %v680_v6, 32  ;;  %vm1228_vm13 = vcmp.eq.f32.partialorder %v5767_v16, %v4200_v47  ;;  %v1254_v31 = vcvt.s32.f32 %v1252_v0  ;;  %v5821_v42 = vld [vmem:[#allocation45_spill] sm:$0xff] }
 0x203   :  { %v4207_v25 = vsel %vm1416_vm12, 0, %v680_v6  ;;  %v1229_v19 = vsel %vm1228_vm13, %v1224_v29, inf  ;;  %v5772_v29 = vld [vmem:[#allocation36_spill] sm:$0xff]  ;;  %vm1403_vm12 = vcmp.eq.s32.totalorder %v4095_v18, 32  ;;  %vm1401_vm13 = vcmp.eq.s32.totalorder %v4079_v58, 32 }
 0x204   :  { %5768 = vst [vmem:[#allocation62_spill] sm:$0xff] %v4207_v25  ;;  %2931 = vst.msk [vmem:[#allocation2 - $0x7] sm:$0x80] %vm2930_vm11, %v4207_v25  ;;  %1230 = vmin.xlane.f32.xlu1 %v1229_v19  ;;  %v1267_v59 = vand.u32 65535, %v5772_v29  ;;  %v5777_v29 = vld [vmem:[#allocation21_spill] sm:$0xff]  ;;  %vm1545_vm11 = vcmask 195712  }
 0x205   :  { %v4210_v60 = vpop.xlane.xlu1 %705  ;;  %v4212_v24 = vpop.xlane.xlu0 %1241 }
 0x206   :  { %5769 = vst [vmem:[#allocation63_spill] sm:$0xff] %v4212_v24  ;;  %vm1243_vm14 = vcmp.eq.f32.partialorder %v3895_v5, %v4212_v24  ;;  %v1269_v19 = vcvt.s32.f32 %v1267_v59  ;;  %v1282_v5 = vand.u32 65535, %v3919_v26 }
 0x207   :  { %v1244_v22 = vsel %vm1243_vm14, %v1239_v8, inf  ;;  %vm1552_vm14 = vcmask 261312  }
 0x208   :  { %1245 = vmin.xlane.f32.xlu1 %v1244_v22 }
 0x209   :  { %v4217_v1 = vpop.xlane.xlu1 %720  ;;  %v4219_v6 = vpop.xlane.xlu0 %1256 }
 0x20a   :  { %5770 = vst [vmem:[#allocation64_spill] sm:$0xff] %v4217_v1  ;;  %5771 = vst [vmem:[#allocation11_spill] sm:$0xff] %v4219_v6  ;;  %vm1258_vm15 = vcmp.eq.f32.partialorder %v3913_v33, %v4219_v6  ;;  %v1284_v33 = vcvt.s32.f32 %v1282_v5 }
 0x20b   :  { %v1259_v16 = vsel %vm1258_vm15, %v1254_v31, inf  ;;  %v1297_v31 = vand.u32 65535, %v5777_v29  ;;  %vm1404_vm15 = vcmp.eq.s32.totalorder %v4103_v23, 32 }
 0x20c   :  { %1260 = vmin.xlane.f32.xlu1 %v1259_v16  ;;  %v5778_v16 = vld [vmem:[#allocation39_spill] sm:$0xff] }
 0x20d   :  { %v4224_v55 = vpop.xlane.xlu1 %735  ;;  %v4226_v2 = vpop.xlane.xlu0 %1271  ;;  %v1299_v24 = vcvt.s32.f32 %v1297_v31 }
 0x20e   :  { %5773 = vst [vmem:[#allocation23_spill] sm:$0xff] %v4224_v55  ;;  %5774 = vst [vmem:[#allocation24_spill] sm:$0xff] %v4226_v2  ;;  %vm1273_vm1 = vcmp.eq.f32.partialorder %v3922_v53, %v4226_v2  ;;  %v1312_v53 = vand.u32 65535, %v3946_v13  ;;  %v5816_v55 = vld [vmem:[#allocation41_spill] sm:$0xff] }
 0x20f   :  { %v1274_v8 = vsel %vm1273_vm1, %v1269_v19, inf  ;;  %v783_v41 = vcvt.f32.s32 %v5816_v55  ;;  %vm5590_vm1 = vcmask 326912  }
 0x210   :  { %1275 = vmin.xlane.f32.xlu1 %v1274_v8  ;;  %v1314_v29 = vcvt.s32.f32 %v1312_v53 }
 0x211   :  { %v4231_v0 = vpop.xlane.xlu1 %750  ;;  %v4233_v22 = vpop.xlane.xlu0 %1286 }
 0x212   :  { %5775 = vst [vmem:[#allocation12_spill] sm:$0xff] %v4231_v0  ;;  %5776 = vst [vmem:[#allocation25_spill] sm:$0xff] %v4233_v22  ;;  %vm1288_vm0 = vcmp.eq.f32.partialorder %v5778_v16, %v4233_v22  ;;  %v5815_v0 = vld [vmem:[#allocation40_spill] sm:$0xff] }
 0x213   :  { %v1289_v6 = vsel %vm1288_vm0, %v1284_v33, inf  ;;  %v1327_v33 = vand.u32 65535, %v3955_v50  ;;  %vm1405_vm0 = vcmp.eq.s32.totalorder %v4111_v35, 32 }
 0x214   :  { %1290 = vmin.xlane.f32.xlu1 %v1289_v6  ;;  %v5783_v6 = vld [vmem:[#allocation42_spill] sm:$0xff] }
 0x215   :  { %v4238_v59 = vpop.xlane.xlu1 %765  ;;  %v4240_v26 = vpop.xlane.xlu0 %1301  ;;  %v1329_v22 = vcvt.s32.f32 %v1327_v33 }
 0x216   :  { %5779 = vst [vmem:[#allocation13_spill] sm:$0xff] %v4238_v59  ;;  %5780 = vst [vmem:[#allocation26_spill] sm:$0xff] %v4240_v26  ;;  %vm1303_vm2 = vcmp.eq.f32.partialorder %v3949_v32, %v4240_v26  ;;  %v1342_v32 = vand.u32 65535, %v3973_v28 }
 0x217   :  { %v1304_v19 = vsel %vm1303_vm2, %v1299_v24, inf  ;;  %vm5589_vm2 = vcmask 392512  }
 0x218   :  { %1305 = vmin.xlane.f32.xlu1 %v1304_v19  ;;  %v1344_v19 = vcvt.s32.f32 %v1342_v32 }
 0x219   :  { %v4245_v5 = vpop.xlane.xlu1 %780  ;;  %v4247_v8 = vpop.xlane.xlu0 %1316 }
 0x21a   :  { %5781 = vst [vmem:[#allocation27_spill] sm:$0xff] %v4245_v5  ;;  %5782 = vst [vmem:[#allocation14_spill] sm:$0xff] %v4247_v8  ;;  %vm1318_vm3 = vcmp.eq.f32.partialorder %v5783_v6, %v4247_v8  ;;  %v5807_v8 = vld [vmem:[#allocation34_spill] sm:$0xff] }
 0x21b   :  { %v1319_v16 = vsel %vm1318_vm3, %v1314_v29, inf  ;;  %v1357_v29 = vand.u32 65535, %v3982_v12  ;;  %v693_v26 = vcvt.f32.s32 %v5807_v8  ;;  %vm1406_vm3 = vcmp.eq.s32.totalorder %v4119_v52, 32 }
 0x21c   :  { %1320 = vmin.xlane.f32.xlu1 %v1319_v16 }
 0x21d   :  { %v4252_v31 = vpop.xlane.xlu1 %795  ;;  %v4254_v13 = vpop.xlane.xlu0 %1331  ;;  %v1359_v16 = vcvt.s32.f32 %v1357_v29 }
 0x21e   :  { %5784 = vst [vmem:[#allocation28_spill] sm:$0xff] %v4252_v31  ;;  %5785 = vst [vmem:[#allocation15_spill] sm:$0xff] %v4254_v13  ;;  %vm1333_vm4 = vcmp.eq.f32.partialorder %v3976_v9, %v4254_v13  ;;  %v1372_v9 = vand.u32 65535, %v4000_v7 }
 0x21f   :  { %v1334_v24 = vsel %vm1333_vm4, %v1329_v22, inf  ;;  %vm5588_vm4 = vcmask 458112  }
 0x220   :  { %1335 = vmin.xlane.f32.xlu1 %v1334_v24  ;;  %v1374_v24 = vcvt.s32.f32 %v1372_v9 }
 0x221   :  { %v4259_v53 = vpop.xlane.xlu1 %810  ;;  %v4261_v50 = vpop.xlane.xlu0 %1346 }
 0x222   :  { %5786 = vst [vmem:[#allocation29_spill] sm:$0xff] %v4259_v53  ;;  %5787 = vst [vmem:[#allocation30_spill] sm:$0xff] %v4261_v50  ;;  %vm1348_vm5 = vcmp.eq.f32.partialorder %v3994_v51, %v4261_v50  ;;  %v1387_v51 = vand.u32 65535, %v4008_v39 }
 0x223   :  { %v1349_v6 = vsel %vm1348_vm5, %v1344_v19, inf  ;;  %v5792_v19 = vld [vmem:[#allocation47_spill] sm:$0xff]  ;;  %vm1407_vm5 = vcmp.eq.s32.totalorder %v4127_v43, 32 }
 0x224   :  { %1350 = vmin.xlane.f32.xlu1 %v1349_v6  ;;  %v1389_v50 = vcvt.s32.f32 %v1387_v51 }
 0x225   :  { %v4266_v33 = vpop.xlane.xlu1 %825  ;;  %v4268_v28 = vpop.xlane.xlu0 %1361 }
 0x226   :  { %5788 = vst [vmem:[#allocation16_spill] sm:$0xff] %v4266_v33  ;;  %5789 = vst [vmem:[#allocation31_spill] sm:$0xff] %v4268_v28  ;;  %vm1363_vm6 = vcmp.eq.f32.partialorder %v4003_v15, %v4268_v28  ;;  %v5808_v33 = vld [vmem:[#allocation35_spill] sm:$0xff] }
 0x227   :  { %v1364_v22 = vsel %vm1363_vm6, %v1359_v16, inf  ;;  %v708_v8 = vcvt.f32.s32 %v5808_v33  ;;  %v4359_v33 = vshll.u32 %v693_v26, 16  ;;  %v5819_v26 = vld [vmem:[#allocation43_spill] sm:$0xff]  ;;  %vm5583_vm6 = vcmask 523712  }
 0x228   :  { %1365 = vmin.xlane.f32.xlu1 %v1364_v22  ;;  %v3006_v22 = vmov 0  }
 0x229   :  { %v4273_v32 = vpop.xlane.xlu1 %840  ;;  %v4275_v12 = vpop.xlane.xlu0 %1376  ;;  %2962 = vset.pattern.permute.xlu1 %v3006_v22  ;;  %2963 = vset.pattern.permute.xlu0 %v3006_v22  ;;  %5812 = vst [vmem:[#allocation35_spill] sm:$0xff] %v4359_v33  ;;  %v798_v33 = vcvt.f32.s32 %v5819_v26 }
 0x22a   :  { %5790 = vst [vmem:[#allocation17_spill] sm:$0xff] %v4273_v32  ;;  %5791 = vst [vmem:[#allocation32_spill] sm:$0xff] %v4275_v12  ;;  %vm1378_vm7 = vcmp.eq.f32.partialorder %v5792_v19, %v4275_v12 }
 0x22b   :  { %v1379_v6 = vsel %vm1378_vm7, %v1374_v24, inf  ;;  %vm1408_vm7 = vcmp.eq.s32.totalorder %v4135_v10, 32 }
 0x22c   :  { %1380 = vmin.xlane.f32.xlu1 %v1379_v6 }
 0x22d   :  { %v4280_v29 = vpop.xlane.xlu1 %855  ;;  %v4282_v7 = vpop.xlane.xlu0 %1391 }
 0x22e   :  { %5793 = vst [vmem:[#allocation33_spill] sm:$0xff] %v4280_v29  ;;  %5794 = vst [vmem:[#allocation18_spill] sm:$0xff] %v4282_v7  ;;  %vm1393_vm8 = vcmp.eq.f32.partialorder %v4024_v20, %v4282_v7 }
 0x22f   :  { %v1394_v15 = vsel %vm1393_vm8, %v1389_v50, inf  ;;  %v5802_v50 = vlaneseq  ;;  %vm5582_vm8 = vcmask 589312  }
 0x230   :  { %1395 = vmin.xlane.f32.xlu1 %v1394_v15  ;;  %v5804_v15 = vld [vmem:[#allocation22_spill] sm:$0xff] }
 0x231   :  { %v4286_v16 = vpop.xlane.xlu1 %870  ;;  %v4302_v6 = vshrl.u32 %v5802_v50, 7  ;;  %v1533_v7 = vadd.s32 4294967288, %v5804_v15  ;;  %v1540_v12 = vadd.s32 4294967280, %v5804_v15  ;;  %v1547_v22 = vadd.s32 4294967272, %v5804_v15 }
 0x232   :  { %5795 = vst [vmem:[#allocation19_spill] sm:$0xff] %v4286_v16  ;;  %v1589_v50 = vadd.s32 4294967224, %v5804_v15  ;;  %v1596_v2 = vadd.s32 4294967216, %v5804_v15  ;;  %v1603_v29 = vadd.s32 4294967208, %v5804_v15  ;;  %v1624_v47 = vadd.s32 4294967184, %v5804_v15 }
 0x233   :  { %5803 = vst [vmem:[#allocation66_spill] sm:$0xff] %v4302_v6  ;;  %v4317_v28 = vsub.s32 %v5804_v15, %v4302_v6  ;;  %v4329_v16 = vsub.s32 %v1547_v22, %v4302_v6 }
 0x234   :  { %v4351_v25 = vsub.s32 %v1589_v50, %v4302_v6  ;;  %v1631_v50 = vadd.s32 4294967176, %v5804_v15  ;;  %v4387_v55 = vsub.s32 %v1624_v47, %v4302_v6  ;;  %v888_v47 = vcvt.f32.s32 %v4037_v49 }
 0x235   :  { %v4288_v9 = vpop.xlane.xlu1 %885 }
 0x236   :  { %5796 = vst [vmem:[#allocation36_spill] sm:$0xff] %v4288_v9  ;;  %v4323_v9 = vsub.s32 %v1540_v12, %v4302_v6  ;;  %5822 = vst [vmem:[#allocation40_spill] sm:$0xff] %v4387_v55  ;;  %v4404_v55 = vshll.u32 %v798_v33, 16 }
 0x239   :  { %v4290_v39 = vpop.xlane.xlu1 %900 }
 0x23a   :  { %5797 = vst [vmem:[#allocation21_spill] sm:$0xff] %v4290_v39 }
 0x23d   :  { %v4292_v24 = vpop.xlane.xlu1 %915 }
 0x23e   :  { %5798 = vst [vmem:[#allocation39_spill] sm:$0xff] %v4292_v24  ;;  %v1554_v24 = vadd.s32 4294967264, %v5804_v15 }
 0x240   :  { %v4334_v32 = vsub.s32 %v1554_v24, %v4302_v6  ;;  %v5809_v24 = vld [vmem:[#allocation20_spill] sm:$0xff] }
 0x241   :  { %v4294_v19 = vpop.xlane.xlu1 %930  ;;  %1886 = vperm.xlu1 %2962, %v4203_v62   ;;  %v1568_v62 = vadd.s32 4294967248, %v5804_v15  ;;  %v723_v31 = vcvt.f32.s32 %v5809_v24  ;;  %v753_v24 = vcvt.f32.s32 %v5814_v54 }
 0x242   :  { %5799 = vst [vmem:[#allocation42_spill] sm:$0xff] %v4294_v19  ;;  %v1561_v19 = vadd.s32 4294967256, %v5804_v15 }
 0x243   :  { %v4340_v12 = vsub.s32 %v1568_v62, %v4302_v6  ;;  %v1617_v62 = vadd.s32 4294967192, %v5804_v15 }
 0x245   :  { %v4297_v51 = vpop.xlane.xlu1 %945  ;;  %v4384_v54 = vsub.s32 %v1617_v62, %v4302_v6  ;;  %v4401_v62 = vshll.u32 %v783_v41, 16 }
 0x246   :  { %5800 = vst [vmem:[#allocation47_spill] sm:$0xff] %v4297_v51  ;;  %v1575_v51 = vadd.s32 4294967240, %v5804_v15 }
 0x248   :  { %v4345_v22 = vsub.s32 %v1575_v51, %v4302_v6  ;;  %v4362_v51 = vsub.s32 %v1596_v2, %v4302_v6  ;;  %v5820_v2 = vld [vmem:[#allocation44_spill] sm:$0xff] }
 0x249   :  { %v4299_v20 = vpop.xlane.xlu1 %960  ;;  %v813_v46 = vcvt.f32.s32 %v5820_v2  ;;  %v873_v2 = vcvt.f32.s32 %v4032_v34  ;;  %v903_v34 = vcvt.f32.s32 %v4042_v36  ;;  %v948_v36 = vcvt.f32.s32 %v4057_v40 }
 0x24a   :  { %5801 = vst [vmem:[#allocation65_spill] sm:$0xff] %v4299_v20  ;;  %v1582_v20 = vadd.s32 4294967232, %v5804_v15 }
 0x24b   :  { %v4419_v33 = vshll.u32 %v873_v2, 16  ;;  %v4434_v2 = vsel %vm1403_vm12, 0, %v4095_v18  ;;  %v4450_v18 = vsel %vm1404_vm15, 0, %v4103_v23  ;;  %vm5565_vm12 = vcmask 654912  }
 0x24c   :  { %v4348_v53 = vsub.s32 %v1582_v20, %v4302_v6  ;;  %v4365_v20 = vsub.s32 %v1603_v29, %v4302_v6  ;;  %v828_v29 = vcvt.f32.s32 %v5821_v42  ;;  %v4395_v42 = vsub.s32 %v1631_v50, %v4302_v6  ;;  %5829 = vst [vmem:[#allocation44_spill] sm:$0xff] %v4434_v2 }
 0x24d   :  { %v4306_v39 = vpop.xlane.xlu1 %975  ;;  %vm5539_vm15 = vcmask 720512  }
 0x24e   :  { %5805 = vst [vmem:[#allocation67_spill] sm:$0xff] %v4306_v39  ;;  %v4320_v39 = vsub.s32 %v1533_v7, %v4302_v6  ;;  %v4337_v7 = vsub.s32 %v1561_v19, %v4302_v6  ;;  %v5810_v19 = vld [vmem:[#allocation37_spill] sm:$0xff]  ;;  %5813 = vst [vmem:[#allocation20_spill] sm:$0xff] %v4365_v20  ;;  %v4379_v20 = vshll.u32 %v723_v31, 16  ;;  %v4397_v31 = vshll.u32 %v753_v24, 16 }
 0x24f   :  { %v738_v5 = vcvt.f32.s32 %v5810_v19  ;;  %v768_v19 = vcvt.f32.s32 %v5815_v0  ;;  %v933_v24 = vcvt.f32.s32 %v4052_v48  ;;  %v5828_v48 = vld [vmem:[#allocation50_spill] sm:$0xff] }
 0x251   :  { %v4325_v13 = vpop.xlane.xlu1 %990  ;;  %v4441_v40 = vshll.u32 %v933_v24, 16  ;;  %v4459_v24 = vsel %vm1405_vm0, 0, %v4111_v35  ;;  %v4474_v35 = vsel %vm1406_vm3, 0, %v4119_v52  ;;  %vm1411_vm0 = vcmp.eq.s32.totalorder %v4159_v61, 32 }
 0x252   :  { %5806 = vst [vmem:[#allocation68_spill] sm:$0xff] %v4325_v13  ;;  %v1610_v13 = vadd.s32 4294967200, %v5804_v15  ;;  %v4381_v15 = vshll.u32 %v738_v5, 16  ;;  %v4399_v5 = vshll.u32 %v768_v19, 16  ;;  %v4424_v19 = vshll.u32 %v888_v47, 16  ;;  %5834 = vst [vmem:[#allocation50_spill] sm:$0xff] %v4474_v35 }
 0x253   :  { %vm5534_vm3 = vcmask 786112  }
 0x254   :  { %v4372_v1 = vsub.s32 %v1610_v13, %v4302_v6  ;;  %v5824_v13 = vld [vmem:[#allocation46_spill] sm:$0xff]  ;;  %v993_v6 = vcvt.f32.s32 %v4073_v4  ;;  %v4462_v4 = vshll.u32 %v948_v36, 16 }
 0x255   :  { %v4357_v59 = vpop.xlane.xlu1 %1005 }
 0x256   :  { %5811 = vst [vmem:[#allocation34_spill] sm:$0xff] %v4357_v59  ;;  %5817 = vst [vmem:[#allocation37_spill] sm:$0xff] %v4372_v1  ;;  %v4374_v59 = vshll.u32 %v708_v8, 16  ;;  %v843_v8 = vcvt.f32.s32 %v5824_v13  ;;  %v4408_v13 = vshll.u32 %v828_v29, 16  ;;  %v4428_v29 = vsel %vm1402_vm10, 0, %v4087_v3 }
 0x257   :  { %5827 = vst [vmem:[#allocation43_spill] sm:$0xff] %v4428_v29  ;;  %v4444_v3 = vsel %vm1401_vm13, 0, %v4079_v58  ;;  %v1544_v58 = vrot.slane %v4434_v2, %v4323_v9  ;;  %v1551_v2 = vrot.slane %v4450_v18, %v4329_v16  ;;  %vm1409_vm10 = vcmp.eq.s32.totalorder %v4143_v37, 32 }
 0x258   :  { %5818 = vst [vmem:[#allocation38_spill] sm:$0xff] %v4374_v59  ;;  %v5825_v59 = vld [vmem:[#allocation48_spill] sm:$0xff]  ;;  %v4415_v41 = vshll.u32 %v843_v8, 16  ;;  %v963_v8 = vcvt.f32.s32 %v5828_v48  ;;  %5831 = vst [vmem:[#allocation46_spill] sm:$0xff] %v4444_v3  ;;  %vm1410_vm13 = vcmp.eq.s32.totalorder %v4151_v14, 32 }
 0x259   :  { %v4389_v0 = vpop.xlane.xlu1 %1020  ;;  %v858_v26 = vcvt.f32.s32 %v5825_v59  ;;  %v5826_v59 = vld [vmem:[#allocation49_spill] sm:$0xff]  ;;  %5832 = vst [vmem:[#allocation48_spill] sm:$0xff] %v4450_v18 }
 0x25a   :  { %5823 = vst [vmem:[#allocation41_spill] sm:$0xff] %v4389_v0  ;;  %v4406_v0 = vshll.u32 %v813_v46, 16  ;;  %v918_v50 = vcvt.f32.s32 %v5826_v59  ;;  %v4437_v59 = vshll.u32 %v903_v34, 16  ;;  %5833 = vst [vmem:[#allocation49_spill] sm:$0xff] %v4459_v24  ;;  %v4464_v48 = vshll.u32 %v963_v8, 16 }
 0x25b   :  { %v4417_v49 = vshll.u32 %v858_v26, 16  ;;  %v978_v26 = vcvt.f32.s32 %v4067_v21  ;;  %v1537_v21 = vrot.slane %v4428_v29, %v4320_v39  ;;  %v1532_v29 = vrot.slane %v4444_v3, %v4317_v28 }
 0x25c   :  { %v4439_v47 = vshll.u32 %v918_v50, 16  ;;  %v1008_v50 = vcvt.f32.s32 %v4081_v56  ;;  %v1023_v56 = vcvt.f32.s32 %v4089_v44  ;;  %v1558_v8 = vrot.slane %v4459_v24, %v4334_v32 }
 0x25d   :  { %v4422_v46 = vpop.xlane.xlu1 %1035  ;;  %v4466_v23 = vshll.u32 %v978_v26, 16  ;;  %v1539_v36 = vsel %vm1538_vm9, %v1537_v21, %v1532_v29  ;;  %v4481_v26 = vsel %vm1407_vm5, 0, %v4127_v43  ;;  %v4486_v3 = vshll.u32 %v993_v6, 16 }
 0x25e   :  { %5830 = vst [vmem:[#allocation45_spill] sm:$0xff] %v4439_v47  ;;  %5835 = vst [vmem:[#allocation69_spill] sm:$0xff] %v4481_v26  ;;  %v4488_v18 = vshll.u32 %v1008_v50, 16  ;;  %v1546_v52 = vsel %vm1545_vm11, %v1544_v58, %v1539_v36  ;;  %v1038_v47 = vcvt.f32.s32 %v4097_v57  ;;  %v1053_v29 = vcvt.f32.s32 %v4105_v30 }
 0x25f   :  { %v1565_v21 = vrot.slane %v4474_v35, %v4337_v7  ;;  %v4496_v43 = vsel %vm1408_vm7, 0, %v4135_v10  ;;  %v1553_v6 = vsel %vm1552_vm14, %v1551_v2, %v1546_v52  ;;  %v1068_v50 = vcvt.f32.s32 %v4113_v38  ;;  %v5839_v10 = vld [vmem:[#allocation51_spill] sm:$0xff]  ;;  %v5841_v2 = vld [vmem:[#allocation52_spill] sm:$0xff] }
 0x260   :  { %5837 = vst [vmem:[#allocation71_spill] sm:$0xff] %v4496_v43  ;;  %v1572_v58 = vrot.slane %v4481_v26, %v4340_v12  ;;  %v4504_v57 = vsel %vm1409_vm10, 0, %v4143_v37  ;;  %v4506_v36 = vshll.u32 %v1023_v56, 16  ;;  %v1560_v30 = vsel %vm5590_vm1, %v1558_v8, %v1553_v6 }
 0x261   :  { %v4453_v34 = vpop.xlane.xlu1 %1050  ;;  %5838 = vst [vmem:[#allocation72_spill] sm:$0xff] %v4504_v57  ;;  %v1083_v24 = vcvt.f32.s32 %v4121_v11  ;;  %v1098_v35 = vcvt.f32.s32 %v5839_v10  ;;  %v1579_v38 = vrot.slane %v4496_v43, %v4345_v22  ;;  %v1113_v52 = vcvt.f32.s32 %v5841_v2  ;;  %v5845_v2 = vld [vmem:[#allocation53_spill] sm:$0xff] }
 0x262   :  { %v4517_v26 = vsel %vm1410_vm13, 0, %v4151_v14  ;;  %v4520_v37 = vshll.u32 %v1038_v47, 16  ;;  %v4522_v56 = vshll.u32 %v1053_v29, 16  ;;  %v1567_v11 = vsel %vm5589_vm2, %v1565_v21, %v1560_v30  ;;  %v5847_v29 = vld [vmem:[#allocation54_spill] sm:$0xff] }
 0x263   :  { %5842 = vst [vmem:[#allocation52_spill] sm:$0xff] %v4517_v26  ;;  %v1586_v8 = vrot.slane %v4504_v57, %v4348_v53  ;;  %v4527_v6 = vshll.u32 %v1068_v50, 16  ;;  %v1574_v10 = vsel %vm5588_vm4, %v1572_v58, %v1567_v11  ;;  %v1128_v43 = vcvt.f32.s32 %v5845_v2 }
 0x264   :  { %5843 = vst [vmem:[#allocation73_spill] sm:$0xff] %v4522_v56  ;;  %vm1412_vm5 = vcmp.eq.s32.totalorder %v4167_v27, 32  ;;  %vm5535_vm7 = vcmask 851712   ;;  %v1593_v14 = vrot.slane %v4517_v26, %v4351_v25  ;;  %v4535_v47 = vsel %vm1411_vm0, 0, %v4159_v61  ;;  %v5853_v26 = vld [vmem:[#allocation55_spill] sm:$0xff] }
 0x265   :  { %v4484_v44 = vpop.xlane.xlu1 %1065  ;;  %5844 = vst [vmem:[#allocation74_spill] sm:$0xff] %v4527_v6  ;;  %5846 = vst [vmem:[#allocation53_spill] sm:$0xff] %v4535_v47  ;;  %v1143_v21 = vcvt.f32.s32 %v5847_v29  ;;  %vm1413_vm10 = vcmp.eq.s32.totalorder %v4175_v63, 32  ;;  %v4541_v50 = vshll.u32 %v1083_v24, 16  ;;  %v1581_v58 = vsel %vm5583_vm6, %v1579_v38, %v1574_v10  ;;  %v5857_v10 = vld [vmem:[#allocation60_spill] sm:$0xff] }
 0x266   :  { %5836 = vst [vmem:[#allocation70_spill] sm:$0xff] %v4484_v44  ;;  %v4544_v11 = vshll.u32 %v1098_v35, 16  ;;  %v4546_v2 = vshll.u32 %v1113_v52, 16  ;;  %vm5536_vm13 = vcmask 917312   ;;  %v1588_v57 = vsel %vm5582_vm8, %v1586_v8, %v1581_v58 }
 0x267   :  { %5849 = vst [vmem:[#allocation75_spill] sm:$0xff] %v4541_v50  ;;  %v4550_v61 = vsel %vm1412_vm5, 0, %v4167_v27  ;;  %v1158_v29 = vcvt.f32.s32 %v5853_v26  ;;  %vm1414_vm0 = vcmp.eq.s32.totalorder %v4183_v17, 32  ;;  %v1600_v24 = vrot.slane %v4535_v47, %v4362_v51 }
 0x268   :  { %5850 = vst [vmem:[#allocation76_spill] sm:$0xff] %v4544_v11  ;;  %5851 = vst [vmem:[#allocation77_spill] sm:$0xff] %v4546_v2  ;;  %v4557_v50 = vsel %vm1413_vm10, 0, %v4175_v63  ;;  %v1173_v35 = vcvt.f32.s32 %v4169_v45  ;;  %v707_v38 = vcvt.f32.s32 %v4210_v60  ;;  %v1595_v52 = vsel %vm5565_vm12, %v1593_v14, %v1588_v57  ;;  %v5859_v2 = vld [vmem:[#allocation20_spill] sm:$0xff]  ;;  %v5861_v45 = vld [vmem:[#allocation58_spill] sm:$0xff] }
 0x269   :  { %v4511_v44 = vpop.xlane.xlu1 %1080  ;;  %5852 = vst [vmem:[#allocation78_spill] sm:$0xff] %v4550_v61  ;;  %5854 = vst [vmem:[#allocation55_spill] sm:$0xff] %v4557_v50  ;;  %v4562_v8 = vshll.u32 %v1128_v43, 16  ;;  %v4564_v27 = vshll.u32 %v1143_v21, 16  ;;  %v692_v26 = vcvt.f32.s32 %v5857_v10  ;;  %vm5587_vm5 = vcmask 982912   ;;  %v5862_v60 = vld [vmem:[#allocation64_spill] sm:$0xff] }
 0x26a   :  { %5840 = vst [vmem:[#allocation51_spill] sm:$0xff] %v4511_v44  ;;  %v1607_v47 = vrot.slane %v4550_v61, %v5859_v2  ;;  %v4572_v63 = vsel %vm1414_vm0, 0, %v4183_v17  ;;  %vm1415_vm10 = vcmp.eq.s32.totalorder %v5861_v45, 32  ;;  %v722_v11 = vcvt.f32.s32 %v5862_v60  ;;  %v5863_v57 = vld [vmem:[#allocation56_spill] sm:$0xff]  ;;  %v5864_v21 = vld [vmem:[#allocation57_spill] sm:$0xff]  ;;  %v5868_v17 = vld [vmem:[#allocation38_spill] sm:$0xff] }
 0x26b   :  { %5855 = vst [vmem:[#allocation79_spill] sm:$0xff] %v4562_v8  ;;  %5856 = vst [vmem:[#allocation80_spill] sm:$0xff] %v4564_v27  ;;  %v1614_v43 = vrot.slane %v4557_v50, %v4372_v1  ;;  %v1188_v14 = vcvt.f32.s32 %v5863_v57  ;;  %v1203_v10 = vcvt.f32.s32 %v5864_v21  ;;  %v5865_v27 = vld [vmem:[#allocation23_spill] sm:$0xff]  ;;  %v4584_v61 = vshll.u32 %v1173_v35, 16  ;;  %v5871_v21 = vld [vmem:[#allocation12_spill] sm:$0xff] }
 0x26c   :  { %5860 = vst [vmem:[#allocation20_spill] sm:$0xff] %v4572_v63  ;;  %v737_v8 = vcvt.f32.s32 %v5865_v27  ;;  %v710_v6 = vadd.s32 %v5868_v17, %v707_v38  ;;  %vm5564_vm0 = vcmask 1048512   ;;  %v1621_v60 = vrot.slane %v4572_v63, %v4384_v54  ;;  %v5870_v57 = vld [vmem:[#allocation35_spill] sm:$0xff]  ;;  %v5874_v38 = vld [vmem:[#allocation13_spill] sm:$0xff] }
 0x26d   :  { %v4539_v30 = vpop.xlane.xlu1 %1095  ;;  %5867 = vst [vmem:[#allocation64_spill] sm:$0xff] %v4584_v61  ;;  %v4590_v50 = vsel %vm1415_vm10, 0, %v5861_v45  ;;  %v695_v56 = vadd.s32 %v5870_v57, %v692_v26  ;;  %v752_v44 = vcvt.f32.s32 %v5871_v21  ;;  %v767_v17 = vcvt.f32.s32 %v5874_v38  ;;  %v5875_v57 = vld [vmem:[#allocation40_spill] sm:$0xff]  ;;  %v5876_v61 = vld [vmem:[#allocation61_spill] sm:$0xff]  ;;  %v5882_v38 = vld [vmem:[#allocation63_spill] sm:$0xff] }
 0x26e   :  { %5848 = vst [vmem:[#allocation54_spill] sm:$0xff] %v4539_v30  ;;  %v4582_v30 = vshll.u32 %v1158_v29, 16  ;;  %5869 = vst [vmem:[#allocation56_spill] sm:$0xff] %v4590_v50  ;;  %v4601_v63 = vshll.u32 %v1188_v14, 16  ;;  %v4603_v45 = vshll.u32 %v1203_v10, 16  ;;  %v740_v26 = vadd.s32 %v4381_v15, %v737_v8  ;;  %v5879_v10 = vld [vmem:[#allocation62_spill] sm:$0xff] }
 0x26f   :  { %v1628_v21 = vrot.slane %v4590_v50, %v5875_v57  ;;  %vm1418_vm10 = vcmp.eq.s32.totalorder %v710_v6, 32  ;;  %v1635_v15 = vrot.slane %v5879_v10, %v4395_v42  ;;  %v5886_v10 = vld [vmem:[#allocation11_spill] sm:$0xff] }
 0x270   :  { %5866 = vst [vmem:[#allocation58_spill] sm:$0xff] %v4582_v30 }
 0x271   :  { %v4567_v58 = vpop.xlane.xlu1 %1110 }
 0x272   :  { %5858 = vst [vmem:[#allocation60_spill] sm:$0xff] %v4567_v58  ;;  %v1602_v58 = vsel %vm5539_vm15, %v1600_v24, %v1595_v52  ;;  %v5873_v24 = vld [vmem:[#allocation59_spill] sm:$0xff]  ;;  %v725_v52 = vadd.s32 %v4379_v20, %v722_v11  ;;  %v755_v11 = vadd.s32 %v4397_v31, %v752_v44 }
 0x273   :  { %v1609_v29 = vsel %vm5534_vm3, %v1607_v47, %v1602_v58  ;;  %v1218_v35 = vcvt.f32.s32 %v5873_v24  ;;  %v5877_v47 = vld [vmem:[#allocation27_spill] sm:$0xff]  ;;  %vm1417_vm3 = vcmp.eq.s32.totalorder %v695_v56, 32  ;;  %v4620_v24 = vsel %vm1418_vm10, 0, %v710_v6 }
 0x274   :  { %v1616_v30 = vsel %vm5535_vm7, %v1614_v43, %v1609_v29  ;;  %v782_v58 = vcvt.f32.s32 %v5877_v47  ;;  %v5878_v43 = vld [vmem:[#allocation28_spill] sm:$0xff]  ;;  %vm1419_vm7 = vcmp.eq.s32.totalorder %v725_v52, 32  ;;  %5881 = vst [vmem:[#allocation38_spill] sm:$0xff] %v4620_v24  ;;  %v1248_v47 = vcvt.f32.s32 %v5882_v38 }
 0x275   :  { %v4594_v27 = vpop.xlane.xlu1 %1125  ;;  %v1623_v20 = vsel %vm5536_vm13, %v1621_v60, %v1616_v30  ;;  %v797_v14 = vcvt.f32.s32 %v5878_v43  ;;  %v4617_v8 = vshll.u32 %v1218_v35, 16  ;;  %vm1420_vm13 = vcmp.eq.s32.totalorder %v740_v26, 32  ;;  %v5883_v30 = vld [vmem:[#allocation29_spill] sm:$0xff] }
 0x276   :  { %5872 = vst [vmem:[#allocation57_spill] sm:$0xff] %v4594_v27  ;;  %v1233_v27 = vcvt.f32.s32 %v5876_v61  ;;  %v770_v61 = vadd.s32 %v4399_v5, %v767_v17  ;;  %v812_v60 = vcvt.f32.s32 %v5883_v30  ;;  %v4624_v31 = vsel %vm1417_vm3, 0, %v695_v56 }
 0x277   :  { %5880 = vst [vmem:[#allocation23_spill] sm:$0xff] %v4617_v8  ;;  %5884 = vst [vmem:[#allocation35_spill] sm:$0xff] %v4624_v31  ;;  %v785_v43 = vadd.s32 %v4401_v62, %v782_v58  ;;  %v1630_v50 = vsel %vm5587_vm5, %v1628_v21, %v1623_v20  ;;  %v4630_v35 = vsel %vm1419_vm7, 0, %v725_v52  ;;  %v1263_v8 = vcvt.f32.s32 %v5886_v10 }
 0x278   :  { %v4626_v44 = vshll.u32 %v1233_v27, 16  ;;  %5885 = vst [vmem:[#allocation12_spill] sm:$0xff] %v4630_v35  ;;  %vm1421_vm15 = vcmp.eq.s32.totalorder %v755_v11, 32  ;;  %v800_v5 = vadd.s32 %v4404_v55, %v797_v14  ;;  %v1645_v17 = vrot.slane %v4620_v24, %v4320_v39  ;;  %v5888_v27 = vld [vmem:[#allocation16_spill] sm:$0xff] }
 0x279   :  { %v4613_v29 = vpop.xlane.xlu1 %1140  ;;  %v4638_v56 = vsel %vm1420_vm13, 0, %v740_v26  ;;  %vm1422_vm3 = vcmp.eq.s32.totalorder %v770_v61, 32  ;;  %v827_v38 = vcvt.f32.s32 %v5888_v27  ;;  %v1641_v62 = vrot.slane %v4624_v31, %v4317_v28  ;;  %v5891_v26 = vld [vmem:[#allocation17_spill] sm:$0xff] }
 0x27a   :  { %5887 = vst [vmem:[#allocation59_spill] sm:$0xff] %v4638_v56  ;;  %v4643_v52 = vshll.u32 %v1248_v47, 16  ;;  %v815_v21 = vadd.s32 %v4406_v0, %v812_v60  ;;  %v4647_v58 = vsel %vm5564_vm0, %v1635_v15, %v1630_v50  ;;  %v1650_v55 = vrot.slane %v4630_v35, %v4323_v9  ;;  %v5893_v47 = vld [vmem:[#allocation33_spill] sm:$0xff]  ;;  %v5894_v60 = vld [vmem:[#allocation24_spill] sm:$0xff] }
 0x27b   :  { %5889 = vst [vmem:[#allocation13_spill] sm:$0xff] %v4647_v58  ;;  %v4651_v20 = vsel %vm1421_vm15, 0, %v755_v11  ;;  %vm1423_vm7 = vcmp.eq.s32.totalorder %v785_v43, 32  ;;  %v842_v14 = vcvt.f32.s32 %v5891_v26  ;;  %v1655_v10 = vrot.slane %v4638_v56, %v4329_v16 }
 0x27c   :  { %5890 = vst [vmem:[#allocation40_spill] sm:$0xff] %v4651_v20  ;;  %v4656_v30 = vsel %vm1422_vm3, 0, %v770_v61  ;;  %vm1424_vm13 = vcmp.eq.s32.totalorder %v800_v5, 32  ;;  %v857_v27 = vcvt.f32.s32 %v5893_v47  ;;  %v1646_v50 = vsel %vm1538_vm9, %v1645_v17, %v1641_v62  ;;  %v5896_v61 = vld [vmem:[#allocation19_spill] sm:$0xff] }
 0x27d   :  { %v4634_v6 = vpop.xlane.xlu1 %1155  ;;  %5892 = vst [vmem:[#allocation61_spill] sm:$0xff] %v4656_v30  ;;  %v4662_v15 = vshll.u32 %v1263_v8, 16  ;;  %v1278_v11 = vcvt.f32.s32 %v5894_v60  ;;  %v830_v35 = vadd.s32 %v4408_v13, %v827_v38  ;;  %v1660_v26 = vrot.slane %v4651_v20, %v4334_v32  ;;  %v5898_v13 = vld [vmem:[#allocation25_spill] sm:$0xff]  ;;  %v5899_v60 = vld [vmem:[#allocation26_spill] sm:$0xff] }
 0x27e   :  { %v4668_v31 = vsel %vm1423_vm7, 0, %v785_v43  ;;  %vm1425_vm15 = vcmp.eq.s32.totalorder %v815_v21, 32  ;;  %v872_v56 = vcvt.f32.s32 %v5896_v61  ;;  %v1651_v47 = vsel %vm1545_vm11, %v1650_v55, %v1646_v50  ;;  %v5900_v50 = vld [vmem:[#allocation14_spill] sm:$0xff] }
 0x27f   :  { %5895 = vst [vmem:[#allocation27_spill] sm:$0xff] %v4668_v31  ;;  %v1665_v24 = vrot.slane %v4656_v30, %v4337_v7  ;;  %v4674_v17 = vsel %vm1424_vm13, 0, %v800_v5  ;;  %v845_v8 = vadd.s32 %v4415_v41, %v842_v14  ;;  %v1656_v62 = vsel %vm1552_vm14, %v1655_v10, %v1651_v47  ;;  %v5902_v14 = vld [vmem:[#allocation15_spill] sm:$0xff] }
 0x280   :  { %5897 = vst [vmem:[#allocation28_spill] sm:$0xff] %v4674_v17  ;;  %v1293_v38 = vcvt.f32.s32 %v5898_v13  ;;  %v1308_v20 = vcvt.f32.s32 %v5899_v60  ;;  %v860_v43 = vadd.s32 %v4417_v49, %v857_v27  ;;  %v1670_v55 = vrot.slane %v4668_v31, %v4340_v12  ;;  %v5904_v13 = vld [vmem:[#allocation30_spill] sm:$0xff] }
 0x281   :  { %v4659_v0 = vpop.xlane.xlu1 %1170  ;;  %v1323_v61 = vcvt.f32.s32 %v5900_v50  ;;  %v4686_v30 = vsel %vm1425_vm15, 0, %v815_v21  ;;  %vm1426_vm10 = vcmp.eq.s32.totalorder %v830_v35, 32  ;;  %v1661_v41 = vsel %vm5590_vm1, %v1660_v26, %v1656_v62  ;;  %v5906_v26 = vld [vmem:[#allocation36_spill] sm:$0xff] }
 0x282   :  { %5901 = vst [vmem:[#allocation63_spill] sm:$0xff] %v4686_v30  ;;  %v1675_v5 = vrot.slane %v4674_v17, %v4345_v22  ;;  %v1338_v10 = vcvt.f32.s32 %v5902_v14  ;;  %v875_v47 = vadd.s32 %v4419_v33, %v872_v56  ;;  %v4693_v49 = vshll.u32 %v1278_v11, 16 }
 0x283   :  { %v1666_v27 = vsel %vm5589_vm2, %v1665_v24, %v1661_v41  ;;  %v1353_v60 = vcvt.f32.s32 %v5904_v13  ;;  %vm1427_vm3 = vcmp.eq.s32.totalorder %v845_v8, 32  ;;  %v1680_v21 = vrot.slane %v4686_v30, %v4348_v53 }
 0x284   :  { %5903 = vst [vmem:[#allocation29_spill] sm:$0xff] %v4693_v49  ;;  %v4699_v50 = vsel %vm1426_vm10, 0, %v830_v35  ;;  %vm1428_vm7 = vcmp.eq.s32.totalorder %v860_v43, 32  ;;  %v887_v62 = vcvt.f32.s32 %v5906_v26  ;;  %v4704_v14 = vshll.u32 %v1293_v38, 16  ;;  %v5912_v26 = vld [vmem:[#allocation31_spill] sm:$0xff] }
 0x285   :  { %v4681_v58 = vpop.xlane.xlu1 %1185  ;;  %5905 = vst [vmem:[#allocation11_spill] sm:$0xff] %v4699_v50  ;;  %v4706_v33 = vshll.u32 %v1308_v20, 16  ;;  %v1671_v56 = vsel %vm5588_vm4, %v1670_v55, %v1666_v27  ;;  %v4709_v24 = vshll.u32 %v1323_v61, 16  ;;  %v4712_v41 = vshll.u32 %v1338_v10, 16  ;;  %v5914_v20 = vld [vmem:[#allocation42_spill] sm:$0xff]  ;;  %v5916_v10 = vld [vmem:[#allocation47_spill] sm:$0xff] }
 0x286   :  { %5907 = vst [vmem:[#allocation16_spill] sm:$0xff] %v4704_v14  ;;  %v1676_v11 = vsel %vm5583_vm6, %v1675_v5, %v1671_v56  ;;  %v4714_v13 = vsel %vm1427_vm3, 0, %v845_v8  ;;  %vm1429_vm13 = vcmp.eq.s32.totalorder %v875_v47, 32  ;;  %v1685_v35 = vrot.slane %v4699_v50, %v4351_v25 }
 0x287   :  { %5908 = vst [vmem:[#allocation17_spill] sm:$0xff] %v4706_v33  ;;  %5909 = vst [vmem:[#allocation33_spill] sm:$0xff] %v4709_v24  ;;  %v1368_v30 = vcvt.f32.s32 %v5912_v26  ;;  %v4719_v38 = vsel %vm1428_vm7, 0, %v860_v43  ;;  %v932_v17 = vcvt.f32.s32 %v5914_v20  ;;  %v1681_v55 = vsel %vm5582_vm8, %v1680_v21, %v1676_v11  ;;  %v5917_v26 = vld [vmem:[#allocation21_spill] sm:$0xff]  ;;  %v5919_v20 = vld [vmem:[#allocation32_spill] sm:$0xff] }
 0x288   :  { %5910 = vst [vmem:[#allocation24_spill] sm:$0xff] %v4712_v41  ;;  %5911 = vst [vmem:[#allocation19_spill] sm:$0xff] %v4714_v13  ;;  %v4723_v61 = vshll.u32 %v1353_v60, 16  ;;  %v890_v5 = vadd.s32 %v4424_v19, %v887_v62  ;;  %v947_v27 = vcvt.f32.s32 %v5916_v10  ;;  %v1690_v56 = vrot.slane %v4714_v13, %v4362_v51  ;;  %v5918_v41 = vld [vmem:[#allocation65_spill] sm:$0xff]  ;;  %v5920_v21 = vld [vmem:[#allocation18_spill] sm:$0xff] }
 0x289   :  { %v4702_v31 = vpop.xlane.xlu1 %1200  ;;  %5913 = vst [vmem:[#allocation25_spill] sm:$0xff] %v4719_v38  ;;  %v4731_v50 = vsel %vm1429_vm13, 0, %v875_v47  ;;  %v902_v43 = vcvt.f32.s32 %v5917_v26  ;;  %v962_v24 = vcvt.f32.s32 %v5918_v41  ;;  %v1383_v33 = vcvt.f32.s32 %v5919_v20  ;;  %v5921_v62 = vld [vmem:[#allocation67_spill] sm:$0xff]  ;;  %v5922_v13 = vld [vmem:[#allocation68_spill] sm:$0xff]  ;;  %v5923_v20 = vld [vmem:[#allocation34_spill] sm:$0xff] }
 0x28a   :  { %5915 = vst [vmem:[#allocation26_spill] sm:$0xff] %v4723_v61  ;;  %v1695_v60 = vrot.slane %v4719_v38, %v5859_v2  ;;  %v1398_v19 = vcvt.f32.s32 %v5920_v21  ;;  %v977_v11 = vcvt.f32.s32 %v5921_v62  ;;  %v1686_v10 = vsel %vm5565_vm12, %v1685_v35, %v1681_v55  ;;  %v5925_v55 = vld [vmem:[#allocation41_spill] sm:$0xff] }
 0x28b   :  { %v4741_v61 = vshll.u32 %v1368_v30, 16  ;;  %v935_v47 = vadd.s32 %v4441_v40, %v932_v17  ;;  %v992_v14 = vcvt.f32.s32 %v5922_v13  ;;  %v1700_v41 = vrot.slane %v4731_v50, %v4372_v1 }
 0x28c   :  { %vm1430_vm15 = vcmp.eq.s32.totalorder %v890_v5, 32  ;;  %v950_v26 = vadd.s32 %v4462_v4, %v947_v27  ;;  %v1007_v38 = vcvt.f32.s32 %v5923_v20  ;;  %vm5924_vm10 = vcmask 720512  }
 0x28d   :  { %v4727_v8 = vpop.xlane.xlu1 %1215  ;;  %v1691_v21 = vsel %vm5924_vm10, %v1690_v56, %v1686_v10  ;;  %v905_v35 = vadd.s32 %v4437_v59, %v902_v43  ;;  %v965_v30 = vadd.s32 %v4464_v48, %v962_v24  ;;  %v1022_v40 = vcvt.f32.s32 %v5925_v55  ;;  %v5934_v10 = vld [vmem:[#allocation73_spill] sm:$0xff] }
 0x28e   :  { %v4755_v17 = vshll.u32 %v1383_v33, 16  ;;  %vm5926_vm3 = vcmask 786112   ;;  %v4758_v62 = vshll.u32 %v1398_v19, 16  ;;  %v980_v4 = vadd.s32 %v4466_v23, %v977_v11 }
 0x28f   :  { %v1696_v13 = vsel %vm5926_vm3, %v1695_v60, %v1691_v21  ;;  %v4761_v27 = vsel %vm1430_vm15, 0, %v890_v5  ;;  %vm1433_vm7 = vcmp.eq.s32.totalorder %v935_v47, 32  ;;  %v995_v20 = vadd.s32 %v4486_v3, %v992_v14  ;;  %v5928_v5 = vld [vmem:[#allocation70_spill] sm:$0xff] }
 0x290   :  { %v1037_v56 = vcvt.f32.s32 %v4422_v46  ;;  %vm5927_vm13 = vcmask 851712   ;;  %vm1434_vm10 = vcmp.eq.s32.totalorder %v950_v26, 32  ;;  %v1010_v48 = vadd.s32 %v4488_v18, %v1007_v38  ;;  %v5929_v46 = vld [vmem:[#allocation39_spill] sm:$0xff] }
 0x291   :  { %v4749_v49 = vpop.xlane.xlu1 %1230  ;;  %v4766_v59 = vsel %vm5927_vm13, %v1700_v41, %v1696_v13  ;;  %v1052_v33 = vcvt.f32.s32 %v4453_v34  ;;  %vm1431_vm3 = vcmp.eq.s32.totalorder %v905_v35, 32  ;;  %vm1435_vm0 = vcmp.eq.s32.totalorder %v965_v30, 32  ;;  %v5932_v34 = vld [vmem:[#allocation51_spill] sm:$0xff] }
 0x292   :  { %v1025_v23 = vadd.s32 %v4506_v36, %v1022_v40  ;;  %v1067_v43 = vcvt.f32.s32 %v5928_v5  ;;  %v1705_v3 = vrot.slane %v4761_v27, %v4384_v54  ;;  %v917_v14 = vcvt.f32.s32 %v5929_v46  ;;  %v5937_v40 = vld [vmem:[#allocation54_spill] sm:$0xff]  ;;  %v5938_v5 = vld [vmem:[#allocation45_spill] sm:$0xff]  ;;  %v5941_v46 = vld [vmem:[#allocation75_spill] sm:$0xff] }
 0x293   :  { %v4777_v60 = vsel %vm1433_vm7, 0, %v935_v47  ;;  %vm1436_vm15 = vcmp.eq.s32.totalorder %v980_v4, 32  ;;  %v4779_v19 = vsel %vm1434_vm10, 0, %v950_v26  ;;  %vm1437_vm13 = vcmp.eq.s32.totalorder %v995_v20, 32  ;;  %v5936_v47 = vld [vmem:[#allocation74_spill] sm:$0xff] }
 0x294   :  { %5930 = vst [vmem:[#allocation14_spill] sm:$0xff] %v4777_v60  ;;  %5931 = vst [vmem:[#allocation15_spill] sm:$0xff] %v4779_v19  ;;  %v1040_v18 = vadd.s32 %v4520_v37, %v1037_v56  ;;  %v1082_v38 = vcvt.f32.s32 %v5932_v34  ;;  %v4783_v11 = vsel %vm1431_vm3, 0, %v905_v35  ;;  %v4785_v36 = vsel %vm1435_vm0, 0, %v965_v30 }
 0x295   :  { %v4770_v24 = vpop.xlane.xlu1 %1245  ;;  %5933 = vst [vmem:[#allocation30_spill] sm:$0xff] %v4785_v36  ;;  %vm1438_vm12 = vcmp.eq.s32.totalorder %v1010_v48, 32  ;;  %v1055_v41 = vadd.s32 %v5934_v10, %v1052_v33  ;;  %v4790_v55 = vsel %vm1436_vm15, 0, %v980_v4  ;;  %vm1439_vm7 = vcmp.eq.s32.totalorder %v1025_v23, 32  ;;  %v5943_v10 = vld [vmem:[#allocation60_spill] sm:$0xff] }
 0x296   :  { %5935 = vst [vmem:[#allocation36_spill] sm:$0xff] %v4790_v55  ;;  %v1070_v26 = vadd.s32 %v5936_v47, %v1067_v43  ;;  %v1097_v13 = vcvt.f32.s32 %v5937_v40  ;;  %v920_v37 = vadd.s32 %v5938_v5, %v917_v14  ;;  %v1720_v35 = vrot.slane %v4777_v60, %v4317_v28  ;;  %v5944_v5 = vld [vmem:[#allocation76_spill] sm:$0xff] }
 0x297   :  { %v1724_v30 = vrot.slane %v4779_v19, %v4320_v39  ;;  %v4799_v56 = vsel %vm1437_vm13, 0, %v995_v20  ;;  %v1729_v33 = vrot.slane %v4785_v36, %v4323_v9  ;;  %v4803_v4 = vsel %vm1438_vm12, 0, %v1010_v48  ;;  %v5945_v36 = vld [vmem:[#allocation57_spill] sm:$0xff] }
 0x298   :  { %5939 = vst [vmem:[#allocation31_spill] sm:$0xff] %v4799_v56  ;;  %5940 = vst [vmem:[#allocation42_spill] sm:$0xff] %v4803_v4  ;;  %vm1440_vm0 = vcmp.eq.s32.totalorder %v1040_v18, 32  ;;  %v1085_v43 = vadd.s32 %v5941_v46, %v1082_v38  ;;  %v1734_v34 = vrot.slane %v4790_v55, %v4329_v16  ;;  %v4808_v14 = vsel %vm1439_vm7, 0, %v1025_v23 }
 0x299   :  { %v4788_v21 = vpop.xlane.xlu1 %1260  ;;  %5942 = vst [vmem:[#allocation47_spill] sm:$0xff] %v4808_v14  ;;  %vm1441_vm10 = vcmp.eq.s32.totalorder %v1055_v41, 32  ;;  %v1112_v47 = vcvt.f32.s32 %v5943_v10  ;;  %v1739_v20 = vrot.slane %v4799_v56, %v4334_v32  ;;  %vm1442_vm3 = vcmp.eq.s32.totalorder %v1070_v26, 32 }
 0x29a   :  { %v1100_v48 = vadd.s32 %v5944_v5, %v1097_v13  ;;  %v1127_v60 = vcvt.f32.s32 %v5945_v36  ;;  %v1710_v38 = vrot.slane %v4783_v11, %v5875_v57  ;;  %v1725_v46 = vsel %vm1538_vm9, %v1724_v30, %v1720_v35  ;;  %v5946_v5 = vld [vmem:[#allocation77_spill] sm:$0xff] }
 0x29b   :  { %v1744_v23 = vrot.slane %v4803_v4, %v4337_v7  ;;  %v4822_v55 = vsel %vm1440_vm0, 0, %v1040_v18  ;;  %v1730_v10 = vsel %vm1545_vm11, %v1729_v33, %v1725_v46  ;;  %v1749_v56 = vrot.slane %v4808_v14, %v4340_v12  ;;  %v5947_v46 = vld [vmem:[#allocation79_spill] sm:$0xff] }
 0x29c   :  { %v4827_v19 = vsel %vm1441_vm10, 0, %v1055_v41  ;;  %vm1443_vm12 = vcmp.eq.s32.totalorder %v1085_v43, 32  ;;  %vm1432_vm15 = vcmp.eq.s32.totalorder %v920_v37, 32  ;;  %v1735_v36 = vsel %vm1552_vm14, %v1734_v34, %v1730_v10 }
 0x29d   :  { %v4811_v40 = vpop.xlane.xlu1 %1275  ;;  %v4830_v13 = vsel %vm1442_vm3, 0, %v1070_v26  ;;  %v1115_v35 = vadd.s32 %v5946_v5, %v1112_v47  ;;  %v1740_v18 = vsel %vm5590_vm1, %v1739_v20, %v1735_v36  ;;  %v1754_v33 = vrot.slane %v4822_v55, %v4345_v22 }
 0x29e   :  { %vm1444_vm13 = vcmp.eq.s32.totalorder %v1100_v48, 32  ;;  %v1130_v14 = vadd.s32 %v5947_v46, %v1127_v60  ;;  %v1745_v41 = vsel %vm5589_vm2, %v1744_v23, %v1740_v18  ;;  %v1759_v4 = vrot.slane %v4827_v19, %v4348_v53 }
 0x29f   :  { %v4842_v34 = vsel %vm1443_vm12, 0, %v1085_v43  ;;  %v1187_v26 = vcvt.f32.s32 %v4681_v58  ;;  %vm5948_vm7 = vcmask 917312   ;;  %v4847_v10 = vsel %vm1432_vm15, 0, %v920_v37 }
 0x2a0   :  { %v1706_v47 = vsel %vm5948_vm7, %v1705_v3, %v4766_v59  ;;  %v1750_v20 = vsel %vm5588_vm4, %v1749_v56, %v1745_v41  ;;  %v1764_v36 = vrot.slane %v4830_v13, %v4351_v25  ;;  %v4852_v60 = vsel %vm1444_vm13, 0, %v1100_v48 }
 0x2a1   :  { %v4833_v30 = vpop.xlane.xlu1 %1290  ;;  %vm1445_vm0 = vcmp.eq.s32.totalorder %v1115_v35, 32  ;;  %v1142_v23 = vcvt.f32.s32 %v4613_v29  ;;  %v1202_v43 = vcvt.f32.s32 %v4702_v31  ;;  %v1755_v58 = vsel %vm5583_vm6, %v1754_v33, %v1750_v20  ;;  %v5952_v20 = vld [vmem:[#allocation64_spill] sm:$0xff] }
 0x2a2   :  { %v1769_v59 = vrot.slane %v4842_v34, %v4362_v51  ;;  %vm1446_vm10 = vcmp.eq.s32.totalorder %v1130_v14, 32  ;;  %v1172_v3 = vcvt.f32.s32 %v4659_v0  ;;  %v1760_v37 = vsel %vm5582_vm8, %v1759_v4, %v1755_v58  ;;  %v5950_v4 = vld [vmem:[#allocation80_spill] sm:$0xff] }
 0x2a3   :  { %v1190_v56 = vadd.s32 %v4601_v63, %v1187_v26  ;;  %v1217_v48 = vcvt.f32.s32 %v4727_v8  ;;  %v4864_v18 = vsel %vm5587_vm5, %v1710_v38, %v1706_v47  ;;  %vm5949_vm3 = vcmask 654912  }
 0x2a4   :  { %v1765_v31 = vsel %vm5949_vm3, %v1764_v36, %v1760_v37  ;;  %v1774_v33 = vrot.slane %v4852_v60, %v5859_v2  ;;  %v4871_v46 = vsel %vm1445_vm0, 0, %v1115_v35  ;;  %v4873_v0 = vsel %vm1446_vm10, 0, %v1130_v14  ;;  %v5953_v14 = vld [vmem:[#allocation23_spill] sm:$0xff] }
 0x2a5   :  { %v1306_v5 = vpop.xlane.xlu1 %1305  ;;  %v1145_v41 = vadd.s32 %v5950_v4, %v1142_v23  ;;  %v1205_v63 = vadd.s32 %v4603_v45, %v1202_v43  ;;  %v1232_v8 = vcvt.f32.s32 %v4749_v49  ;;  %vm5951_vm12 = vcmask 720512  }
 0x2a6   :  { %v1770_v47 = vsel %vm5951_vm12, %v1769_v59, %v1765_v31  ;;  %v1175_v36 = vadd.s32 %v5952_v20, %v1172_v3  ;;  %v1247_v58 = vcvt.f32.s32 %v4770_v24  ;;  %v1157_v35 = vcvt.f32.s32 %v4634_v6 }
 0x2a7   :  { %vm1450_vm15 = vcmp.eq.s32.totalorder %v1190_v56, 32  ;;  %v1220_v37 = vadd.s32 %v5953_v14, %v1217_v48  ;;  %v1262_v23 = vcvt.f32.s32 %v4788_v21  ;;  %vm5954_vm13 = vcmask 786112  }
 0x2a8   :  { %v4886_v45 = vsel %vm5954_vm13, %v1774_v33, %v1770_v47  ;;  %v1779_v49 = vrot.slane %v4871_v46, %v4372_v1  ;;  %v1784_v43 = vrot.slane %v4873_v0, %v4384_v54  ;;  %v1277_v59 = vcvt.f32.s32 %v4811_v40  ;;  %v5955_v33 = vld [vmem:[#allocation58_spill] sm:$0xff] }
 0x2a9   :  { %v1321_v38 = vpop.xlane.xlu1 %1320  ;;  %vm1447_vm7 = vcmp.eq.s32.totalorder %v1145_v41, 32  ;;  %vm1451_vm0 = vcmp.eq.s32.totalorder %v1205_v63, 32  ;;  %v1235_v6 = vadd.s32 %v4626_v44, %v1232_v8  ;;  %v1292_v24 = vcvt.f32.s32 %v4833_v30  ;;  %v5956_v44 = vld [vmem:[#allocation29_spill] sm:$0xff] }
 0x2aa   :  { %vm1449_vm10 = vcmp.eq.s32.totalorder %v1175_v36, 32  ;;  %v4895_v21 = vsel %vm1450_vm15, 0, %v1190_v56  ;;  %v1250_v48 = vadd.s32 %v4643_v52, %v1247_v58  ;;  %v1307_v31 = vcvt.f32.s32 %v1306_v5  ;;  %v5957_v52 = vld [vmem:[#allocation16_spill] sm:$0xff] }
 0x2ab   :  { %v1160_v4 = vadd.s32 %v5955_v33, %v1157_v35  ;;  %vm1452_vm3 = vcmp.eq.s32.totalorder %v1220_v37, 32  ;;  %v1265_v47 = vadd.s32 %v4662_v15, %v1262_v23  ;;  %v1322_v20 = vcvt.f32.s32 %v1321_v38  ;;  %v5958_v15 = vld [vmem:[#allocation17_spill] sm:$0xff] }
 0x2ac   :  { %v4900_v40 = vsel %vm1447_vm7, 0, %v1145_v41  ;;  %v4902_v14 = vsel %vm1451_vm0, 0, %v1205_v63  ;;  %v1280_v8 = vadd.s32 %v5956_v44, %v1277_v59  ;;  %v4905_v26 = vsel %vm1449_vm10, 0, %v1175_v36  ;;  %v5959_v36 = vld [vmem:[#allocation33_spill] sm:$0xff]  ;;  %v5961_v44 = vld [vmem:[#allocation26_spill] sm:$0xff] }
 0x2ad   :  { %v1336_v3 = vpop.xlane.xlu1 %1335  ;;  %v1803_v56 = vrot.slane %v4895_v21, %v4320_v39  ;;  %vm1453_vm12 = vcmp.eq.s32.totalorder %v1235_v6, 32  ;;  %v1295_v5 = vadd.s32 %v5957_v52, %v1292_v24  ;;  %v4910_v35 = vsel %vm1452_vm3, 0, %v1220_v37  ;;  %v5960_v24 = vld [vmem:[#allocation24_spill] sm:$0xff] }
 0x2ae   :  { %v1337_v30 = vcvt.f32.s32 %v1336_v3  ;;  %vm1454_vm15 = vcmp.eq.s32.totalorder %v1250_v48, 32  ;;  %v1310_v41 = vadd.s32 %v5958_v15, %v1307_v31  ;;  %vm1448_vm13 = vcmp.eq.s32.totalorder %v1160_v4, 32 }
 0x2af   :  { %v1808_v63 = vrot.slane %v4902_v14, %v4323_v9  ;;  %vm1455_vm7 = vcmp.eq.s32.totalorder %v1265_v47, 32  ;;  %v1325_v23 = vadd.s32 %v5959_v36, %v1322_v20  ;;  %v1799_v59 = vrot.slane %v4905_v26, %v4317_v28 }
 0x2b0   :  { %v4918_v3 = vsel %vm1453_vm12, 0, %v1235_v6  ;;  %vm1456_vm0 = vcmp.eq.s32.totalorder %v1280_v8, 32  ;;  %v1340_v37 = vadd.s32 %v5960_v24, %v1337_v30  ;;  %v1813_v33 = vrot.slane %v4910_v35, %v4329_v16 }
 0x2b1   :  { %v1351_v58 = vpop.xlane.xlu1 %1350  ;;  %v4923_v31 = vsel %vm1454_vm15, 0, %v1250_v48  ;;  %vm1457_vm10 = vcmp.eq.s32.totalorder %v1295_v5, 32  ;;  %v1804_v15 = vsel %vm1538_vm9, %v1803_v56, %v1799_v59  ;;  %v4927_v20 = vsel %vm1455_vm7, 0, %v1265_v47 }
 0x2b2   :  { %v1352_v38 = vcvt.f32.s32 %v1351_v58  ;;  %vm1458_vm3 = vcmp.eq.s32.totalorder %v1310_v41, 32  ;;  %v1809_v6 = vsel %vm1545_vm11, %v1808_v63, %v1804_v15  ;;  %v1818_v30 = vrot.slane %v4918_v3, %v4334_v32 }
 0x2b3   :  { %v4932_v24 = vsel %vm1456_vm0, 0, %v1280_v8  ;;  %vm1459_vm12 = vcmp.eq.s32.totalorder %v1325_v23, 32  ;;  %v1823_v48 = vrot.slane %v4923_v31, %v4337_v7  ;;  %v4936_v29 = vsel %vm1457_vm10, 0, %v1295_v5 }
 0x2b4   :  { %v1355_v52 = vadd.s32 %v5961_v44, %v1352_v38  ;;  %vm1460_vm15 = vcmp.eq.s32.totalorder %v1340_v37, 32  ;;  %v1814_v47 = vsel %vm1552_vm14, %v1813_v33, %v1809_v6  ;;  %v1828_v38 = vrot.slane %v4927_v20, %v4340_v12 }
 0x2b5   :  { %v1366_v58 = vpop.xlane.xlu1 %1365  ;;  %v4942_v63 = vsel %vm1458_vm3, 0, %v1310_v41  ;;  %v1833_v8 = vrot.slane %v4932_v24, %v4345_v22  ;;  %v4946_v44 = vsel %vm1459_vm12, 0, %v1325_v23  ;;  %vm5586_vm10 = vcmask 1041409  }
 0x2b6   :  { %v1367_v36 = vcvt.f32.s32 %v1366_v58  ;;  %vm1461_vm7 = vcmp.eq.s32.totalorder %v1355_v52, 32  ;;  %v4949_v58 = vsel %vm1448_vm13, 0, %v1160_v4  ;;  %v1838_v33 = vrot.slane %v4936_v29, %v4348_v53 }
 0x2b7   :  { %v4954_v41 = vsel %vm1460_vm15, 0, %v1340_v37  ;;  %vm5585_vm3 = vcmask 1042434   ;;  %v1843_v23 = vrot.slane %v4942_v63, %v4351_v25  ;;  %v1789_v4 = vrot.slane %v4900_v40, %v5875_v57 }
 0x2b8   :  { %v1370_v56 = vadd.s32 %v4741_v61, %v1367_v36  ;;  %v1819_v61 = vsel %vm5590_vm1, %v1818_v30, %v1814_v47  ;;  %v4959_v36 = vsel %vm1461_vm7, 0, %v1355_v52  ;;  %v1848_v47 = vrot.slane %v4946_v44, %v4362_v51 }
 0x2b9   :  { %v1381_v59 = vpop.xlane.xlu1 %1380  ;;  %v1824_v15 = vsel %vm5589_vm2, %v1823_v48, %v1819_v61  ;;  %v1853_v61 = vrot.slane %v4954_v41, %v5859_v2  ;;  %vm5962_vm12 = vcmask 851712   ;;  %vm5963_vm15 = vcmask 654912  }
 0x2ba   :  { %vm1462_vm0 = vcmp.eq.s32.totalorder %v1370_v56, 32  ;;  %v1382_v5 = vcvt.f32.s32 %v1381_v59  ;;  %v1829_v30 = vsel %vm5588_vm4, %v1828_v38, %v1824_v15  ;;  %v1858_v38 = vrot.slane %v4959_v36, %v4372_v1 }
 0x2bb   :  { %v4967_v37 = vsel %vm1462_vm0, 0, %v1370_v56  ;;  %v1834_v48 = vsel %vm5583_vm6, %v1833_v8, %v1829_v30  ;;  %v1780_v56 = vsel %vm5962_vm12, %v1779_v49, %v4886_v45  ;;  %vm5964_vm7 = vcmask 720512  }
 0x2bc   :  { %v1385_v6 = vadd.s32 %v4755_v17, %v1382_v5  ;;  %v1794_v17 = vrot.slane %v4949_v58, %v4395_v42  ;;  %v1839_v5 = vsel %vm5582_vm8, %v1838_v33, %v1834_v48  ;;  %v1863_v30 = vrot.slane %v4967_v37, %v4384_v54 }
 0x2bd   :  { %v1396_v59 = vpop.xlane.xlu1 %1395  ;;  %v1844_v8 = vsel %vm5963_vm15, %v1843_v23, %v1839_v5  ;;  %v2926_v33 = vrot.slane %v4949_v58, 6  ;;  %vm5965_vm0 = vcmask 917312   ;;  %v5967_v49 = vrot.slane %v4847_v10, %v4395_v42 }
 0x2be   :  { %vm1463_vm13 = vcmp.eq.s32.totalorder %v1385_v6, 32  ;;  %v1397_v52 = vcvt.f32.s32 %v1396_v59  ;;  %v1849_v48 = vsel %vm5964_vm7, %v1848_v47, %v1844_v8  ;;  %v1785_v1 = vsel %vm5965_vm0, %v1784_v43, %v1780_v56 }
 0x2bf   :  { %v4977_v15 = vsel %vm1463_vm13, 0, %v1385_v6  ;;  %vm5966_vm13 = vcmask 786112   ;;  %vm5968_vm15 = vcmask 1048512   ;;  %v1790_v23 = vsel %vm5587_vm5, %v1789_v4, %v1785_v1 }
 0x2c0   :  { %v1400_v59 = vadd.s32 %v4758_v62, %v1397_v52  ;;  %v1868_v6 = vrot.slane %v4977_v15, %v5875_v57  ;;  %v1854_v45 = vsel %vm5966_vm13, %v1853_v61, %v1849_v48  ;;  %v1716_v62 = vsel %vm5968_vm15, %v5967_v49, %v4864_v18  ;;  %vm5969_vm7 = vmmov %vm5968_vm15  ;;  %v5971_v18 = vld [vmem:[#allocation13_spill] sm:$0xff] }
 0x2c1   :  { %v1795_v52 = vsel %vm5969_vm7, %v1794_v17, %v1790_v23  ;;  %vm5970_vm8 = vcmask 851712   ;;  %vm5584_vm6 = vcmask 1043459   ;;  %vm2932_vm13 = vcmask 2048  }
 0x2c2   :  { %vm1464_vm12 = vcmp.eq.s32.totalorder %v1400_v59, 32  ;;  %v1859_v5 = vsel %vm5970_vm8, %v1858_v38, %v1854_v45  ;;  %v1876_v1 = vsel %vm5586_vm10, %v1716_v62, %v5971_v18  ;;  %v5972_v4 = vrot.slane %v4847_v10, 7  ;;  %v5974_v45 = vld [vmem:[#allocation22_spill] sm:$0xff]  ;;  %v1887_v62 = vpop.permute.xlu1 %1886 }
 0x2c3   :  { %v5003_v47 = vsel %vm1464_vm12, 0, %v1400_v59  ;;  %v1864_v61 = vsel %vm5965_vm0, %v1863_v30, %v1859_v5  ;;  %vm5973_vm12 = vmmov %vm5969_vm7  ;;  %v1878_v59 = vsel %vm5585_vm3, %v1795_v52, %v1876_v1  ;;  %vm1883_vm8 = vcmp.eq.s32.totalorder %v5974_v45, 0  ;;  %v5977_v45 = vld [vmem:[#allocation48_spill] sm:$0xff] }
 0x2c4   :  { %v2928_v43 = vrot.slane %v5003_v47, 5  ;;  %v1873_v56 = vrot.slane %v5003_v47, %v4395_v42  ;;  %v1869_v8 = vsel %vm5587_vm5, %v1868_v6, %v1864_v61  ;;  %v2927_v17 = vsel %vm5586_vm10, %v2926_v33, %v5972_v4  ;;  %v5975_v6 = vld [vmem:[#allocation66_spill] sm:$0xff] }
 0x2c5   :  { %v1891_v49 = vsub.s32 0, %v5975_v6  ;;  %v1958_v33 = vsub.s32 1, %v5975_v6 }
 0x2c6   :  { %v1874_v38 = vsel %vm5973_vm12, %v1873_v56, %v1869_v8  ;;  %v2929_v48 = vsel %vm5585_vm3, %v2928_v43, %v2927_v17  ;;  %v2025_v43 = vsub.s32 2, %v5975_v6  ;;  %v2092_v8 = vsub.s32 3, %v5975_v6  ;;  %v5976_v17 = vld [vmem:[#allocation46_spill] sm:$0xff] }
 0x2c7   :  { %v1880_v30 = vsel %vm5584_vm6, %v1874_v38, %v1878_v59  ;;  %2933 = vst.msk [vmem:[#allocation2 + $0x1] sm:$0x7] %vm2932_vm13, %v2929_v48  ;;  %vm2221_vm7 = vcmp.ne.s32.totalorder %v5976_v17, 0  ;;  %vm2224_vm12 = vcmp.ne.s32.totalorder %v5977_v45, 0 }
 0x2c8   :  { %1881 = vrot.lane.b32.xlu0 %v1880_v30, %s3007_s0 }
 0x33a   :  { %v1882_v23 = vpop.permute.xlu0 %1881 }
 0x33b   :  { %v1888_v5 = vsel %vm1883_vm8, %v1887_v62, %v1882_v23 }
 0x33c   :  { %v1892_v61 = vrot.slane %v1888_v5, %v1891_v49  ;;  %v1959_v52 = vrot.slane %v1888_v5, %v1958_v33  ;;  %v2026_v56 = vrot.slane %v1888_v5, %v2025_v43  ;;  %v2093_v18 = vrot.slane %v1888_v5, %v2092_v8  ;;  %v5978_v49 = vld [vmem:[#allocation43_spill] sm:$0xff]  ;;  %v5979_v5 = vld [vmem:[#allocation50_spill] sm:$0xff]  ;;  %v5980_v33 = vld [vmem:[#allocation44_spill] sm:$0xff] }
 0x33d   :  { %vm2222_vm3 = vcmp.ne.s32.totalorder %v5978_v49, 0  ;;  %vm2226_vm10 = vcmp.ne.s32.totalorder %v5979_v5, 0 }
 0x33e   :  { %1902 = vbcast.lane.b32.xlu0 %v1892_v61, 272  ;;  %1894 = vbcast.lane.b32.xlu1 %v1892_v61, 256 }
 0x342   :  { %1910 = vbcast.lane.b32.xlu0 %v1892_v61, 288  ;;  %1898 = vbcast.lane.b32.xlu1 %v1892_v61, 264 }
 0x346   :  { %1918 = vbcast.lane.b32.xlu0 %v1892_v61, 304  ;;  %1906 = vbcast.lane.b32.xlu1 %v1892_v61, 280 }
 0x34a   :  { %1926 = vbcast.lane.b32.xlu0 %v1892_v61, 320  ;;  %1914 = vbcast.lane.b32.xlu1 %v1892_v61, 296 }
 0x34e   :  { %1934 = vbcast.lane.b32.xlu0 %v1892_v61, 336  ;;  %1922 = vbcast.lane.b32.xlu1 %v1892_v61, 312 }
 0x352   :  { %1942 = vbcast.lane.b32.xlu0 %v1892_v61, 352  ;;  %1930 = vbcast.lane.b32.xlu1 %v1892_v61, 328 }
 0x356   :  { %1950 = vbcast.lane.b32.xlu0 %v1892_v61, 368  ;;  %1938 = vbcast.lane.b32.xlu1 %v1892_v61, 344 }
 0x35a   :  { %1961 = vbcast.lane.b32.xlu0 %v1959_v52, 256  ;;  %1946 = vbcast.lane.b32.xlu1 %v1892_v61, 360 }
 0x35e   :  { %1969 = vbcast.lane.b32.xlu0 %v1959_v52, 272  ;;  %1954 = vbcast.lane.b32.xlu1 %v1892_v61, 376 }
 0x362   :  { %1977 = vbcast.lane.b32.xlu0 %v1959_v52, 288  ;;  %1965 = vbcast.lane.b32.xlu1 %v1959_v52, 264 }
 0x366   :  { %1985 = vbcast.lane.b32.xlu0 %v1959_v52, 304  ;;  %1973 = vbcast.lane.b32.xlu1 %v1959_v52, 280 }
 0x36a   :  { %1993 = vbcast.lane.b32.xlu0 %v1959_v52, 320  ;;  %1981 = vbcast.lane.b32.xlu1 %v1959_v52, 296 }
 0x36e   :  { %2001 = vbcast.lane.b32.xlu0 %v1959_v52, 336  ;;  %1989 = vbcast.lane.b32.xlu1 %v1959_v52, 312 }
 0x372   :  { %2009 = vbcast.lane.b32.xlu0 %v1959_v52, 352  ;;  %1997 = vbcast.lane.b32.xlu1 %v1959_v52, 328 }
 0x376   :  { %2017 = vbcast.lane.b32.xlu0 %v1959_v52, 368  ;;  %2005 = vbcast.lane.b32.xlu1 %v1959_v52, 344 }
 0x37a   :  { %2028 = vbcast.lane.b32.xlu0 %v2026_v56, 256  ;;  %2013 = vbcast.lane.b32.xlu1 %v1959_v52, 360 }
 0x37e   :  { %2036 = vbcast.lane.b32.xlu0 %v2026_v56, 272  ;;  %2021 = vbcast.lane.b32.xlu1 %v1959_v52, 376 }
 0x382   :  { %2044 = vbcast.lane.b32.xlu0 %v2026_v56, 288  ;;  %2032 = vbcast.lane.b32.xlu1 %v2026_v56, 264 }
 0x386   :  { %2052 = vbcast.lane.b32.xlu0 %v2026_v56, 304  ;;  %2040 = vbcast.lane.b32.xlu1 %v2026_v56, 280 }
 0x38a   :  { %2060 = vbcast.lane.b32.xlu0 %v2026_v56, 320  ;;  %2048 = vbcast.lane.b32.xlu1 %v2026_v56, 296 }
 0x38e   :  { %2068 = vbcast.lane.b32.xlu0 %v2026_v56, 336  ;;  %2056 = vbcast.lane.b32.xlu1 %v2026_v56, 312 }
 0x392   :  { %2076 = vbcast.lane.b32.xlu0 %v2026_v56, 352  ;;  %2064 = vbcast.lane.b32.xlu1 %v2026_v56, 328 }
 0x396   :  { %2084 = vbcast.lane.b32.xlu0 %v2026_v56, 368  ;;  %2072 = vbcast.lane.b32.xlu1 %v2026_v56, 344 }
 0x39a   :  { %2095 = vbcast.lane.b32.xlu0 %v2093_v18, 256  ;;  %2080 = vbcast.lane.b32.xlu1 %v2026_v56, 360 }
 0x39e   :  { %2103 = vbcast.lane.b32.xlu0 %v2093_v18, 272  ;;  %2088 = vbcast.lane.b32.xlu1 %v2026_v56, 376  ;;  %v5981_v56 = vld [vmem:[#allocation71_spill] sm:$0xff] }
 0x3a2   :  { %2111 = vbcast.lane.b32.xlu0 %v2093_v18, 288  ;;  %2099 = vbcast.lane.b32.xlu1 %v2093_v18, 264 }
 0x3a6   :  { %2119 = vbcast.lane.b32.xlu0 %v2093_v18, 304  ;;  %2107 = vbcast.lane.b32.xlu1 %v2093_v18, 280 }
 0x3aa   :  { %2127 = vbcast.lane.b32.xlu0 %v2093_v18, 320  ;;  %2115 = vbcast.lane.b32.xlu1 %v2093_v18, 296 }
 0x3ae   :  { %2135 = vbcast.lane.b32.xlu0 %v2093_v18, 336  ;;  %2123 = vbcast.lane.b32.xlu1 %v2093_v18, 312 }
 0x3b0   :  { %v1903_v1 = vpop.permute.xlu0 %1902  ;;  %v1895_v4 = vpop.permute.xlu1 %1894 }
 0x3b1   :  { %vm2157_vm15 = vcmp.ne.s32.totalorder %v5976_v17, %v1895_v4 }
 0x3b2   :  { %2143 = vbcast.lane.b32.xlu0 %v2093_v18, 352  ;;  %2131 = vbcast.lane.b32.xlu1 %v2093_v18, 328  ;;  %vm2285_vm0 = vmand %vm2157_vm15, %vm2221_vm7 }
 0x3b3   :  { %v2349_v6 = vsel %vm2285_vm0, %v5976_v17, 4294967295  ;;  %vm2159_vm0 = vcmp.ne.s32.totalorder %v5980_v33, %v1903_v1 }
 0x3b4   :  { %v1911_v38 = vpop.permute.xlu0 %1910  ;;  %v1899_v59 = vpop.permute.xlu1 %1898 }
 0x3b5   :  { %vm2158_vm8 = vcmp.ne.s32.totalorder %v5978_v49, %v1899_v59  ;;  %v5983_v59 = vld [vmem:[#allocation52_spill] sm:$0xff] }
 0x3b6   :  { %2151 = vbcast.lane.b32.xlu0 %v2093_v18, 368  ;;  %2139 = vbcast.lane.b32.xlu1 %v2093_v18, 344  ;;  %vm2286_vm7 = vmand %vm2158_vm8, %vm2222_vm3 }
 0x3b7   :  { %v2350_v8 = vsel %vm2286_vm7, %v5978_v49, 4294967295 }
 0x3b8   :  { %v1919_v48 = vpop.permute.xlu0 %1918  ;;  %v1907_v30 = vpop.permute.xlu1 %1906 }
 0x3b9   :  { %vm2160_vm13 = vcmp.ne.s32.totalorder %v5977_v45, %v1907_v30 }
 0x3ba   :  { %2147 = vbcast.lane.b32.xlu1 %v2093_v18, 360  ;;  %2414 = vperm.xlu0 %2963, %v2349_v6   ;;  %vm2288_vm6 = vmand %vm2160_vm13, %vm2224_vm12  ;;  %vm2223_vm13 = vcmp.ne.s32.totalorder %v5980_v33, 0  ;;  %v5984_v6 = vld [vmem:[#allocation69_spill] sm:$0xff] }
 0x3bb   :  { %v2352_v61 = vsel %vm2288_vm6, %v5977_v45, 4294967295  ;;  %vm2287_vm4 = vmand %vm2159_vm0, %vm2223_vm13  ;;  %vm2228_vm6 = vcmp.ne.s32.totalorder %v5981_v56, 0  ;;  %vm2163_vm0 = vcmp.ne.s32.totalorder %v5984_v6, %v1919_v48 }
 0x3bc   :  { %v1927_v62 = vpop.permute.xlu0 %1926  ;;  %v1915_v23 = vpop.permute.xlu1 %1914  ;;  %v2351_v30 = vsel %vm2287_vm4, %v5980_v33, 4294967295  ;;  %v5986_v33 = vld [vmem:[#allocation72_spill] sm:$0xff] }
 0x3bd   :  { %vm2162_vm15 = vcmp.ne.s32.totalorder %v5979_v5, %v1915_v23  ;;  %v5985_v23 = vld [vmem:[#allocation78_spill] sm:$0xff] }
 0x3be   :  { %2155 = vbcast.lane.b32.xlu1 %v2093_v18, 376  ;;  %2423 = vperm.xlu0 %2963, %v2352_v61   ;;  %vm2290_vm5 = vmand %vm2162_vm15, %vm2226_vm10  ;;  %v5982_v18 = vld [vmem:[#allocation49_spill] sm:$0xff] }
 0x3bf   :  { %v2354_v4 = vsel %vm2290_vm5, %v5979_v5, 4294967295  ;;  %vm2161_vm3 = vcmp.ne.s32.totalorder %v5982_v18, %v1911_v38  ;;  %vm2225_vm10 = vcmp.ne.s32.totalorder %v5982_v18, 0  ;;  %vm2230_vm5 = vcmp.ne.s32.totalorder %v5983_v59, 0 }
 0x3c0   :  { %v1935_v52 = vpop.permute.xlu0 %1934  ;;  %v1923_v43 = vpop.permute.xlu1 %1922  ;;  %vm2289_vm7 = vmand %vm2161_vm3, %vm2225_vm10  ;;  %vm2232_vm3 = vcmp.ne.s32.totalorder %v5985_v23, 0 }
 0x3c1   :  { %vm2164_vm12 = vcmp.ne.s32.totalorder %v5981_v56, %v1923_v43  ;;  %v2353_v5 = vsel %vm2289_vm7, %v5982_v18, 4294967295  ;;  %v5988_v18 = vld [vmem:[#allocation53_spill] sm:$0xff] }
 0x3c2   :  { %2417 = vperm.xlu1 %2962, %v2350_v8   ;;  %2429 = vperm.xlu0 %2963, %v2354_v4   ;;  %vm2292_vm8 = vmand %vm2164_vm12, %vm2228_vm6  ;;  %vm2227_vm12 = vcmp.ne.s32.totalorder %v5984_v6, 0 }
 0x3c3   :  { %v2356_v45 = vsel %vm2292_vm8, %v5981_v56, 4294967295  ;;  %vm2291_vm4 = vmand %vm2163_vm0, %vm2227_vm12  ;;  %vm2165_vm8 = vcmp.ne.s32.totalorder %v5986_v33, %v1927_v62  ;;  %v5987_v56 = vld [vmem:[#allocation20_spill] sm:$0xff] }
 0x3c4   :  { %v1943_v1 = vpop.permute.xlu0 %1942  ;;  %v1931_v17 = vpop.permute.xlu1 %1930  ;;  %v2355_v8 = vsel %vm2291_vm4, %v5984_v6, 4294967295  ;;  %vm2234_vm0 = vcmp.ne.s32.totalorder %v5987_v56, 0  ;;  %v5990_v6 = vld [vmem:[#allocation55_spill] sm:$0xff] }
 0x3c5   :  { %vm2166_vm15 = vcmp.ne.s32.totalorder %v5983_v59, %v1931_v17 }
 0x3c6   :  { %2420 = vperm.xlu1 %2962, %v2351_v30   ;;  %2435 = vperm.xlu0 %2963, %v2356_v45   ;;  %vm2294_vm13 = vmand %vm2166_vm15, %vm2230_vm5  ;;  %vm2229_vm15 = vcmp.ne.s32.totalorder %v5986_v33, 0 }
 0x3c7   :  { %v2358_v61 = vsel %vm2294_vm13, %v5983_v59, 4294967295  ;;  %vm2293_vm7 = vmand %vm2165_vm8, %vm2229_vm15  ;;  %vm2167_vm13 = vcmp.ne.s32.totalorder %v5988_v18, %v1935_v52  ;;  %v5989_v59 = vld [vmem:[#allocation62_spill] sm:$0xff] }
 0x3c8   :  { %v1951_v38 = vpop.permute.xlu0 %1950  ;;  %v1939_v49 = vpop.permute.xlu1 %1938  ;;  %v2357_v30 = vsel %vm2293_vm7, %v5986_v33, 4294967295  ;;  %vm2236_vm8 = vcmp.ne.s32.totalorder %v5989_v59, 0  ;;  %v5992_v33 = vld [vmem:[#allocation56_spill] sm:$0xff] }
 0x3c9   :  { %vm2168_vm6 = vcmp.ne.s32.totalorder %v5985_v23, %v1939_v49 }
 0x3ca   :  { %2426 = vperm.xlu1 %2962, %v2353_v5   ;;  %2441 = vperm.xlu0 %2963, %v2358_v61   ;;  %vm2296_vm10 = vmand %vm2168_vm6, %vm2232_vm3  ;;  %vm2231_vm6 = vcmp.ne.s32.totalorder %v5988_v18, 0 }
 0x3cb   :  { %v2360_v4 = vsel %vm2296_vm10, %v5985_v23, 4294967295  ;;  %vm2295_vm4 = vmand %vm2167_vm13, %vm2231_vm6  ;;  %vm2169_vm10 = vcmp.ne.s32.totalorder %v5990_v6, %v1943_v1  ;;  %v5991_v23 = vld [vmem:[#allocation38_spill] sm:$0xff] }
 0x3cc   :  { %v1962_v48 = vpop.permute.xlu0 %1961  ;;  %v1947_v43 = vpop.permute.xlu1 %1946  ;;  %v2359_v5 = vsel %vm2295_vm4, %v5988_v18, 4294967295  ;;  %vm2238_vm13 = vcmp.ne.s32.totalorder %v5991_v23, 0  ;;  %v5994_v18 = vld [vmem:[#allocation35_spill] sm:$0xff] }
 0x3cd   :  { %vm2170_vm5 = vcmp.ne.s32.totalorder %v5987_v56, %v1947_v43 }
 0x3ce   :  { %2432 = vperm.xlu1 %2962, %v2355_v8   ;;  %2447 = vperm.xlu0 %2963, %v2360_v4   ;;  %vm2298_vm12 = vmand %vm2170_vm5, %vm2234_vm0  ;;  %vm2233_vm5 = vcmp.ne.s32.totalorder %v5990_v6, 0 }
 0x3cf   :  { %v2362_v45 = vsel %vm2298_vm12, %v5987_v56, 4294967295  ;;  %vm2297_vm7 = vmand %vm2169_vm10, %vm2233_vm5  ;;  %vm2171_vm12 = vcmp.ne.s32.totalorder %v5992_v33, %v1951_v38  ;;  %v5993_v56 = vld [vmem:[#allocation59_spill] sm:$0xff] }
 0x3d0   :  { %v1970_v62 = vpop.permute.xlu0 %1969  ;;  %v1955_v17 = vpop.permute.xlu1 %1954  ;;  %v2361_v8 = vsel %vm2297_vm7, %v5990_v6, 4294967295  ;;  %vm2240_vm10 = vcmp.ne.s32.totalorder %v5993_v56, 0  ;;  %v5996_v6 = vld [vmem:[#allocation12_spill] sm:$0xff] }
 0x3d1   :  { %vm2172_vm3 = vcmp.ne.s32.totalorder %v5989_v59, %v1955_v17 }
 0x3d2   :  { %2438 = vperm.xlu1 %2962, %v2357_v30   ;;  %2453 = vperm.xlu0 %2963, %v2362_v45   ;;  %vm2300_vm15 = vmand %vm2172_vm3, %vm2236_vm8  ;;  %vm2235_vm3 = vcmp.ne.s32.totalorder %v5992_v33, 0 }
 0x3d3   :  { %v2364_v61 = vsel %vm2300_vm15, %v5989_v59, 4294967295  ;;  %vm2299_vm4 = vmand %vm2171_vm12, %vm2235_vm3  ;;  %vm2173_vm15 = vcmp.ne.s32.totalorder %v5994_v18, %v1962_v48  ;;  %v5995_v59 = vld [vmem:[#allocation61_spill] sm:$0xff] }
 0x3d4   :  { %v1978_v52 = vpop.permute.xlu0 %1977  ;;  %v1966_v49 = vpop.permute.xlu1 %1965  ;;  %v2363_v30 = vsel %vm2299_vm4, %v5992_v33, 4294967295  ;;  %vm2242_vm12 = vcmp.ne.s32.totalorder %v5995_v59, 0  ;;  %v5998_v33 = vld [vmem:[#allocation40_spill] sm:$0xff] }
 0x3d5   :  { %vm2174_vm0 = vcmp.ne.s32.totalorder %v5991_v23, %v1966_v49 }
 0x3d6   :  { %2444 = vperm.xlu1 %2962, %v2359_v5   ;;  %2459 = vperm.xlu0 %2963, %v2364_v61   ;;  %vm2302_vm6 = vmand %vm2174_vm0, %vm2238_vm13  ;;  %vm2237_vm0 = vcmp.ne.s32.totalorder %v5994_v18, 0 }
 0x3d7   :  { %v2366_v4 = vsel %vm2302_vm6, %v5991_v23, 4294967295  ;;  %vm2301_vm7 = vmand %vm2173_vm15, %vm2237_vm0  ;;  %vm2175_vm6 = vcmp.ne.s32.totalorder %v5996_v6, %v1970_v62  ;;  %v5997_v23 = vld [vmem:[#allocation28_spill] sm:$0xff] }
 0x3d8   :  { %v1986_v1 = vpop.permute.xlu0 %1985  ;;  %v1974_v43 = vpop.permute.xlu1 %1973  ;;  %v2365_v5 = vsel %vm2301_vm7, %v5994_v18, 4294967295  ;;  %vm2244_vm15 = vcmp.ne.s32.totalorder %v5997_v23, 0  ;;  %v6000_v18 = vld [vmem:[#allocation27_spill] sm:$0xff] }
 0x3d9   :  { %vm2176_vm8 = vcmp.ne.s32.totalorder %v5993_v56, %v1974_v43 }
 0x3da   :  { %2450 = vperm.xlu1 %2962, %v2361_v8   ;;  %2465 = vperm.xlu0 %2963, %v2366_v4   ;;  %vm2304_vm5 = vmand %vm2176_vm8, %vm2240_vm10  ;;  %vm2239_vm8 = vcmp.ne.s32.totalorder %v5996_v6, 0 }
 0x3db   :  { %v2368_v45 = vsel %vm2304_vm5, %v5993_v56, 4294967295  ;;  %vm2303_vm4 = vmand %vm2175_vm6, %vm2239_vm8  ;;  %vm2177_vm5 = vcmp.ne.s32.totalorder %v5998_v33, %v1978_v52  ;;  %v5999_v56 = vld [vmem:[#allocation11_spill] sm:$0xff] }
 0x3dc   :  { %v1994_v38 = vpop.permute.xlu0 %1993  ;;  %v1982_v17 = vpop.permute.xlu1 %1981  ;;  %v2367_v8 = vsel %vm2303_vm4, %v5996_v6, 4294967295  ;;  %vm2246_vm6 = vcmp.ne.s32.totalorder %v5999_v56, 0  ;;  %v6002_v6 = vld [vmem:[#allocation63_spill] sm:$0xff] }
 0x3dd   :  { %vm2178_vm13 = vcmp.ne.s32.totalorder %v5995_v59, %v1982_v17 }
 0x3de   :  { %2456 = vperm.xlu1 %2962, %v2363_v30   ;;  %2471 = vperm.xlu0 %2963, %v2368_v45   ;;  %vm2306_vm3 = vmand %vm2178_vm13, %vm2242_vm12  ;;  %vm2241_vm13 = vcmp.ne.s32.totalorder %v5998_v33, 0 }
 0x3df   :  { %v2370_v61 = vsel %vm2306_vm3, %v5995_v59, 4294967295  ;;  %vm2305_vm7 = vmand %vm2177_vm5, %vm2241_vm13  ;;  %vm2179_vm3 = vcmp.ne.s32.totalorder %v6000_v18, %v1986_v1  ;;  %v6001_v59 = vld [vmem:[#allocation25_spill] sm:$0xff] }
 0x3e0   :  { %v2002_v48 = vpop.permute.xlu0 %2001  ;;  %v1990_v49 = vpop.permute.xlu1 %1989  ;;  %v2369_v30 = vsel %vm2305_vm7, %v5998_v33, 4294967295  ;;  %vm2248_vm5 = vcmp.ne.s32.totalorder %v6001_v59, 0 }
 0x3e1   :  { %vm2180_vm10 = vcmp.ne.s32.totalorder %v5997_v23, %v1990_v49 }
 0x3e2   :  { %2462 = vperm.xlu1 %2962, %v2365_v5   ;;  %2477 = vperm.xlu0 %2963, %v2370_v61   ;;  %vm2308_vm0 = vmand %vm2180_vm10, %vm2244_vm15  ;;  %vm2243_vm10 = vcmp.ne.s32.totalorder %v6000_v18, 0  ;;  %v6003_v61 = vld [vmem:[#allocation19_spill] sm:$0xff] }
 0x3e3   :  { %v2372_v4 = vsel %vm2308_vm0, %v5997_v23, 4294967295  ;;  %vm2307_vm4 = vmand %vm2179_vm3, %vm2243_vm10  ;;  %vm2181_vm0 = vcmp.ne.s32.totalorder %v6002_v6, %v1994_v38  ;;  %vm2250_vm3 = vcmp.ne.s32.totalorder %v4761_v27, 0 }
 0x3e4   :  { %v2010_v62 = vpop.permute.xlu0 %2009  ;;  %v1998_v43 = vpop.permute.xlu1 %1997  ;;  %v2371_v23 = vsel %vm2307_vm4, %v6000_v18, 4294967295  ;;  %v6004_v18 = vld [vmem:[#allocation15_spill] sm:$0xff] }
 0x3e5   :  { %vm2182_vm12 = vcmp.ne.s32.totalorder %v5999_v56, %v1998_v43 }
 0x3e6   :  { %2468 = vperm.xlu1 %2962, %v2367_v8   ;;  %2483 = vperm.xlu0 %2963, %v2372_v4   ;;  %vm2310_vm8 = vmand %vm2182_vm12, %vm2246_vm6  ;;  %vm2245_vm12 = vcmp.ne.s32.totalorder %v6002_v6, 0 }
 0x3e7   :  { %v2374_v45 = vsel %vm2310_vm8, %v5999_v56, 4294967295  ;;  %vm2309_vm7 = vmand %vm2181_vm0, %vm2245_vm12  ;;  %vm2183_vm8 = vcmp.ne.s32.totalorder %v6003_v61, %v2002_v48  ;;  %vm2252_vm0 = vcmp.ne.s32.totalorder %v4847_v10, 0 }
 0x3e8   :  { %v2018_v52 = vpop.permute.xlu0 %2017  ;;  %v2006_v17 = vpop.permute.xlu1 %2005  ;;  %v2373_v43 = vsel %vm2309_vm7, %v6002_v6, 4294967295 }
 0x3e9   :  { %vm2184_vm15 = vcmp.ne.s32.totalorder %v6001_v59, %v2006_v17 }
 0x3ea   :  { %2474 = vperm.xlu1 %2962, %v2369_v30   ;;  %2489 = vperm.xlu0 %2963, %v2374_v45   ;;  %vm2312_vm13 = vmand %vm2184_vm15, %vm2248_vm5  ;;  %vm2247_vm15 = vcmp.ne.s32.totalorder %v6003_v61, 0  ;;  %v6005_v30 = vld [vmem:[#allocation36_spill] sm:$0xff]  ;;  %v6006_v45 = vld [vmem:[#allocation14_spill] sm:$0xff] }
 0x3eb   :  { %v2376_v5 = vsel %vm2312_vm13, %v6001_v59, 4294967295  ;;  %vm2311_vm4 = vmand %vm2183_vm8, %vm2247_vm15  ;;  %vm2185_vm13 = vcmp.ne.s32.totalorder %v4731_v50, %v2010_v62  ;;  %vm2254_vm8 = vcmp.ne.s32.totalorder %v6004_v18, 0 }
 0x3ec   :  { %v2029_v1 = vpop.permute.xlu0 %2028  ;;  %v2014_v49 = vpop.permute.xlu1 %2013  ;;  %v2375_v17 = vsel %vm2311_vm4, %v6003_v61, 4294967295  ;;  %vm2256_vm4 = vcmp.ne.s32.totalorder %v6005_v30, 0 }
 0x3ed   :  { %vm2186_vm6 = vcmp.ne.s32.totalorder %v4761_v27, %v2014_v49 }
 0x3ee   :  { %2480 = vperm.xlu1 %2962, %v2371_v23   ;;  %2495 = vperm.xlu0 %2963, %v2376_v5   ;;  %vm2314_vm10 = vmand %vm2186_vm6, %vm2250_vm3  ;;  %vm2249_vm6 = vcmp.ne.s32.totalorder %v4731_v50, 0  ;;  %v6007_v5 = vld [vmem:[#allocation42_spill] sm:$0xff] }
 0x3ef   :  { %v2378_v56 = vsel %vm2314_vm10, %v4761_v27, 4294967295  ;;  %vm2313_vm7 = vmand %vm2185_vm13, %vm2249_vm6  ;;  %vm2187_vm10 = vcmp.ne.s32.totalorder %v4783_v11, %v2018_v52  ;;  %vm2189_vm13 = vcmp.ne.s32.totalorder %v6006_v45, %v2029_v1 }
 0x3f0   :  { %v2037_v38 = vpop.permute.xlu0 %2036  ;;  %v2022_v33 = vpop.permute.xlu1 %2021 }
 0x3f1   :  { %vm2188_vm5 = vcmp.ne.s32.totalorder %v4847_v10, %v2022_v33 }
 0x3f2   :  { %2486 = vperm.xlu1 %2962, %v2373_v43   ;;  %2501 = vperm.xlu0 %2963, %v2378_v56   ;;  %vm2316_vm12 = vmand %vm2188_vm5, %vm2252_vm0  ;;  %vm2251_vm5 = vcmp.ne.s32.totalorder %v4783_v11, 0  ;;  %v6009_v43 = vld [vmem:[#allocation31_spill] sm:$0xff] }
 0x3f3   :  { %v2380_v4 = vsel %vm2316_vm12, %v4847_v10, 4294967295  ;;  %v2377_v10 = vsel %vm2313_vm7, %v4731_v50, 4294967295  ;;  %vm2315_vm12 = vmand %vm2187_vm10, %vm2251_vm5  ;;  %vm2258_vm7 = vcmp.ne.s32.totalorder %v6007_v5, 0  ;;  %v6008_v50 = vld [vmem:[#allocation30_spill] sm:$0xff] }
 0x3f4   :  { %v2045_v48 = vpop.permute.xlu0 %2044  ;;  %v2033_v8 = vpop.permute.xlu1 %2032  ;;  %v2379_v49 = vsel %vm2315_vm12, %v4783_v11, 4294967295  ;;  %vm2191_vm10 = vcmp.ne.s32.totalorder %v6008_v50, %v2037_v38 }
 0x3f5   :  { %vm2190_vm3 = vcmp.ne.s32.totalorder %v6004_v18, %v2033_v8 }
 0x3f6   :  { %2492 = vperm.xlu1 %2962, %v2375_v17   ;;  %2507 = vperm.xlu0 %2963, %v2380_v4   ;;  %vm2318_vm15 = vmand %vm2190_vm3, %vm2254_vm8  ;;  %vm2253_vm3 = vcmp.ne.s32.totalorder %v6006_v45, 0 }
 0x3f7   :  { %v2382_v59 = vsel %vm2318_vm15, %v6004_v18, 4294967295  ;;  %vm2317_vm15 = vmand %vm2189_vm13, %vm2253_vm3  ;;  %vm2260_vm13 = vcmp.ne.s32.totalorder %v4822_v55, 0  ;;  %v6010_v18 = vld [vmem:[#allocation47_spill] sm:$0xff] }
 0x3f8   :  { %v2053_v27 = vpop.permute.xlu0 %2052  ;;  %v2041_v62 = vpop.permute.xlu1 %2040  ;;  %v2381_v33 = vsel %vm2317_vm15, %v6006_v45, 4294967295 }
 0x3f9   :  { %vm2192_vm0 = vcmp.ne.s32.totalorder %v6005_v30, %v2041_v62 }
 0x3fa   :  { %2498 = vperm.xlu1 %2962, %v2377_v10   ;;  %2513 = vperm.xlu0 %2963, %v2382_v59   ;;  %vm2320_vm6 = vmand %vm2192_vm0, %vm2256_vm4  ;;  %vm2255_vm0 = vcmp.ne.s32.totalorder %v6008_v50, 0 }
 0x3fb   :  { %v2384_v23 = vsel %vm2320_vm6, %v6005_v30, 4294967295  ;;  %vm2319_vm4 = vmand %vm2191_vm10, %vm2255_vm0  ;;  %vm2193_vm6 = vcmp.ne.s32.totalorder %v6009_v43, %v2045_v48  ;;  %vm2262_vm10 = vcmp.ne.s32.totalorder %v4830_v13, 0 }
 0x3fc   :  { %v2061_v52 = vpop.permute.xlu0 %2060  ;;  %v2049_v6 = vpop.permute.xlu1 %2048  ;;  %v2383_v8 = vsel %vm2319_vm4, %v6008_v50, 4294967295 }
 0x3fd   :  { %vm2194_vm8 = vcmp.ne.s32.totalorder %v6007_v5, %v2049_v6 }
 0x3fe   :  { %2504 = vperm.xlu1 %2962, %v2379_v49   ;;  %2519 = vperm.xlu0 %2963, %v2384_v23   ;;  %vm2322_vm5 = vmand %vm2194_vm8, %vm2258_vm7  ;;  %vm2257_vm8 = vcmp.ne.s32.totalorder %v6009_v43, 0 }
 0x3ff   :  { %v2386_v11 = vsel %vm2322_vm5, %v6007_v5, 4294967295  ;;  %vm2321_vm7 = vmand %vm2193_vm6, %vm2257_vm8  ;;  %vm2195_vm5 = vcmp.ne.s32.totalorder %v6010_v18, %v2053_v27  ;;  %vm2261_vm6 = vcmp.ne.s32.totalorder %v4827_v19, 0  ;;  %vm2269_vm8 = vcmp.ne.s32.totalorder %v4905_v26, 0 }
 0x400   :  { %v2069_v1 = vpop.permute.xlu0 %2068  ;;  %v2057_v61 = vpop.permute.xlu1 %2056  ;;  %v2385_v62 = vsel %vm2321_vm7, %v6009_v43, 4294967295 }
 0x401   :  { %vm2196_vm12 = vcmp.ne.s32.totalorder %v4822_v55, %v2057_v61  ;;  %vm2199_vm7 = vcmp.ne.s32.totalorder %v4842_v34, %v2069_v1 }
 0x402   :  { %2510 = vperm.xlu1 %2962, %v2381_v33   ;;  %2525 = vperm.xlu0 %2963, %v2386_v11   ;;  %vm2324_vm3 = vmand %vm2196_vm12, %vm2260_vm13  ;;  %vm2259_vm12 = vcmp.ne.s32.totalorder %v6010_v18, 0  ;;  %vm2197_vm13 = vcmp.ne.s32.totalorder %v4827_v19, %v2061_v52 }
 0x403   :  { %v2388_v4 = vsel %vm2324_vm3, %v4822_v55, 4294967295  ;;  %vm2323_vm4 = vmand %vm2195_vm5, %vm2259_vm12  ;;  %vm2263_vm5 = vcmp.ne.s32.totalorder %v4842_v34, 0  ;;  %vm2271_vm12 = vcmp.ne.s32.totalorder %v4902_v14, 0 }
 0x404   :  { %v5139_v38 = vpop.permute.xlu0 %2076  ;;  %v2065_v56 = vpop.permute.xlu1 %2064  ;;  %v2387_v30 = vsel %vm2323_vm4, %v6010_v18, 4294967295  ;;  %vm5159_vm3 = vmand %vm2197_vm13, %vm2261_vm6  ;;  %vm2273_vm6 = vcmp.ne.s32.totalorder %v4918_v3, 0 }
 0x405   :  { %vm2198_vm15 = vcmp.ne.s32.totalorder %v4830_v13, %v2065_v56  ;;  %v2389_v6 = vsel %vm5159_vm3, %v4827_v19, 4294967295 }
 0x406   :  { %2516 = vperm.xlu1 %2962, %v2383_v8   ;;  %2531 = vperm.xlu0 %2963, %v2388_v4   ;;  %vm2326_vm0 = vmand %vm2198_vm15, %vm2262_vm10 }
 0x407   :  { %v2390_v55 = vsel %vm2326_vm0, %v4830_v13, 4294967295  ;;  %vm2327_vm0 = vmand %vm2199_vm7, %vm2263_vm5  ;;  %vm2270_vm7 = vcmp.ne.s32.totalorder %v4895_v21, 0  ;;  %vm2275_vm5 = vcmp.ne.s32.totalorder %v4927_v20, 0 }
 0x408   :  { %v5147_v48 = vpop.permute.xlu0 %2084  ;;  %v5149_v17 = vpop.permute.xlu1 %2072  ;;  %v2391_v5 = vsel %vm2327_vm0, %v4842_v34, 4294967295 }
 0x40a   :  { %2522 = vperm.xlu1 %2962, %v2385_v62   ;;  %2537 = vperm.xlu0 %2963, %v2390_v55  }
 0x40c   :  { %v2096_v59 = vpop.permute.xlu0 %2095  ;;  %v5156_v27 = vpop.permute.xlu1 %2080 }
 0x40d   :  { %vm2205_vm15 = vcmp.ne.s32.totalorder %v4905_v26, %v2096_v59 }
 0x40e   :  { %vm2333_vm10 = vmand %vm2205_vm15, %vm2269_vm8  ;;  %2528 = vperm.xlu1 %2962, %v2387_v30  }
 0x40f   :  { %v2397_v13 = vsel %vm2333_vm10, %v4905_v26, 4294967295 }
 0x410   :  { %v2104_v45 = vpop.permute.xlu0 %2103  ;;  %2558 = vperm.xlu0 %2963, %v2397_v13   ;;  %v5168_v52 = vpop.permute.xlu1 %2088 }
 0x411   :  { %vm2207_vm4 = vcmp.ne.s32.totalorder %v4902_v14, %v2104_v45 }
 0x412   :  { %vm2335_vm13 = vmand %vm2207_vm4, %vm2271_vm12  ;;  %2534 = vperm.xlu1 %2962, %v2389_v6  }
 0x413   :  { %v2399_v49 = vsel %vm2335_vm13, %v4902_v14, 4294967295  ;;  %vm2272_vm13 = vcmp.ne.s32.totalorder %v4910_v35, 0 }
 0x414   :  { %v2112_v26 = vpop.permute.xlu0 %2111  ;;  %2564 = vperm.xlu0 %2963, %v2399_v49   ;;  %v2100_v23 = vpop.permute.xlu1 %2099 }
 0x415   :  { %vm2209_vm8 = vcmp.ne.s32.totalorder %v4918_v3, %v2112_v26  ;;  %vm2206_vm3 = vcmp.ne.s32.totalorder %v4895_v21, %v2100_v23 }
 0x416   :  { %vm2337_vm15 = vmand %vm2209_vm8, %vm2273_vm6  ;;  %2540 = vperm.xlu1 %2962, %v2391_v5   ;;  %vm2277_vm8 = vcmp.ne.s32.totalorder %v4936_v29, 0 }
 0x417   :  { %v2401_v19 = vsel %vm2337_vm15, %v4918_v3, 4294967295  ;;  %vm2334_vm10 = vmand %vm2206_vm3, %vm2270_vm7  ;;  %vm2200_vm3 = vcmp.ne.s32.totalorder %v4852_v60, %v5149_v17 }
 0x418   :  { %v2120_v50 = vpop.permute.xlu0 %2119  ;;  %2570 = vperm.xlu0 %2963, %v2401_v19   ;;  %v2108_v14 = vpop.permute.xlu1 %2107  ;;  %v2398_v1 = vsel %vm2334_vm10, %v4895_v21, 4294967295 }
 0x419   :  { %vm2211_vm0 = vcmp.ne.s32.totalorder %v4927_v20, %v2120_v50  ;;  %vm2208_vm12 = vcmp.ne.s32.totalorder %v4910_v35, %v2108_v14 }
 0x41a   :  { %vm2339_vm4 = vmand %vm2211_vm0, %vm2275_vm5  ;;  %2561 = vperm.xlu1 %2962, %v2398_v1   ;;  %vm2274_vm5 = vcmp.ne.s32.totalorder %v4923_v31, 0  ;;  %vm2264_vm0 = vcmp.ne.s32.totalorder %v4852_v60, 0 }
 0x41b   :  { %v2403_v34 = vsel %vm2339_vm4, %v4927_v20, 4294967295  ;;  %vm2336_vm6 = vmand %vm2208_vm12, %vm2272_vm13  ;;  %vm2201_vm13 = vcmp.ne.s32.totalorder %v4871_v46, %v5139_v38 }
 0x41c   :  { %v2128_v3 = vpop.permute.xlu0 %2127  ;;  %2576 = vperm.xlu0 %2963, %v2403_v34   ;;  %v2116_v61 = vpop.permute.xlu1 %2115  ;;  %v2400_v21 = vsel %vm2336_vm6, %v4910_v35, 4294967295  ;;  %vm2328_vm4 = vmand %vm2200_vm3, %vm2264_vm0  ;;  %vm2202_vm3 = vcmp.ne.s32.totalorder %v4873_v0, %v5156_v27  ;;  %vm2266_vm0 = vcmp.ne.s32.totalorder %v4873_v0, 0 }
 0x41d   :  { %vm2213_vm15 = vcmp.ne.s32.totalorder %v4936_v29, %v2128_v3  ;;  %vm2210_vm7 = vcmp.ne.s32.totalorder %v4923_v31, %v2116_v61  ;;  %v2392_v11 = vsel %vm2328_vm4, %v4852_v60, 4294967295 }
 0x41e   :  { %vm2341_vm10 = vmand %vm2213_vm15, %vm2277_vm8  ;;  %2567 = vperm.xlu1 %2962, %v2400_v21   ;;  %vm2276_vm8 = vcmp.ne.s32.totalorder %v4932_v24, 0  ;;  %vm2265_vm15 = vcmp.ne.s32.totalorder %v4871_v46, 0 }
 0x41f   :  { %v2405_v20 = vsel %vm2341_vm10, %v4936_v29, 4294967295  ;;  %vm2338_vm12 = vmand %vm2210_vm7, %vm2274_vm5  ;;  %vm2278_vm5 = vcmp.ne.s32.totalorder %v4942_v63, 0 }
 0x420   :  { %2582 = vperm.xlu0 %2963, %v2405_v20   ;;  %v2124_v33 = vpop.permute.xlu1 %2123  ;;  %v2402_v35 = vsel %vm2338_vm12, %v4923_v31, 4294967295  ;;  %vm2329_vm10 = vmand %vm2201_vm13, %vm2265_vm15  ;;  %v2136_v29 = vpop.permute.xlu0 %2135  ;;  %vm2267_vm15 = vcmp.ne.s32.totalorder %v4900_v40, 0 }
 0x421   :  { %vm2212_vm6 = vcmp.ne.s32.totalorder %v4932_v24, %v2124_v33  ;;  %v2393_v31 = vsel %vm2329_vm10, %v4871_v46, 4294967295  ;;  %vm2215_vm12 = vcmp.ne.s32.totalorder %v4946_v44, %v2136_v29  ;;  %vm2330_vm13 = vmand %vm2202_vm3, %vm2266_vm0  ;;  %vm2204_vm3 = vcmp.ne.s32.totalorder %v4949_v58, %v5168_v52 }
 0x422   :  { %2573 = vperm.xlu1 %2962, %v2402_v35   ;;  %vm2340_vm2 = vmand %vm2212_vm6, %vm2276_vm8  ;;  %vm2203_vm6 = vcmp.ne.s32.totalorder %v4900_v40, %v5147_v48  ;;  %v2394_v46 = vsel %vm2330_vm13, %v4873_v0, 4294967295  ;;  %vm2268_vm0 = vcmp.ne.s32.totalorder %v4949_v58, 0  ;;  %vm2281_vm13 = vcmp.ne.s32.totalorder %v4959_v36, 0 }
 0x423   :  { %v2404_v38 = vsel %vm2340_vm2, %v4932_v24, 4294967295  ;;  %vm2279_vm2 = vcmp.ne.s32.totalorder %v4946_v44, 0  ;;  %vm2331_vm1 = vmand %vm2203_vm6, %vm2267_vm15 }
 0x424   :  { %2543 = vperm.xlu0 %2963, %v2392_v11   ;;  %v2132_v43 = vpop.permute.xlu1 %2131  ;;  %vm2343_vm8 = vmand %vm2215_vm12, %vm2279_vm2  ;;  %v2144_v56 = vpop.permute.xlu0 %2143 }
 0x425   :  { %vm2214_vm7 = vcmp.ne.s32.totalorder %v4942_v63, %v2132_v43  ;;  %v2407_v4 = vsel %vm2343_vm8, %v4946_v44, 4294967295  ;;  %vm2217_vm12 = vcmp.ne.s32.totalorder %v4959_v36, %v2144_v56 }
 0x426   :  { %2579 = vperm.xlu1 %2962, %v2404_v38   ;;  %vm2342_vm4 = vmand %vm2214_vm7, %vm2278_vm5  ;;  %vm2280_vm7 = vcmp.ne.s32.totalorder %v4954_v41, 0 }
 0x427   :  { %v2406_v24 = vsel %vm2342_vm4, %v4942_v63, 4294967295  ;;  %v2395_v63 = vsel %vm2331_vm1, %v4900_v40, 4294967295  ;;  %vm2332_vm4 = vmand %vm2204_vm3, %vm2268_vm0  ;;  %vm2284_vm1 = vcmp.ne.s32.totalorder %v5003_v47, 0 }
 0x428   :  { %2546 = vperm.xlu0 %2963, %v2393_v31   ;;  %v2140_v60 = vpop.permute.xlu1 %2139  ;;  %vm2345_vm2 = vmand %vm2217_vm12, %vm2281_vm13  ;;  %v2396_v44 = vsel %vm2332_vm4, %v4949_v58, 4294967295  ;;  %v2152_v40 = vpop.permute.xlu0 %2151  ;;  %vm6013_vm12 = vcmask 326912   ;;  %vm6014_vm4 = vcmask 392512   ;;  %vm6015_vm13 = vcmask 458112  }
 0x429   :  { %vm2216_vm10 = vcmp.ne.s32.totalorder %v4954_v41, %v2140_v60  ;;  %v2409_v48 = vsel %vm2345_vm2, %v4959_v36, 4294967295  ;;  %vm6017_vm2 = vcmask 589312  }
 0x42a   :  { %2585 = vperm.xlu1 %2962, %v2406_v24   ;;  %vm2344_vm5 = vmand %vm2216_vm10, %vm2280_vm7  ;;  %vm2282_vm10 = vcmp.ne.s32.totalorder %v4967_v37, 0  ;;  %vm2219_vm7 = vcmp.ne.s32.totalorder %v4977_v15, %v2152_v40 }
 0x42b   :  { %v2408_v18 = vsel %vm2344_vm5, %v4954_v41, 4294967295  ;;  %vm2283_vm5 = vcmp.ne.s32.totalorder %v4977_v15, 0 }
 0x42c   :  { %2549 = vperm.xlu0 %2963, %v2394_v46   ;;  %v2148_v8 = vpop.permute.xlu1 %2147  ;;  %vm2347_vm0 = vmand %vm2219_vm7, %vm2283_vm5  ;;  %vm6024_vm7 = vcmask 982912   ;;  %vm6025_vm5 = vcmask 1048512  }
 0x42d   :  { %vm2218_vm8 = vcmp.ne.s32.totalorder %v4967_v37, %v2148_v8  ;;  %v2411_v62 = vsel %vm2347_vm0, %v4977_v15, 4294967295  ;;  %vm6026_vm0 = vmmov %vm6013_vm12 }
 0x42e   :  { %2588 = vperm.xlu1 %2962, %v2407_v4   ;;  %vm2346_vm3 = vmand %vm2218_vm8, %vm2282_vm10  ;;  %vm6018_vm8 = vcmask 654912   ;;  %v6021_v4 = vld [vmem:[#allocation37_spill] sm:$0xff]  ;;  %vm6022_vm10 = vcmask 851712  }
 0x42f   :  { %v2410_v58 = vsel %vm2346_vm3, %v4967_v37, 4294967295  ;;  %vm6023_vm3 = vcmask 917312  }
 0x430   :  { %2552 = vperm.xlu0 %2963, %v2395_v63   ;;  %v2156_v0 = vpop.permute.xlu1 %2155 }
 0x431   :  { %vm2220_vm6 = vcmp.ne.s32.totalorder %v5003_v47, %v2156_v0 }
 0x432   :  { %2591 = vperm.xlu1 %2962, %v2408_v18   ;;  %vm2348_vm15 = vmand %vm2220_vm6, %vm2284_vm1  ;;  %vm6016_vm6 = vcmask 523712   ;;  %vm6019_vm1 = vcmask 720512  }
 0x433   :  { %v2412_v41 = vsel %vm2348_vm15, %v5003_v47, 4294967295  ;;  %vm6020_vm15 = vcmask 786112  }
 0x434   :  { %2555 = vperm.xlu0 %2963, %v2396_v44  }
 0x436   :  { %2594 = vperm.xlu1 %2962, %v2409_v48  }
 0x438   :  { %2603 = vperm.xlu0 %2963, %v2412_v41  }
 0x439   :  { %v2415_v17 = vpop.permute.xlu0 %2414 }
 0x43a   :  { %2597 = vperm.xlu1 %2962, %v2410_v58   ;;  %v2608_v27 = vrot.slane %v2415_v17, %v4317_v28 }
 0x43d   :  { %v2424_v55 = vpop.permute.xlu0 %2423 }
 0x43e   :  { %2600 = vperm.xlu1 %2962, %v2411_v62   ;;  %v2622_v37 = vrot.slane %v2424_v55, %v4329_v16 }
 0x441   :  { %v2430_v36 = vpop.permute.xlu0 %2429  ;;  %v2418_v59 = vpop.permute.xlu1 %2417 }
 0x442   :  { %v2612_v30 = vrot.slane %v2418_v59, %v4320_v39  ;;  %v2632_v23 = vrot.slane %v2430_v36, %v4337_v7 }
 0x444   :  { %v2613_v47 = vsel %vm1538_vm9, %v2612_v30, %v2608_v27 }
 0x445   :  { %v2436_v10 = vpop.permute.xlu0 %2435  ;;  %v2421_v13 = vpop.permute.xlu1 %2420 }
 0x446   :  { %v2617_v45 = vrot.slane %v2421_v13, %v4323_v9  ;;  %v2642_v34 = vrot.slane %v2436_v10, %v4345_v22 }
 0x448   :  { %v2618_v52 = vsel %vm1545_vm11, %v2617_v45, %v2613_v47 }
 0x449   :  { %v2442_v6 = vpop.permute.xlu0 %2441  ;;  %v2623_v15 = vsel %vm1552_vm14, %v2622_v37, %v2618_v52  ;;  %v2427_v49 = vpop.permute.xlu1 %2426 }
 0x44a   :  { %v2627_v26 = vrot.slane %v2427_v49, %v4334_v32  ;;  %v2652_v35 = vrot.slane %v2442_v6, %v4351_v25 }
 0x44c   :  { %v2628_v5 = vsel %vm6013_vm12, %v2627_v26, %v2623_v15  ;;  %vm6027_vm12 = vmmov %vm6014_vm4 }
 0x44d   :  { %v2448_v19 = vpop.permute.xlu0 %2447  ;;  %v2633_v50 = vsel %vm6014_vm4, %v2632_v23, %v2628_v5  ;;  %v2433_v14 = vpop.permute.xlu1 %2432  ;;  %vm6028_vm4 = vmmov %vm6015_vm13 }
 0x44e   :  { %v2637_v1 = vrot.slane %v2433_v14, %v4340_v12  ;;  %v2662_v60 = vrot.slane %v2448_v19, %v5859_v2 }
 0x450   :  { %v2638_v3 = vsel %vm6015_vm13, %v2637_v1, %v2633_v50  ;;  %vm6029_vm13 = vmmov %vm6016_vm6 }
 0x451   :  { %v2454_v61 = vpop.permute.xlu0 %2453  ;;  %v2643_v21 = vsel %vm6016_vm6, %v2642_v34, %v2638_v3  ;;  %v2439_v20 = vpop.permute.xlu1 %2438  ;;  %vm6030_vm6 = vmmov %vm6017_vm2 }
 0x452   :  { %v2647_v33 = vrot.slane %v2439_v20, %v4348_v53  ;;  %v2672_v0 = vrot.slane %v2454_v61, %v4384_v54 }
 0x454   :  { %v2648_v11 = vsel %vm6017_vm2, %v2647_v33, %v2643_v21  ;;  %vm6031_vm2 = vmmov %vm6018_vm8 }
 0x455   :  { %v2460_v29 = vpop.permute.xlu0 %2459  ;;  %v2653_v43 = vsel %vm6018_vm8, %v2652_v35, %v2648_v11  ;;  %v2445_v38 = vpop.permute.xlu1 %2444  ;;  %vm6032_vm8 = vmmov %vm6019_vm1 }
 0x456   :  { %v2657_v31 = vrot.slane %v2445_v38, %v4362_v51  ;;  %v2682_v58 = vrot.slane %v2460_v29, %v4395_v42 }
 0x458   :  { %v2658_v24 = vsel %vm6019_vm1, %v2657_v31, %v2653_v43  ;;  %vm6033_vm1 = vmmov %vm6020_vm15 }
 0x459   :  { %v2466_v46 = vpop.permute.xlu0 %2465  ;;  %v2663_v56 = vsel %vm6020_vm15, %v2662_v60, %v2658_v24  ;;  %v2451_v8 = vpop.permute.xlu1 %2450  ;;  %vm6034_vm15 = vmmov %vm6022_vm10 }
 0x45a   :  { %v2667_v63 = vrot.slane %v2451_v8, %v6021_v4  ;;  %v2691_v59 = vrot.slane %v2466_v46, %v4320_v39 }
 0x45c   :  { %v2668_v18 = vsel %vm6022_vm10, %v2667_v63, %v2663_v56  ;;  %vm6035_vm10 = vmmov %vm6023_vm3 }
 0x45d   :  { %v2472_v44 = vpop.permute.xlu0 %2471  ;;  %v2673_v40 = vsel %vm6023_vm3, %v2672_v0, %v2668_v18  ;;  %v2457_v48 = vpop.permute.xlu1 %2456  ;;  %vm6036_vm3 = vmmov %vm6024_vm7 }
 0x45e   :  { %v2677_v41 = vrot.slane %v2457_v48, %v5875_v57  ;;  %v2701_v45 = vrot.slane %v2472_v44, %v4329_v16 }
 0x460   :  { %v2678_v17 = vsel %vm6024_vm7, %v2677_v41, %v2673_v40  ;;  %vm6037_vm7 = vmmov %vm6025_vm5 }
 0x461   :  { %v2683_v62 = vsel %vm6025_vm5, %v2682_v58, %v2678_v17  ;;  %v2478_v55 = vpop.permute.xlu0 %2477  ;;  %v2463_v36 = vpop.permute.xlu1 %2462  ;;  %vm6038_vm5 = vcmask 1041409  }
 0x462   :  { %v2687_v27 = vrot.slane %v2463_v36, %v4317_v28  ;;  %v2711_v26 = vrot.slane %v2478_v55, %v4337_v7 }
 0x464   :  { %v2692_v30 = vsel %vm1538_vm9, %v2691_v59, %v2687_v27 }
 0x465   :  { %v2484_v47 = vpop.permute.xlu0 %2483  ;;  %v2469_v10 = vpop.permute.xlu1 %2468 }
 0x466   :  { %v2696_v13 = vrot.slane %v2469_v10, %v4323_v9  ;;  %v2721_v1 = vrot.slane %v2484_v47, %v4345_v22 }
 0x468   :  { %v2697_v37 = vsel %vm1545_vm11, %v2696_v13, %v2692_v30 }
 0x469   :  { %v2490_v52 = vpop.permute.xlu0 %2489  ;;  %v2702_v6 = vsel %vm1552_vm14, %v2701_v45, %v2697_v37  ;;  %v2475_v15 = vpop.permute.xlu1 %2474 }
 0x46a   :  { %v2706_v49 = vrot.slane %v2475_v15, %v4334_v32  ;;  %v2731_v33 = vrot.slane %v2490_v52, %v4351_v25 }
 0x46c   :  { %v2707_v23 = vsel %vm6026_vm0, %v2706_v49, %v2702_v6 }
 0x46d   :  { %v2496_v5 = vpop.permute.xlu0 %2495  ;;  %v2712_v19 = vsel %vm6027_vm12, %v2711_v26, %v2707_v23  ;;  %v2481_v50 = vpop.permute.xlu1 %2480 }
 0x46e   :  { %v2716_v14 = vrot.slane %v2481_v50, %v4340_v12  ;;  %v2741_v31 = vrot.slane %v2496_v5, %v5859_v2 }
 0x470   :  { %v2717_v34 = vsel %vm6028_vm4, %v2716_v14, %v2712_v19 }
 0x471   :  { %v2502_v3 = vpop.permute.xlu0 %2501  ;;  %v2722_v61 = vsel %vm6029_vm13, %v2721_v1, %v2717_v34  ;;  %v2487_v21 = vpop.permute.xlu1 %2486 }
 0x472   :  { %v2726_v20 = vrot.slane %v2487_v21, %v4348_v53  ;;  %v2751_v63 = vrot.slane %v2502_v3, %v4384_v54 }
 0x474   :  { %v2727_v35 = vsel %vm6030_vm6, %v2726_v20, %v2722_v61 }
 0x475   :  { %v2508_v11 = vpop.permute.xlu0 %2507  ;;  %v2732_v29 = vsel %vm6031_vm2, %v2731_v33, %v2727_v35  ;;  %v2493_v43 = vpop.permute.xlu1 %2492 }
 0x476   :  { %v2736_v38 = vrot.slane %v2493_v43, %v4362_v51  ;;  %v2761_v41 = vrot.slane %v2508_v11, %v4395_v42 }
 0x478   :  { %v2737_v60 = vsel %vm6032_vm8, %v2736_v38, %v2732_v29  ;;  %vm6047_vm8 = vcmask 654912  }
 0x479   :  { %v2514_v24 = vpop.permute.xlu0 %2513  ;;  %v2742_v46 = vsel %vm6033_vm1, %v2741_v31, %v2737_v60  ;;  %v2499_v56 = vpop.permute.xlu1 %2498  ;;  %vm6048_vm1 = vcmask 720512  }
 0x47a   :  { %v2746_v8 = vrot.slane %v2499_v56, %v6021_v4  ;;  %v2770_v34 = vrot.slane %v2514_v24, %v4320_v39 }
 0x47c   :  { %v2747_v0 = vsel %vm6034_vm15, %v2746_v8, %v2742_v46  ;;  %vm6049_vm15 = vcmask 786112  }
 0x47d   :  { %v2520_v18 = vpop.permute.xlu0 %2519  ;;  %v2752_v44 = vsel %vm6035_vm10, %v2751_v63, %v2747_v0  ;;  %v2505_v40 = vpop.permute.xlu1 %2504 }
 0x47e   :  { %v2756_v48 = vrot.slane %v2505_v40, %v5875_v57  ;;  %v2780_v29 = vrot.slane %v2520_v18, %v4329_v16 }
 0x480   :  { %v2757_v58 = vsel %vm6036_vm3, %v2756_v48, %v2752_v44  ;;  %vm6051_vm3 = vcmask 851712  }
 0x481   :  { %v2762_v17 = vsel %vm6037_vm7, %v2761_v41, %v2757_v58  ;;  %v2526_v55 = vpop.permute.xlu0 %2525  ;;  %v2511_v36 = vpop.permute.xlu1 %2510  ;;  %vm6052_vm7 = vmmov %vm6047_vm8 }
 0x482   :  { %v5302_v59 = vsel %vm6038_vm5, %v2762_v17, %v2683_v62  ;;  %v2766_v14 = vrot.slane %v2511_v36, %v4317_v28  ;;  %v2790_v8 = vrot.slane %v2526_v55, %v4337_v7  ;;  %vm6053_vm5 = vcmask 917312  }
 0x484   :  { %v2771_v21 = vsel %vm1538_vm9, %v2770_v34, %v2766_v14 }
 0x485   :  { %v2532_v27 = vpop.permute.xlu0 %2531  ;;  %v2517_v30 = vpop.permute.xlu1 %2516 }
 0x486   :  { %v2775_v62 = vrot.slane %v2517_v30, %v4323_v9  ;;  %v2800_v41 = vrot.slane %v2532_v27, %v4345_v22 }
 0x488   :  { %v2776_v20 = vsel %vm1545_vm11, %v2775_v62, %v2771_v21 }
 0x489   :  { %v2523_v47 = vpop.permute.xlu1 %2522  ;;  %v2538_v10 = vpop.permute.xlu0 %2537  ;;  %v2781_v60 = vsel %vm1552_vm14, %v2780_v29, %v2776_v20 }
 0x48a   :  { %v2785_v33 = vrot.slane %v2523_v47, %v4334_v32 }
 0x48c   :  { %v2786_v24 = vsel %vm6026_vm0, %v2785_v33, %v2781_v60 }
 0x48d   :  { %v2529_v13 = vpop.permute.xlu1 %2528 }
 0x48e   :  { %v2795_v46 = vrot.slane %v2529_v13, %v4340_v12  ;;  %v2810_v13 = vrot.slane %v2538_v10, %v4351_v25 }
 0x48f   :  { %v2559_v45 = vpop.permute.xlu0 %2558 }
 0x490   :  { %v2845_v35 = vrot.slane %v2559_v45, %v4317_v28 }
 0x491   :  { %v2535_v37 = vpop.permute.xlu1 %2534 }
 0x492   :  { %v2805_v40 = vrot.slane %v2535_v37, %v4348_v53 }
 0x493   :  { %v2565_v52 = vpop.permute.xlu0 %2564 }
 0x495   :  { %v2541_v6 = vpop.permute.xlu1 %2540 }
 0x496   :  { %v2815_v30 = vrot.slane %v2541_v6, %v4362_v51 }
 0x497   :  { %v2571_v15 = vpop.permute.xlu0 %2570 }
 0x498   :  { %v2864_v18 = vrot.slane %v2571_v15, %v4334_v32 }
 0x499   :  { %v2562_v49 = vpop.permute.xlu1 %2561 }
 0x49a   :  { %v2849_v3 = vrot.slane %v2562_v49, %v4320_v39  ;;  %v2854_v39 = vrot.slane %v2565_v52, %v4323_v9 }
 0x49b   :  { %v2577_v26 = vpop.permute.xlu0 %2576 }
 0x49c   :  { %v2850_v43 = vsel %vm1538_vm9, %v2849_v3, %v2845_v35  ;;  %vm6039_vm9 = vmmov %vm6027_vm12  ;;  %v2874_v36 = vrot.slane %v2577_v26, %v4340_v12 }
 0x49d   :  { %v2568_v23 = vpop.permute.xlu1 %2567  ;;  %v2855_v28 = vsel %vm1545_vm11, %v2854_v39, %v2850_v43  ;;  %vm6040_vm12 = vmmov %vm6028_vm4  ;;  %vm6043_vm11 = vcmask 523712  }
 0x49e   :  { %v2859_v38 = vrot.slane %v2568_v23, %v4329_v16  ;;  %v2791_v16 = vsel %vm6039_vm9, %v2790_v8, %v2786_v24  ;;  %vm6041_vm4 = vmmov %vm6026_vm0 }
 0x49f   :  { %v2583_v5 = vpop.permute.xlu0 %2582  ;;  %v2796_v9 = vsel %vm6040_vm12, %v2795_v46, %v2791_v16  ;;  %vm6042_vm13 = vmmov %vm6039_vm9  ;;  %vm6055_vm9 = vcmask 982912  }
 0x4a0   :  { %v2860_v63 = vsel %vm1552_vm14, %v2859_v38, %v2855_v28  ;;  %vm6044_vm14 = vmmov %vm6030_vm6  ;;  %v2884_v49 = vrot.slane %v2583_v5, %v4348_v53 }
 0x4a1   :  { %v2574_v19 = vpop.permute.xlu1 %2573  ;;  %v2865_v58 = vsel %vm6041_vm4, %v2864_v18, %v2860_v63  ;;  %vm6045_vm6 = vmmov %vm6040_vm12  ;;  %vm6057_vm4 = vcmask 1048512  }
 0x4a2   :  { %v2869_v0 = vrot.slane %v2574_v19, %v4337_v7  ;;  %v2801_v7 = vsel %vm6043_vm11, %v2800_v41, %v2796_v9  ;;  %vm6046_vm2 = vmmov %vm6043_vm11 }
 0x4a3   :  { %v2544_v50 = vpop.permute.xlu0 %2543  ;;  %v2806_v32 = vsel %vm6044_vm14, %v2805_v40, %v2801_v7  ;;  %vm6050_vm10 = vmmov %vm6044_vm14 }
 0x4a4   :  { %v2870_v17 = vsel %vm6042_vm13, %v2869_v0, %v2865_v58  ;;  %v2820_v45 = vrot.slane %v2544_v50, %v5859_v2  ;;  %v2811_v12 = vsel %vm6047_vm8, %v2810_v13, %v2806_v32  ;;  %vm6054_vm0 = vmmov %vm6048_vm1  ;;  %vm6063_vm8 = vcmask 1043459  }
 0x4a5   :  { %v2580_v1 = vpop.permute.xlu1 %2579  ;;  %v2875_v27 = vsel %vm6045_vm6, %v2874_v36, %v2870_v17  ;;  %v2816_v10 = vsel %vm6048_vm1, %v2815_v30, %v2811_v12  ;;  %vm6056_vm12 = vmmov %vm6049_vm15 }
 0x4a6   :  { %v2879_v55 = vrot.slane %v2580_v1, %v4345_v22  ;;  %v2821_v14 = vsel %vm6049_vm15, %v2820_v45, %v2816_v10  ;;  %vm6058_vm13 = vmmov %vm6051_vm3 }
 0x4a7   :  { %v2547_v61 = vpop.permute.xlu0 %2546  ;;  %vm6059_vm11 = vmmov %vm6053_vm5 }
 0x4a8   :  { %v2880_v52 = vsel %vm6046_vm2, %v2879_v55, %v2875_v27  ;;  %v2825_v22 = vrot.slane %v2547_v61, %v6021_v4  ;;  %vm6060_vm14 = vmmov %vm6055_vm9  ;;  %vm6062_vm2 = vcmask 1042434  }
 0x4a9   :  { %v2586_v11 = vpop.permute.xlu1 %2585  ;;  %v2885_v62 = vsel %vm6050_vm10, %v2884_v49, %v2880_v52  ;;  %vm6061_vm6 = vmmov %vm6057_vm4 }
 0x4aa   :  { %v2889_v15 = vrot.slane %v2586_v11, %v4351_v25  ;;  %v2826_v53 = vsel %vm6051_vm3, %v2825_v22, %v2821_v14 }
 0x4ab   :  { %v2550_v31 = vpop.permute.xlu0 %2549 }
 0x4ac   :  { %v2830_v6 = vrot.slane %v2550_v31, %v4384_v54  ;;  %v2890_v5 = vsel %vm6052_vm7, %v2889_v15, %v2885_v62 }
 0x4ad   :  { %v2589_v56 = vpop.permute.xlu1 %2588 }
 0x4ae   :  { %v2894_v26 = vrot.slane %v2589_v56, %v4362_v51  ;;  %v2831_v34 = vsel %vm6053_vm5, %v2830_v6, %v2826_v53 }
 0x4af   :  { %v2553_v44 = vpop.permute.xlu0 %2552 }
 0x4b0   :  { %v2835_v23 = vrot.slane %v2553_v44, %v5875_v57  ;;  %v2895_v3 = vsel %vm6054_vm0, %v2894_v26, %v2890_v5 }
 0x4b1   :  { %v2592_v48 = vpop.permute.xlu1 %2591 }
 0x4b2   :  { %v2899_v19 = vrot.slane %v2592_v48, %v5859_v2  ;;  %v2836_v61 = vsel %vm6055_vm9, %v2835_v23, %v2831_v34 }
 0x4b3   :  { %v2556_v37 = vpop.permute.xlu0 %2555 }
 0x4b4   :  { %v2840_v25 = vrot.slane %v2556_v37, %v4395_v42  ;;  %v2900_v21 = vsel %vm6056_vm12, %v2899_v19, %v2895_v3 }
 0x4b5   :  { %v2595_v47 = vpop.permute.xlu1 %2594 }
 0x4b6   :  { %v2904_v1 = vrot.slane %v2595_v47, %v6021_v4  ;;  %v2841_v33 = vsel %vm6057_vm4, %v2840_v25, %v2836_v61 }
 0x4b7   :  { %v2604_v2 = vpop.permute.xlu0 %2603  ;;  %v2922_v38 = vsel %vm6062_vm2, %v2841_v33, %v5302_v59 }
 0x4b8   :  { %v2905_v4 = vsel %vm6058_vm13, %v2904_v1, %v2900_v21 }
 0x4b9   :  { %v2598_v50 = vpop.permute.xlu1 %2597 }
 0x4ba   :  { %v2909_v51 = vrot.slane %v2598_v50, %v4384_v54  ;;  %v2919_v54 = vrot.slane %v2604_v2, %v4395_v42 }
 0x4bc   :  { %v2910_v11 = vsel %vm6059_vm11, %v2909_v51, %v2905_v4 }
 0x4bd   :  { %v2601_v20 = vpop.permute.xlu1 %2600 }
 0x4be   :  { %v2914_v35 = vrot.slane %v2601_v20, %v5875_v57 }
 0x4c0   :  { %v2915_v29 = vsel %vm6060_vm14, %v2914_v35, %v2910_v11 }
 0x4c1   :  { %v2920_v43 = vsel %vm6061_vm6, %v2919_v54, %v2915_v29 }
 0x4c2   :  { %v2923_v31 = vsel %vm6063_vm8, %v2920_v43, %v2922_v38 }
 0x4c3   :  { %2924 = vst [vmem:[#allocation6] sm:$0xf] %v2923_v31 }
 0x4c4   :  { %2983 = shalt.err (!%p2980_p4)
}
 0x4c5   :  { %s2984_s24 = scalar_lea.hbm %s5382_s1, 64 }
 0x4c6   :  { %p2985_p5 = scmp.ne.s32.totalorder %s5382_s1, %s2984_s24  ;;  %p2988_p6 = scmp.lt.u32.totalorder %s2984_s24, %s5382_s1 }
 0x4c8   :  { %p2990_p7 = pnand %p2988_p6, %p2985_p5 }
 0x4ca   :  { %2993 = shalt.err (!%p2990_p7)
}
 0x4cb   :  { %2943 = dma.vmem_to_hbm [thread:$0]  %s2941_s20, 64, %s5382_s1, [#allocation5]  }
 0x4cc   :  { %2996 = dma.done.wait [#allocation5], 64  }
 0x4cd   :  { %2997 = vsyncadd [#allocation5], 4294967232 }
 0x4ce   :  { %2947 = vsyncpa [#allocation4], 1 }
 0x4cf   :  { %2948 = vsyncpa [#allocation5], 1 }

</bundles_post_ra>
